<compile_context>
chip_gen: v7x
topology: tpu7x:2x2x1
jax: 0.10.0
libtpu: 0.0.40
codegen_flags: <defaults>
</compile_context>

<pallas_src>
import functools

import jax
import jax.numpy as jnp
from jax.experimental import pallas as pl
from jax.experimental.pallas import tpu as pltpu

LN_EPS = 1e-5
BN_EPS = 1e-5
MXU_DTYPE = jnp.bfloat16            # MXU operand dtype (f32 accumulation)
VMEM_LIMIT = 32 * 1024 * 1024       # conservative: fits v5e/v6e/v7x scoped VMEM


def _cparams(n_grid_axes):
    return pltpu.CompilerParams(
        dimension_semantics=("parallel",) * n_grid_axes,
        vmem_limit_bytes=VMEM_LIMIT,
    )


def _row_block(rows, target=512):
    """Largest row tile that divides `rows`, is a multiple of 8, <= target, and
    (when possible) leaves >= 2 blocks so v7x can shard across its 2 TCs."""
    if rows % 8 != 0:
        return rows
    hi = min(target, rows)
    if rows // hi < 2 and rows >= 16:
        hi = max(8, (rows // 2) // 8 * 8)
    hi = hi // 8 * 8
    for cand in range(hi, 7, -8):
        if rows % cand == 0:
            return cand
    return rows


# ------------------------------ channel LayerNorm ---------------------------
def _channel_ln(x, g, b):
    # Matches the reference: (x - mean) / (sqrt(var_unbiased=False) + eps) * g + b
    mean = jnp.mean(x, axis=-1, keepdims=True)
    var = jnp.mean(jnp.square(x - mean), axis=-1, keepdims=True)
    return (x - mean) / (jnp.sqrt(var) + LN_EPS) * g + b


def _ln_kernel(x_ref, g_ref, b_ref, o_ref):
    x = x_ref[...].astype(jnp.float32)
    o_ref[...] = _channel_ln(x, g_ref[...], b_ref[...]).astype(o_ref.dtype)


def layer_norm_nhwc(x, g, b):
    B, H, W, C = x.shape
    R = B * H * W
    rb = _row_block(R)
    x2 = x.reshape(R, C)
    out = pl.pallas_call(
        _ln_kernel,
        out_shape=jax.ShapeDtypeStruct((R, C), x.dtype),
        grid=(R // rb,),
        in_specs=[
            pl.BlockSpec((rb, C), lambda i: (i, 0)),
            pl.BlockSpec((1, C), lambda i: (0, 0)),
            pl.BlockSpec((1, C), lambda i: (0, 0)),
        ],
        out_specs=pl.BlockSpec((rb, C), lambda i: (i, 0)),
        compiler_params=_cparams(1),
    )(x2, g.reshape(1, C), b.reshape(1, C))
    return out.reshape(B, H, W, C)


# --------- fused depthwise conv + folded BatchNorm + 1x1 pointwise conv -----
def _proj_kernel(xph_ref, wdw_ref, bn_ref, pw_ref, o_ref, flat_ref,
                 *, K, stride, Ho, Wo):
    C = wdw_ref.shape[1]
    w = wdw_ref[...].astype(jnp.float32)            # (K*K, C), hoisted out of tap loop
    scale = bn_ref[0, :]                            # folded BatchNorm affine
    shift = bn_ref[1, :]
    acc = jnp.zeros((Ho, Wo, C), jnp.float32)
    for i in range(K):                              # statically unrolled K*K taps,
        for j in range(K):                          # read from the (phase-decomposed)
            pi, pj = i % stride, j % stride         # padded input already in VMEM
            oi, oj = i // stride, j // stride
            tap = xph_ref[pi * stride + pj, pl.ds(oi, Ho), pl.ds(oj, Wo), :]
            acc = acc + tap.astype(jnp.float32) * w[i * K + j]
    acc = acc * scale + shift
    # Flatten (Ho, Wo, C) -> (Ho*Wo, C) through a tiny VMEM scratch with static
    # row stores (avoids an in-kernel reshape/relayout).
    for oh in range(Ho):
        flat_ref[pl.ds(oh * Wo, Wo), :] = acc[oh]
    y = flat_ref[...].astype(MXU_DTYPE)
    out = jnp.dot(y, pw_ref[...], preferred_element_type=jnp.float32)
    o_ref[0] = out.astype(o_ref.dtype)


def _phase_decompose(xp, stride):
    # (B, Hp, Wp, C) -> (B*s*s, Hq, Wq, C) with
    #   out[b*s*s + pi*s + pj, r, q] = xp[b, r*s + pi, q*s + pj]
    # A pure relayout of 1x the data (replaces the old 9x im2col taps tensor)
    # so the kernel only needs contiguous slices even for strided convs.
    B, Hp, Wp, C = xp.shape
    s = stride
    Hq = -(-Hp // s)
    Wq = -(-Wp // s)
    xp = jnp.pad(xp, ((0, 0), (0, Hq * s - Hp), (0, Wq * s - Wp), (0, 0)))
    xr = xp.reshape(B, Hq, s, Wq, s, C).transpose(0, 2, 4, 1, 3, 5)
    return xr.reshape(B * s * s, Hq, Wq, C), Hq, Wq


def dwconv_project(x, p, K, stride):
    """DepthWiseConv2d (depthwise KxK conv + BatchNorm + 1x1 conv, bias=False)
    fused into one gridded pallas_call.  Returns tokens (B, Ho*Wo, Cout)."""
    B, H, W, C = x.shape
    pad = K // 2
    Ho = (H + 2 * pad - K) // stride + 1
    Wo = (W + 2 * pad - K) // stride + 1
    xp = jnp.pad(x, ((0, 0), (pad, pad), (pad, pad), (0, 0)))
    xph, Hq, Wq = _phase_decompose(xp, stride)
    Cout = p["pw_w"].shape[1]
    kern = functools.partial(_proj_kernel, K=K, stride=stride, Ho=Ho, Wo=Wo)
    return pl.pallas_call(
        kern,
        out_shape=jax.ShapeDtypeStruct((B, Ho * Wo, Cout), x.dtype),
        grid=(B,),
        in_specs=[
            pl.BlockSpec((stride * stride, Hq, Wq, C), lambda b: (b, 0, 0, 0)),
            pl.BlockSpec((K * K, C), lambda b: (0, 0)),
            pl.BlockSpec((2, C), lambda b: (0, 0)),
            pl.BlockSpec((C, Cout), lambda b: (0, 0)),
        ],
        out_specs=pl.BlockSpec((1, Ho * Wo, Cout), lambda b: (b, 0, 0)),
        scratch_shapes=[pltpu.VMEM((Ho * Wo, C), jnp.float32)],
        compiler_params=_cparams(1),
    )(xph, p["dw_w"], p["bn"], p["pw_w"])


# -------- fused cross attention + to_out 1x1 conv + multiplicative residual --
def _attn_out_kernel(q_ref, kv_ref, w_ref, b_ref, res_ref, o_ref,
                     *, heads, dim_head, scale):
    inner = heads * dim_head
    q = q_ref[0]                       # (Nq, inner)  loads hoisted out of head loop
    kv = kv_ref[0]                     # (Nk, 2*inner)  [k | v] channel-concat
    w_out = w_ref[...]                 # (inner, dim)  bf16
    t = jnp.zeros((q.shape[0], w_out.shape[1]), jnp.float32)
    for h in range(heads):             # statically unrolled per-head 2-D MXU matmuls
        lo = h * dim_head
        qh = q[:, lo:lo + dim_head].astype(MXU_DTYPE)
        kh = kv[:, lo:lo + dim_head].astype(MXU_DTYPE)
        vh = kv[:, inner + lo:inner + lo + dim_head].astype(MXU_DTYPE)
        dots = jax.lax.dot_general(qh, kh, (((1,), (1,)), ((), ())),
                                   preferred_element_type=jnp.float32) * scale
        m = jnp.max(dots, axis=-1, keepdims=True)
        p = jnp.exp(dots - m)
        attn = p * pl.reciprocal(jnp.sum(p, axis=-1, keepdims=True), approx=True)
        oh = jnp.dot(attn.astype(MXU_DTYPE), vh, preferred_element_type=jnp.float32)
        # heads->channels merge + to_out 1x1 conv folded into the same kernel:
        t = t + jnp.dot(oh.astype(MXU_DTYPE), w_out[lo:lo + dim_head, :],
                        preferred_element_type=jnp.float32)
    t = t + b_ref[...]
    # HelixFormer residual:  x <- x * to_out(attention(...))   (Dropout(0) = id)
    o_ref[0] = (res_ref[0].astype(jnp.float32) * t).astype(o_ref.dtype)


def attention_out_mul(q, kv, w_out, b_out, x_res, heads, dim_head):
    B, H, W, C = x_res.shape
    Nq = H * W
    Nk = kv.shape[1]
    inner = heads * dim_head
    res3 = x_res.reshape(B, Nq, C)
    scale = float(dim_head) ** -0.5
    kern = functools.partial(_attn_out_kernel, heads=heads, dim_head=dim_head,
                             scale=scale)
    out = pl.pallas_call(
        kern,
        out_shape=jax.ShapeDtypeStruct((B, Nq, C), x_res.dtype),
        grid=(B,),
        in_specs=[
            pl.BlockSpec((1, Nq, inner), lambda b: (b, 0, 0)),
            pl.BlockSpec((1, Nk, 2 * inner), lambda b: (b, 0, 0)),
            pl.BlockSpec((inner, C), lambda b: (0, 0)),
            pl.BlockSpec((1, C), lambda b: (0, 0)),
            pl.BlockSpec((1, Nq, C), lambda b: (b, 0, 0)),
        ],
        out_specs=pl.BlockSpec((1, Nq, C), lambda b: (b, 0, 0)),
        compiler_params=_cparams(1),
    )(q, kv, w_out, b_out.reshape(1, C), res3)
    return out.reshape(B, H, W, C)


# ------------- fused PreNorm + FeedForward (1x1 -> GELU -> 1x1) + residual ---
def _ffn_kernel(x_ref, ln_ref, w1_ref, b1_ref, w2_ref, b2_ref, o_ref):
    x = x_ref[...].astype(jnp.float32)
    n = _channel_ln(x, ln_ref[0, :], ln_ref[1, :])
    h = jnp.dot(n.astype(MXU_DTYPE), w1_ref[...], preferred_element_type=jnp.float32)
    h = h + b1_ref[...]
    # TODO(synk): nn.GELU uses the exact erf form; tanh-approximate GELU used here.
    h = jax.nn.gelu(h, approximate=True)
    y = jnp.dot(h.astype(MXU_DTYPE), w2_ref[...], preferred_element_type=jnp.float32)
    y = y + b2_ref[...]
    o_ref[...] = (x + y).astype(o_ref.dtype)      # additive residual


def feed_forward_residual(x, p):
    B, H, W, C = x.shape
    R = B * H * W
    hid = p["w1"].shape[1]
    rb = _row_block(R)
    x2 = x.reshape(R, C)
    out = pl.pallas_call(
        _ffn_kernel,
        out_shape=jax.ShapeDtypeStruct((R, C), x.dtype),
        grid=(R // rb,),
        in_specs=[
            pl.BlockSpec((rb, C), lambda i: (i, 0)),
            pl.BlockSpec((2, C), lambda i: (0, 0)),
            pl.BlockSpec((C, hid), lambda i: (0, 0)),
            pl.BlockSpec((1, hid), lambda i: (0, 0)),
            pl.BlockSpec((hid, C), lambda i: (0, 0)),
            pl.BlockSpec((1, C), lambda i: (0, 0)),
        ],
        out_specs=pl.BlockSpec((rb, C), lambda i: (i, 0)),
        compiler_params=_cparams(1),
    )(x2, p["ln"], p["w1"], p["b1"].reshape(1, hid), p["w2"], p["b2"].reshape(1, C))
    return out.reshape(B, H, W, C)


# ------------------------------ module composition ---------------------------
def conv_cross_transformer(x1_nchw, x2_nchw, params, *, K, kv_stride, heads, dim_head):
    x1 = jnp.transpose(x1_nchw, (0, 2, 3, 1))          # NCHW -> NHWC
    x2 = jnp.transpose(x2_nchw, (0, 2, 3, 1))
    for lp in params["layers"]:
        a = lp["attn"]
        # PreNorm(ConvCrossAttention)
        n1 = layer_norm_nhwc(x1, lp["norm1_g"], lp["norm1_b"])
        n2 = layer_norm_nhwc(x2, lp["norm2_g"], lp["norm2_b"])
        q1 = dwconv_project(n1, a["to_q1"], K, 1)          # (B, H*W,  inner)
        kv1 = dwconv_project(n1, a["to_kv1"], K, kv_stride)  # (B, Ho*Wo, 2*inner)
        q2 = dwconv_project(n2, a["to_q2"], K, 1)
        kv2 = dwconv_project(n2, a["to_kv2"], K, kv_stride)
        # cross attention (stream1 attends over stream2's k/v and vice versa),
        # fused with to_out 1x1 conv and the multiplicative residual.
        x1 = attention_out_mul(q1, kv2, a["out1_w"], a["out1_b"], x1, heads, dim_head)
        x2 = attention_out_mul(q2, kv1, a["out2_w"], a["out2_b"], x2, heads, dim_head)
        # PreNorm(FeedForward) + additive residual, fully fused per stream.
        x1 = feed_forward_residual(x1, lp["ff1"])
        x2 = feed_forward_residual(x2, lp["ff2"])
    return jnp.transpose(x1, (0, 3, 1, 2)), jnp.transpose(x2, (0, 3, 1, 2))


# ------------------------------ deterministic parameter init -----------------
def init_params(key, dim, K, depth, heads, dim_head, mlp_mult):
    inner = heads * dim_head
    hid = dim * mlp_mult

    def dwconv_params(k, cin, cout):
        k1, k2 = jax.random.split(k)
        dw_w = 0.1 * jax.random.normal(k1, (K * K, cin), jnp.float32)
        pw_w = 0.1 * jax.random.normal(k2, (cin, cout), jnp.float32)
        # BatchNorm2d(cin) folded in eval mode with PyTorch-at-init running stats.
        # TODO(synk): train-mode BatchNorm (batch statistics) is not modeled.
        gamma = jnp.ones((cin,), jnp.float32)
        beta = jnp.zeros((cin,), jnp.float32)
        rmean = jnp.zeros((cin,), jnp.float32)
        rvar = jnp.ones((cin,), jnp.float32)
        bn_scale = gamma / jnp.sqrt(rvar + BN_EPS)
        bn_shift = beta - rmean * bn_scale
        return {"dw_w": dw_w,
                "bn": jnp.stack([bn_scale, bn_shift], axis=0),
                "pw_w": pw_w.astype(MXU_DTYPE)}

    def ffn_params(k):
        k1, k2, k3, k4 = jax.random.split(k, 4)
        return {"ln": jnp.stack([jnp.ones((dim,), jnp.float32),
                                 jnp.zeros((dim,), jnp.float32)], axis=0),
                "w1": (0.1 * jax.random.normal(k1, (dim, hid), jnp.float32)).astype(MXU_DTYPE),
                "b1": 0.01 * jax.random.normal(k2, (hid,), jnp.float32),
                "w2": (0.1 * jax.random.normal(k3, (hid, dim), jnp.float32)).astype(MXU_DTYPE),
                "b2": 0.01 * jax.random.normal(k4, (dim,), jnp.float32)}

    layers = []
    for li in range(depth):
        kl = jax.random.fold_in(key, li)
        ks = jax.random.split(kl, 10)
        attn = {
            "to_q1": dwconv_params(ks[0], dim, inner),
            "to_kv1": dwconv_params(ks[1], dim, inner * 2),
            "to_q2": dwconv_params(ks[2], dim, inner),
            "to_kv2": dwconv_params(ks[3], dim, inner * 2),
            "out1_w": (0.1 * jax.random.normal(ks[4], (inner, dim), jnp.float32)).astype(MXU_DTYPE),
            "out1_b": 0.01 * jax.random.normal(ks[5], (dim,), jnp.float32),
            "out2_w": (0.1 * jax.random.normal(ks[6], (inner, dim), jnp.float32)).astype(MXU_DTYPE),
            "out2_b": 0.01 * jax.random.normal(ks[7], (dim,), jnp.float32),
        }
        layers.append({
            "norm1_g": jnp.ones((dim,), jnp.float32),
            "norm1_b": jnp.zeros((dim,), jnp.float32),
            "norm2_g": jnp.ones((dim,), jnp.float32),
            "norm2_b": jnp.zeros((dim,), jnp.float32),
            "attn": attn,
            "ff1": ffn_params(ks[8]),
            "ff2": ffn_params(ks[9]),
        })
    return {"layers": layers}


if __name__ == "__main__":
    B, dim, H, W = 2, 8, 8, 8
    proj_kernel, kv_proj_stride = 3, 2
    depth, heads, dim_head, mlp_mult = 2, 2, 16, 4

    key = jax.random.PRNGKey(0)
    kx1, kx2, kp = jax.random.split(key, 3)
    x1 = jax.random.normal(kx1, (B, dim, H, W), jnp.float32)
    x2 = jax.random.normal(kx2, (B, dim, H, W), jnp.float32)
    params = init_params(kp, dim, proj_kernel, depth, heads, dim_head, mlp_mult)

    fwd = jax.jit(functools.partial(
        conv_cross_transformer, K=proj_kernel, kv_stride=kv_proj_stride,
        heads=heads, dim_head=dim_head))
    y1, y2 = fwd(x1, x2, params)
    jax.block_until_ready((y1, y2))
    assert y1.shape == (B, dim, H, W) and y2.shape == (B, dim, H, W)
    assert bool(jnp.isfinite(y1).all()) and bool(jnp.isfinite(y2).all())
    print("KERNEL_OK")
</pallas_src>

<mosaic_0001>
module attributes {stable_mosaic.version = 11 : i64} {
  func.func @_ln_kernel(%arg0: i32, %arg1: memref<64x8xf32, #tpu.memory_space<vmem>>, %arg2: memref<1x8xf32, #tpu.memory_space<vmem>>, %arg3: memref<1x8xf32, #tpu.memory_space<vmem>>, %arg4: memref<64x8xf32, #tpu.memory_space<vmem>>) attributes {dimension_semantics = [#tpu.dimension_semantics<parallel>], iteration_bounds = array<i64: 2>, scalar_prefetch = 0 : i64, scratch_operands = 0 : i64, tpu.core_type = #tpu.core_type<tc>, window_params = [{transform_indices = @transform_0, window_bounds = array<i64: 64, 8>}, {pipeline_mode = #tpu.pipeline_mode<synchronous>, transform_indices = @transform_1, window_bounds = array<i64: 1, 8>}, {pipeline_mode = #tpu.pipeline_mode<synchronous>, transform_indices = @transform_2, window_bounds = array<i64: 1, 8>}, {transform_indices = @transform_3, window_bounds = array<i64: 64, 8>}]} {
    %c0 = arith.constant 0 : index
    %c0_0 = arith.constant 0 : index
    %0 = vector.load %arg1[%c0, %c0_0] : memref<64x8xf32, #tpu.memory_space<vmem>>, vector<64x8xf32>
    %c0_1 = arith.constant 0 : index
    %c0_2 = arith.constant 0 : index
    %1 = vector.load %arg2[%c0_1, %c0_2] : memref<1x8xf32, #tpu.memory_space<vmem>>, vector<1x8xf32>
    %c0_3 = arith.constant 0 : index
    %c0_4 = arith.constant 0 : index
    %2 = vector.load %arg3[%c0_3, %c0_4] : memref<1x8xf32, #tpu.memory_space<vmem>>, vector<1x8xf32>
    %cst = arith.constant dense<0.000000e+00> : vector<64xf32>
    %3 = vector.multi_reduction <add>, %0, %cst [1] : vector<64x8xf32> to vector<64xf32>
    %4 = vector.shape_cast %3 : vector<64xf32> to vector<64x1xf32>
    %cst_5 = arith.constant 8.000000e+00 : f32
    %5 = vector.broadcast %cst_5 : f32 to vector<64x1xf32>
    %6 = arith.divf %4, %5 : vector<64x1xf32>
    %7 = vector.broadcast %6 : vector<64x1xf32> to vector<64x8xf32>
    %8 = arith.subf %0, %7 : vector<64x8xf32>
    %9 = arith.mulf %8, %8 : vector<64x8xf32>
    %cst_6 = arith.constant dense<0.000000e+00> : vector<64xf32>
    %10 = vector.multi_reduction <add>, %9, %cst_6 [1] : vector<64x8xf32> to vector<64xf32>
    %11 = vector.shape_cast %10 : vector<64xf32> to vector<64x1xf32>
    %cst_7 = arith.constant 8.000000e+00 : f32
    %12 = vector.broadcast %cst_7 : f32 to vector<64x1xf32>
    %13 = arith.divf %11, %12 : vector<64x1xf32>
    %14 = vector.broadcast %6 : vector<64x1xf32> to vector<64x8xf32>
    %15 = arith.subf %0, %14 : vector<64x8xf32>
    %16 = math.sqrt %13 : vector<64x1xf32>
    %cst_8 = arith.constant 9.99999974E-6 : f32
    %17 = vector.broadcast %cst_8 : f32 to vector<64x1xf32>
    %18 = arith.addf %16, %17 : vector<64x1xf32>
    %19 = vector.broadcast %18 : vector<64x1xf32> to vector<64x8xf32>
    %20 = arith.divf %15, %19 : vector<64x8xf32>
    %21 = vector.broadcast %1 : vector<1x8xf32> to vector<64x8xf32>
    %22 = arith.mulf %20, %21 : vector<64x8xf32>
    %23 = vector.broadcast %2 : vector<1x8xf32> to vector<64x8xf32>
    %24 = arith.addf %22, %23 : vector<64x8xf32>
    %c0_9 = arith.constant 0 : index
    %c0_10 = arith.constant 0 : index
    %25 = vector.load %arg4[%c0_9, %c0_10] : memref<64x8xf32, #tpu.memory_space<vmem>>, vector<64x8xf32>
    tpu.vector_store %arg4[%c0_9, %c0_10], %24 {strides = array<i32>} : memref<64x8xf32, #tpu.memory_space<vmem>>, vector<64x8xf32>,
    return
  }
  func.func @transform_0(%arg0: i32) -> (i32, i32) {
    %c0_i32 = arith.constant 0 : i32
    %c0_i32_0 = arith.constant 0 : i32
    return %arg0, %c0_i32 : i32, i32
  }
  func.func @transform_1(%arg0: i32) -> (i32, i32) {
    %c0_i32 = arith.constant 0 : i32
    %c0_i32_0 = arith.constant 0 : i32
    %c0_i32_1 = arith.constant 0 : i32
    return %c0_i32, %c0_i32_0 : i32, i32
  }
  func.func @transform_2(%arg0: i32) -> (i32, i32) {
    %c0_i32 = arith.constant 0 : i32
    %c0_i32_0 = arith.constant 0 : i32
    %c0_i32_1 = arith.constant 0 : i32
    return %c0_i32, %c0_i32_0 : i32, i32
  }
  func.func @transform_3(%arg0: i32) -> (i32, i32) {
    %c0_i32 = arith.constant 0 : i32
    %c0_i32_0 = arith.constant 0 : i32
    return %arg0, %c0_i32 : i32, i32
  }
}

module attributes {stable_mosaic.version = 11 : i64} {
  func.func @_proj_kernel(%arg0: i32, %arg1: memref<1x10x10x8xf32, #tpu.memory_space<vmem>>, %arg2: memref<9x8xf32, #tpu.memory_space<vmem>>, %arg3: memref<2x8xf32, #tpu.memory_space<vmem>>, %arg4: memref<8x32xbf16, #tpu.memory_space<vmem>>, %arg5: memref<1x64x32xf32, #tpu.memory_space<vmem>>, %arg6: memref<64x8xf32, #tpu.memory_space<vmem>>) attributes {dimension_semantics = [#tpu.dimension_semantics<parallel>], iteration_bounds = array<i64: 2>, scalar_prefetch = 0 : i64, scratch_operands = 1 : i64, tpu.core_type = #tpu.core_type<tc>, window_params = [{transform_indices = @transform_0, window_bounds = array<i64: 1, 10, 10, 8>}, {pipeline_mode = #tpu.pipeline_mode<synchronous>, transform_indices = @transform_1, window_bounds = array<i64: 9, 8>}, {pipeline_mode = #tpu.pipeline_mode<synchronous>, transform_indices = @transform_2, window_bounds = array<i64: 2, 8>}, {pipeline_mode = #tpu.pipeline_mode<synchronous>, transform_indices = @transform_3, window_bounds = array<i64: 8, 32>}, {transform_indices = @transform_4, window_bounds = array<i64: 1, 64, 32>}]} {
    %c0 = arith.constant 0 : index
    %c0_0 = arith.constant 0 : index
    %0 = vector.load %arg2[%c0, %c0_0] : memref<9x8xf32, #tpu.memory_space<vmem>>, vector<9x8xf32>
    %c0_1 = arith.constant 0 : index
    %c0_2 = arith.constant 0 : index
    %1 = vector.load %arg3[%c0_1, %c0_2] : memref<2x8xf32, #tpu.memory_space<vmem>>, vector<1x8xf32>
    %2 = vector.shape_cast %1 : vector<1x8xf32> to vector<8xf32>
    %c1 = arith.constant 1 : index
    %c0_3 = arith.constant 0 : index
    %3 = vector.load %arg3[%c1, %c0_3] : memref<2x8xf32, #tpu.memory_space<vmem>>, vector<1x8xf32>
    %4 = vector.shape_cast %3 : vector<1x8xf32> to vector<8xf32>
    %cst = arith.constant 0.000000e+00 : f32
    %5 = vector.broadcast %cst : f32 to vector<8x8x8xf32>
    %c0_4 = arith.constant 0 : index
    %c0_5 = arith.constant 0 : index
    %c0_6 = arith.constant 0 : index
    %c0_7 = arith.constant 0 : index
    %6 = vector.load %arg1[%c0_4, %c0_5, %c0_6, %c0_7] : memref<1x10x10x8xf32, #tpu.memory_space<vmem>>, vector<1x8x8x8xf32>
    %7 = vector.shape_cast %6 : vector<1x8x8x8xf32> to vector<8x8x8xf32>
    %8 = vector.extract_strided_slice %0 {offsets = [0, 0], sizes = [1, 8], strides = [1, 1]} : vector<9x8xf32> to vector<1x8xf32>
    %9 = vector.shape_cast %8 : vector<1x8xf32> to vector<8xf32>
    %10 = vector.shape_cast %9 : vector<8xf32> to vector<1x1x8xf32>
    %11 = vector.broadcast %10 : vector<1x1x8xf32> to vector<8x8x8xf32>
    %12 = arith.mulf %7, %11 : vector<8x8x8xf32>
    %13 = arith.addf %5, %12 : vector<8x8x8xf32>
    %c0_8 = arith.constant 0 : index
    %c0_9 = arith.constant 0 : index
    %c1_10 = arith.constant 1 : index
    %c0_11 = arith.constant 0 : index
    %14 = vector.load %arg1[%c0_8, %c0_9, %c1_10, %c0_11] : memref<1x10x10x8xf32, #tpu.memory_space<vmem>>, vector<1x8x8x8xf32>
    %15 = vector.shape_cast %14 : vector<1x8x8x8xf32> to vector<8x8x8xf32>
    %16 = vector.extract_strided_slice %0 {offsets = [1, 0], sizes = [1, 8], strides = [1, 1]} : vector<9x8xf32> to vector<1x8xf32>
    %17 = vector.shape_cast %16 : vector<1x8xf32> to vector<8xf32>
    %18 = vector.shape_cast %17 : vector<8xf32> to vector<1x1x8xf32>
    %19 = vector.broadcast %18 : vector<1x1x8xf32> to vector<8x8x8xf32>
    %20 = arith.mulf %15, %19 : vector<8x8x8xf32>
    %21 = arith.addf %13, %20 : vector<8x8x8xf32>
    %c0_12 = arith.constant 0 : index
    %c0_13 = arith.constant 0 : index
    %c2 = arith.constant 2 : index
    %c0_14 = arith.constant 0 : index
    %22 = vector.load %arg1[%c0_12, %c0_13, %c2, %c0_14] : memref<1x10x10x8xf32, #tpu.memory_space<vmem>>, vector<1x8x8x8xf32>
    %23 = vector.shape_cast %22 : vector<1x8x8x8xf32> to vector<8x8x8xf32>
    %24 = vector.extract_strided_slice %0 {offsets = [2, 0], sizes = [1, 8], strides = [1, 1]} : vector<9x8xf32> to vector<1x8xf32>
    %25 = vector.shape_cast %24 : vector<1x8xf32> to vector<8xf32>
    %26 = vector.shape_cast %25 : vector<8xf32> to vector<1x1x8xf32>
    %27 = vector.broadcast %26 : vector<1x1x8xf32> to vector<8x8x8xf32>
    %28 = arith.mulf %23, %27 : vector<8x8x8xf32>
    %29 = arith.addf %21, %28 : vector<8x8x8xf32>
    %c0_15 = arith.constant 0 : index
    %c1_16 = arith.constant 1 : index
    %c0_17 = arith.constant 0 : index
    %c0_18 = arith.constant 0 : index
    %30 = vector.load %arg1[%c0_15, %c1_16, %c0_17, %c0_18] : memref<1x10x10x8xf32, #tpu.memory_space<vmem>>, vector<1x8x8x8xf32>
    %31 = vector.shape_cast %30 : vector<1x8x8x8xf32> to vector<8x8x8xf32>
    %32 = vector.extract_strided_slice %0 {offsets = [3, 0], sizes = [1, 8], strides = [1, 1]} : vector<9x8xf32> to vector<1x8xf32>
    %33 = vector.shape_cast %32 : vector<1x8xf32> to vector<8xf32>
    %34 = vector.shape_cast %33 : vector<8xf32> to vector<1x1x8xf32>
    %35 = vector.broadcast %34 : vector<1x1x8xf32> to vector<8x8x8xf32>
    %36 = arith.mulf %31, %35 : vector<8x8x8xf32>
    %37 = arith.addf %29, %36 : vector<8x8x8xf32>
    %c0_19 = arith.constant 0 : index
    %c1_20 = arith.constant 1 : index
    %c1_21 = arith.constant 1 : index
    %c0_22 = arith.constant 0 : index
    %38 = vector.load %arg1[%c0_19, %c1_20, %c1_21, %c0_22] : memref<1x10x10x8xf32, #tpu.memory_space<vmem>>, vector<1x8x8x8xf32>
    %39 = vector.shape_cast %38 : vector<1x8x8x8xf32> to vector<8x8x8xf32>
    %40 = vector.extract_strided_slice %0 {offsets = [4, 0], sizes = [1, 8], strides = [1, 1]} : vector<9x8xf32> to vector<1x8xf32>
    %41 = vector.shape_cast %40 : vector<1x8xf32> to vector<8xf32>
    %42 = vector.shape_cast %41 : vector<8xf32> to vector<1x1x8xf32>
    %43 = vector.broadcast %42 : vector<1x1x8xf32> to vector<8x8x8xf32>
    %44 = arith.mulf %39, %43 : vector<8x8x8xf32>
    %45 = arith.addf %37, %44 : vector<8x8x8xf32>
    %c0_23 = arith.constant 0 : index
    %c1_24 = arith.constant 1 : index
    %c2_25 = arith.constant 2 : index
    %c0_26 = arith.constant 0 : index
    %46 = vector.load %arg1[%c0_23, %c1_24, %c2_25, %c0_26] : memref<1x10x10x8xf32, #tpu.memory_space<vmem>>, vector<1x8x8x8xf32>
    %47 = vector.shape_cast %46 : vector<1x8x8x8xf32> to vector<8x8x8xf32>
    %48 = vector.extract_strided_slice %0 {offsets = [5, 0], sizes = [1, 8], strides = [1, 1]} : vector<9x8xf32> to vector<1x8xf32>
    %49 = vector.shape_cast %48 : vector<1x8xf32> to vector<8xf32>
    %50 = vector.shape_cast %49 : vector<8xf32> to vector<1x1x8xf32>
    %51 = vector.broadcast %50 : vector<1x1x8xf32> to vector<8x8x8xf32>
    %52 = arith.mulf %47, %51 : vector<8x8x8xf32>
    %53 = arith.addf %45, %52 : vector<8x8x8xf32>
    %c0_27 = arith.constant 0 : index
    %c2_28 = arith.constant 2 : index
    %c0_29 = arith.constant 0 : index
    %c0_30 = arith.constant 0 : index
    %54 = vector.load %arg1[%c0_27, %c2_28, %c0_29, %c0_30] : memref<1x10x10x8xf32, #tpu.memory_space<vmem>>, vector<1x8x8x8xf32>
    %55 = vector.shape_cast %54 : vector<1x8x8x8xf32> to vector<8x8x8xf32>
    %56 = vector.extract_strided_slice %0 {offsets = [6, 0], sizes = [1, 8], strides = [1, 1]} : vector<9x8xf32> to vector<1x8xf32>
    %57 = vector.shape_cast %56 : vector<1x8xf32> to vector<8xf32>
    %58 = vector.shape_cast %57 : vector<8xf32> to vector<1x1x8xf32>
    %59 = vector.broadcast %58 : vector<1x1x8xf32> to vector<8x8x8xf32>
    %60 = arith.mulf %55, %59 : vector<8x8x8xf32>
    %61 = arith.addf %53, %60 : vector<8x8x8xf32>
    %c0_31 = arith.constant 0 : index
    %c2_32 = arith.constant 2 : index
    %c1_33 = arith.constant 1 : index
    %c0_34 = arith.constant 0 : index
    %62 = vector.load %arg1[%c0_31, %c2_32, %c1_33, %c0_34] : memref<1x10x10x8xf32, #tpu.memory_space<vmem>>, vector<1x8x8x8xf32>
    %63 = vector.shape_cast %62 : vector<1x8x8x8xf32> to vector<8x8x8xf32>
    %64 = vector.extract_strided_slice %0 {offsets = [7, 0], sizes = [1, 8], strides = [1, 1]} : vector<9x8xf32> to vector<1x8xf32>
    %65 = vector.shape_cast %64 : vector<1x8xf32> to vector<8xf32>
    %66 = vector.shape_cast %65 : vector<8xf32> to vector<1x1x8xf32>
    %67 = vector.broadcast %66 : vector<1x1x8xf32> to vector<8x8x8xf32>
    %68 = arith.mulf %63, %67 : vector<8x8x8xf32>
    %69 = arith.addf %61, %68 : vector<8x8x8xf32>
    %c0_35 = arith.constant 0 : index
    %c2_36 = arith.constant 2 : index
    %c2_37 = arith.constant 2 : index
    %c0_38 = arith.constant 0 : index
    %70 = vector.load %arg1[%c0_35, %c2_36, %c2_37, %c0_38] : memref<1x10x10x8xf32, #tpu.memory_space<vmem>>, vector<1x8x8x8xf32>
    %71 = vector.shape_cast %70 : vector<1x8x8x8xf32> to vector<8x8x8xf32>
    %72 = vector.extract_strided_slice %0 {offsets = [8, 0], sizes = [1, 8], strides = [1, 1]} : vector<9x8xf32> to vector<1x8xf32>
    %73 = vector.shape_cast %72 : vector<1x8xf32> to vector<8xf32>
    %74 = vector.shape_cast %73 : vector<8xf32> to vector<1x1x8xf32>
    %75 = vector.broadcast %74 : vector<1x1x8xf32> to vector<8x8x8xf32>
    %76 = arith.mulf %71, %75 : vector<8x8x8xf32>
    %77 = arith.addf %69, %76 : vector<8x8x8xf32>
    %78 = vector.shape_cast %2 : vector<8xf32> to vector<1x1x8xf32>
    %79 = vector.broadcast %78 : vector<1x1x8xf32> to vector<8x8x8xf32>
    %80 = arith.mulf %77, %79 : vector<8x8x8xf32>
    %81 = vector.shape_cast %4 : vector<8xf32> to vector<1x1x8xf32>
    %82 = vector.broadcast %81 : vector<1x1x8xf32> to vector<8x8x8xf32>
    %83 = arith.addf %80, %82 : vector<8x8x8xf32>
    %84 = vector.extract_strided_slice %83 {offsets = [0, 0, 0], sizes = [1, 8, 8], strides = [1, 1, 1]} : vector<8x8x8xf32> to vector<1x8x8xf32>
    %85 = vector.shape_cast %84 : vector<1x8x8xf32> to vector<8x8xf32>
    %c0_39 = arith.constant 0 : index
    %c0_40 = arith.constant 0 : index
    %86 = vector.load %arg6[%c0_39, %c0_40] : memref<64x8xf32, #tpu.memory_space<vmem>>, vector<8x8xf32>
    tpu.vector_store %arg6[%c0_39, %c0_40], %85 {strides = array<i32>} : memref<64x8xf32, #tpu.memory_space<vmem>>, vector<8x8xf32>,
    %87 = vector.extract_strided_slice %83 {offsets = [1, 0, 0], sizes = [1, 8, 8], strides = [1, 1, 1]} : vector<8x8x8xf32> to vector<1x8x8xf32>
    %88 = vector.shape_cast %87 : vector<1x8x8xf32> to vector<8x8xf32>
    %c8 = arith.constant 8 : index
    %c0_41 = arith.constant 0 : index
    %89 = vector.load %arg6[%c8, %c0_41] : memref<64x8xf32, #tpu.memory_space<vmem>>, vector<8x8xf32>
    tpu.vector_store %arg6[%c8, %c0_41], %88 {strides = array<i32>} : memref<64x8xf32, #tpu.memory_space<vmem>>, vector<8x8xf32>,
    %90 = vector.extract_strided_slice %83 {offsets = [2, 0, 0], sizes = [1, 8, 8], strides = [1, 1, 1]} : vector<8x8x8xf32> to vector<1x8x8xf32>
    %91 = vector.shape_cast %90 : vector<1x8x8xf32> to vector<8x8xf32>
    %c16 = arith.constant 16 : index
    %c0_42 = arith.constant 0 : index
    %92 = vector.load %arg6[%c16, %c0_42] : memref<64x8xf32, #tpu.memory_space<vmem>>, vector<8x8xf32>
    tpu.vector_store %arg6[%c16, %c0_42], %91 {strides = array<i32>} : memref<64x8xf32, #tpu.memory_space<vmem>>, vector<8x8xf32>,
    %93 = vector.extract_strided_slice %83 {offsets = [3, 0, 0], sizes = [1, 8, 8], strides = [1, 1, 1]} : vector<8x8x8xf32> to vector<1x8x8xf32>
    %94 = vector.shape_cast %93 : vector<1x8x8xf32> to vector<8x8xf32>
    %c24 = arith.constant 24 : index
    %c0_43 = arith.constant 0 : index
    %95 = vector.load %arg6[%c24, %c0_43] : memref<64x8xf32, #tpu.memory_space<vmem>>, vector<8x8xf32>
    tpu.vector_store %arg6[%c24, %c0_43], %94 {strides = array<i32>} : memref<64x8xf32, #tpu.memory_space<vmem>>, vector<8x8xf32>,
    %96 = vector.extract_strided_slice %83 {offsets = [4, 0, 0], sizes = [1, 8, 8], strides = [1, 1, 1]} : vector<8x8x8xf32> to vector<1x8x8xf32>
    %97 = vector.shape_cast %96 : vector<1x8x8xf32> to vector<8x8xf32>
    %c32 = arith.constant 32 : index
    %c0_44 = arith.constant 0 : index
    %98 = vector.load %arg6[%c32, %c0_44] : memref<64x8xf32, #tpu.memory_space<vmem>>, vector<8x8xf32>
    tpu.vector_store %arg6[%c32, %c0_44], %97 {strides = array<i32>} : memref<64x8xf32, #tpu.memory_space<vmem>>, vector<8x8xf32>,
    %99 = vector.extract_strided_slice %83 {offsets = [5, 0, 0], sizes = [1, 8, 8], strides = [1, 1, 1]} : vector<8x8x8xf32> to vector<1x8x8xf32>
    %100 = vector.shape_cast %99 : vector<1x8x8xf32> to vector<8x8xf32>
    %c40 = arith.constant 40 : index
    %c0_45 = arith.constant 0 : index
    %101 = vector.load %arg6[%c40, %c0_45] : memref<64x8xf32, #tpu.memory_space<vmem>>, vector<8x8xf32>
    tpu.vector_store %arg6[%c40, %c0_45], %100 {strides = array<i32>} : memref<64x8xf32, #tpu.memory_space<vmem>>, vector<8x8xf32>,
    %102 = vector.extract_strided_slice %83 {offsets = [6, 0, 0], sizes = [1, 8, 8], strides = [1, 1, 1]} : vector<8x8x8xf32> to vector<1x8x8xf32>
    %103 = vector.shape_cast %102 : vector<1x8x8xf32> to vector<8x8xf32>
    %c48 = arith.constant 48 : index
    %c0_46 = arith.constant 0 : index
    %104 = vector.load %arg6[%c48, %c0_46] : memref<64x8xf32, #tpu.memory_space<vmem>>, vector<8x8xf32>
    tpu.vector_store %arg6[%c48, %c0_46], %103 {strides = array<i32>} : memref<64x8xf32, #tpu.memory_space<vmem>>, vector<8x8xf32>,
    %105 = vector.extract_strided_slice %83 {offsets = [7, 0, 0], sizes = [1, 8, 8], strides = [1, 1, 1]} : vector<8x8x8xf32> to vector<1x8x8xf32>
    %106 = vector.shape_cast %105 : vector<1x8x8xf32> to vector<8x8xf32>
    %c56 = arith.constant 56 : index
    %c0_47 = arith.constant 0 : index
    %107 = vector.load %arg6[%c56, %c0_47] : memref<64x8xf32, #tpu.memory_space<vmem>>, vector<8x8xf32>
    tpu.vector_store %arg6[%c56, %c0_47], %106 {strides = array<i32>} : memref<64x8xf32, #tpu.memory_space<vmem>>, vector<8x8xf32>,
    %c0_48 = arith.constant 0 : index
    %c0_49 = arith.constant 0 : index
    %108 = vector.load %arg6[%c0_48, %c0_49] : memref<64x8xf32, #tpu.memory_space<vmem>>, vector<64x8xf32>
    %109 = arith.truncf %108 : vector<64x8xf32> to vector<64x8xbf16>
    %c0_50 = arith.constant 0 : index
    %c0_51 = arith.constant 0 : index
    %110 = vector.load %arg4[%c0_50, %c0_51] : memref<8x32xbf16, #tpu.memory_space<vmem>>, vector<8x32xbf16>
    %cst_52 = arith.constant dense<0.000000e+00> : vector<64x32xf32>
    %111 = tpu.matmul %109, %110, %cst_52 {dimension_numbers = #tpu.dot_dimension_numbers<[1], [0], [0], [1], [0, 0, 1, 1], [], []>} : vector<64x8xbf16>, vector<8x32xbf16>, vector<64x32xf32> -> vector<64x32xf32>
    %c0_53 = arith.constant 0 : index
    %c0_54 = arith.constant 0 : index
    %c0_55 = arith.constant 0 : index
    %112 = vector.load %arg5[%c0_53, %c0_54, %c0_55] : memref<1x64x32xf32, #tpu.memory_space<vmem>>, vector<1x64x32xf32>
    %113 = vector.shape_cast %112 : vector<1x64x32xf32> to vector<64x32xf32>
    %114 = vector.shape_cast %111 : vector<64x32xf32> to vector<1x64x32xf32>
    tpu.vector_store %arg5[%c0_53, %c0_54, %c0_55], %114 {strides = array<i32>} : memref<1x64x32xf32, #tpu.memory_space<vmem>>, vector<1x64x32xf32>,
    return
  }
  func.func @transform_0(%arg0: i32) -> (i32, i32, i32, i32) {
    %c0_i32 = arith.constant 0 : i32
    %c0_i32_0 = arith.constant 0 : i32
    %c0_i32_1 = arith.constant 0 : i32
    %c0_i32_2 = arith.constant 0 : i32
    return %arg0, %c0_i32, %c0_i32_0, %c0_i32_1 : i32, i32, i32, i32
  }
  func.func @transform_1(%arg0: i32) -> (i32, i32) {
    %c0_i32 = arith.constant 0 : i32
    %c0_i32_0 = arith.constant 0 : i32
    %c0_i32_1 = arith.constant 0 : i32
    return %c0_i32, %c0_i32_0 : i32, i32
  }
  func.func @transform_2(%arg0: i32) -> (i32, i32) {
    %c0_i32 = arith.constant 0 : i32
    %c0_i32_0 = arith.constant 0 : i32
    %c0_i32_1 = arith.constant 0 : i32
    return %c0_i32, %c0_i32_0 : i32, i32
  }
  func.func @transform_3(%arg0: i32) -> (i32, i32) {
    %c0_i32 = arith.constant 0 : i32
    %c0_i32_0 = arith.constant 0 : i32
    %c0_i32_1 = arith.constant 0 : i32
    return %c0_i32, %c0_i32_0 : i32, i32
  }
  func.func @transform_4(%arg0: i32) -> (i32, i32, i32) {
    %c0_i32 = arith.constant 0 : i32
    %c0_i32_0 = arith.constant 0 : i32
    %c0_i32_1 = arith.constant 0 : i32
    return %arg0, %c0_i32, %c0_i32_0 : i32, i32, i32
  }
}

module attributes {stable_mosaic.version = 11 : i64} {
  func.func @_attn_out_kernel(%arg0: i32, %arg1: memref<1x64x32xf32, #tpu.memory_space<vmem>>, %arg2: memref<1x16x64xf32, #tpu.memory_space<vmem>>, %arg3: memref<32x8xbf16, #tpu.memory_space<vmem>>, %arg4: memref<1x8xf32, #tpu.memory_space<vmem>>, %arg5: memref<1x64x8xf32, #tpu.memory_space<vmem>>, %arg6: memref<1x64x8xf32, #tpu.memory_space<vmem>>) attributes {dimension_semantics = [#tpu.dimension_semantics<parallel>], iteration_bounds = array<i64: 2>, scalar_prefetch = 0 : i64, scratch_operands = 0 : i64, tpu.core_type = #tpu.core_type<tc>, window_params = [{transform_indices = @transform_0, window_bounds = array<i64: 1, 64, 32>}, {transform_indices = @transform_1, window_bounds = array<i64: 1, 16, 64>}, {pipeline_mode = #tpu.pipeline_mode<synchronous>, transform_indices = @transform_2, window_bounds = array<i64: 32, 8>}, {pipeline_mode = #tpu.pipeline_mode<synchronous>, transform_indices = @transform_3, window_bounds = array<i64: 1, 8>}, {transform_indices = @transform_4, window_bounds = array<i64: 1, 64, 8>}, {transform_indices = @transform_5, window_bounds = array<i64: 1, 64, 8>}]} {
    %c0 = arith.constant 0 : index
    %c0_0 = arith.constant 0 : index
    %c0_1 = arith.constant 0 : index
    %0 = vector.load %arg1[%c0, %c0_0, %c0_1] : memref<1x64x32xf32, #tpu.memory_space<vmem>>, vector<1x64x32xf32>
    %1 = vector.shape_cast %0 : vector<1x64x32xf32> to vector<64x32xf32>
    %c0_2 = arith.constant 0 : index
    %c0_3 = arith.constant 0 : index
    %c0_4 = arith.constant 0 : index
    %2 = vector.load %arg2[%c0_2, %c0_3, %c0_4] : memref<1x16x64xf32, #tpu.memory_space<vmem>>, vector<1x16x64xf32>
    %3 = vector.shape_cast %2 : vector<1x16x64xf32> to vector<16x64xf32>
    %c0_5 = arith.constant 0 : index
    %c0_6 = arith.constant 0 : index
    %4 = vector.load %arg3[%c0_5, %c0_6] : memref<32x8xbf16, #tpu.memory_space<vmem>>, vector<32x8xbf16>
    %cst = arith.constant 0.000000e+00 : f32
    %5 = vector.broadcast %cst : f32 to vector<64x8xf32>
    %6 = vector.extract_strided_slice %1 {offsets = [0, 0], sizes = [64, 16], strides = [1, 1]} : vector<64x32xf32> to vector<64x16xf32>
    %7 = arith.truncf %6 : vector<64x16xf32> to vector<64x16xbf16>
    %8 = vector.extract_strided_slice %3 {offsets = [0, 0], sizes = [16, 16], strides = [1, 1]} : vector<16x64xf32> to vector<16x16xf32>
    %9 = arith.truncf %8 : vector<16x16xf32> to vector<16x16xbf16>
    %10 = vector.extract_strided_slice %3 {offsets = [0, 32], sizes = [16, 16], strides = [1, 1]} : vector<16x64xf32> to vector<16x16xf32>
    %11 = arith.truncf %10 : vector<16x16xf32> to vector<16x16xbf16>
    %cst_7 = arith.constant dense<0.000000e+00> : vector<64x16xf32>
    %12 = tpu.matmul %7, %9, %cst_7 {dimension_numbers = #tpu.dot_dimension_numbers<[1], [1], [0], [0], [0, 0, 1, 0], [], []>} : vector<64x16xbf16>, vector<16x16xbf16>, vector<64x16xf32> -> vector<64x16xf32>
    %cst_8 = arith.constant 2.500000e-01 : f32
    %13 = vector.broadcast %cst_8 : f32 to vector<64x16xf32>
    %14 = arith.mulf %12, %13 : vector<64x16xf32>
    %cst_9 = arith.constant dense<0xFF800000> : vector<64xf32>
    %15 = vector.multi_reduction <maximumf>, %14, %cst_9 [1] : vector<64x16xf32> to vector<64xf32>
    %16 = vector.shape_cast %15 : vector<64xf32> to vector<64x1xf32>
    %17 = vector.broadcast %16 : vector<64x1xf32> to vector<64x16xf32>
    %18 = arith.subf %14, %17 : vector<64x16xf32>
    %19 = math.exp %18 : vector<64x16xf32>
    %cst_10 = arith.constant dense<0.000000e+00> : vector<64xf32>
    %20 = vector.multi_reduction <add>, %19, %cst_10 [1] : vector<64x16xf32> to vector<64xf32>
    %21 = vector.shape_cast %20 : vector<64xf32> to vector<64x1xf32>
    %22 = tpu.reciprocal %21 {approx = true} : vector<64x1xf32> -> vector<64x1xf32>
    %23 = vector.broadcast %22 : vector<64x1xf32> to vector<64x16xf32>
    %24 = arith.mulf %19, %23 : vector<64x16xf32>
    %25 = arith.truncf %24 : vector<64x16xf32> to vector<64x16xbf16>
    %cst_11 = arith.constant dense<0.000000e+00> : vector<64x16xf32>
    %26 = tpu.matmul %25, %11, %cst_11 {dimension_numbers = #tpu.dot_dimension_numbers<[1], [0], [0], [1], [0, 0, 1, 1], [], []>} : vector<64x16xbf16>, vector<16x16xbf16>, vector<64x16xf32> -> vector<64x16xf32>
    %27 = arith.truncf %26 : vector<64x16xf32> to vector<64x16xbf16>
    %28 = vector.extract_strided_slice %4 {offsets = [0, 0], sizes = [16, 8], strides = [1, 1]} : vector<32x8xbf16> to vector<16x8xbf16>
    %cst_12 = arith.constant dense<0.000000e+00> : vector<64x8xf32>
    %29 = tpu.matmul %27, %28, %cst_12 {dimension_numbers = #tpu.dot_dimension_numbers<[1], [0], [0], [1], [0, 0, 1, 1], [], []>} : vector<64x16xbf16>, vector<16x8xbf16>, vector<64x8xf32> -> vector<64x8xf32>
    %30 = arith.addf %5, %29 : vector<64x8xf32>
    %31 = vector.extract_strided_slice %1 {offsets = [0, 16], sizes = [64, 16], strides = [1, 1]} : vector<64x32xf32> to vector<64x16xf32>
    %32 = arith.truncf %31 : vector<64x16xf32> to vector<64x16xbf16>
    %33 = vector.extract_strided_slice %3 {offsets = [0, 16], sizes = [16, 16], strides = [1, 1]} : vector<16x64xf32> to vector<16x16xf32>
    %34 = arith.truncf %33 : vector<16x16xf32> to vector<16x16xbf16>
    %35 = vector.extract_strided_slice %3 {offsets = [0, 48], sizes = [16, 16], strides = [1, 1]} : vector<16x64xf32> to vector<16x16xf32>
    %36 = arith.truncf %35 : vector<16x16xf32> to vector<16x16xbf16>
    %cst_13 = arith.constant dense<0.000000e+00> : vector<64x16xf32>
    %37 = tpu.matmul %32, %34, %cst_13 {dimension_numbers = #tpu.dot_dimension_numbers<[1], [1], [0], [0], [0, 0, 1, 0], [], []>} : vector<64x16xbf16>, vector<16x16xbf16>, vector<64x16xf32> -> vector<64x16xf32>
    %cst_14 = arith.constant 2.500000e-01 : f32
    %38 = vector.broadcast %cst_14 : f32 to vector<64x16xf32>
    %39 = arith.mulf %37, %38 : vector<64x16xf32>
    %cst_15 = arith.constant dense<0xFF800000> : vector<64xf32>
    %40 = vector.multi_reduction <maximumf>, %39, %cst_15 [1] : vector<64x16xf32> to vector<64xf32>
    %41 = vector.shape_cast %40 : vector<64xf32> to vector<64x1xf32>
    %42 = vector.broadcast %41 : vector<64x1xf32> to vector<64x16xf32>
    %43 = arith.subf %39, %42 : vector<64x16xf32>
    %44 = math.exp %43 : vector<64x16xf32>
    %cst_16 = arith.constant dense<0.000000e+00> : vector<64xf32>
    %45 = vector.multi_reduction <add>, %44, %cst_16 [1] : vector<64x16xf32> to vector<64xf32>
    %46 = vector.shape_cast %45 : vector<64xf32> to vector<64x1xf32>
    %47 = tpu.reciprocal %46 {approx = true} : vector<64x1xf32> -> vector<64x1xf32>
    %48 = vector.broadcast %47 : vector<64x1xf32> to vector<64x16xf32>
    %49 = arith.mulf %44, %48 : vector<64x16xf32>
    %50 = arith.truncf %49 : vector<64x16xf32> to vector<64x16xbf16>
    %cst_17 = arith.constant dense<0.000000e+00> : vector<64x16xf32>
    %51 = tpu.matmul %50, %36, %cst_17 {dimension_numbers = #tpu.dot_dimension_numbers<[1], [0], [0], [1], [0, 0, 1, 1], [], []>} : vector<64x16xbf16>, vector<16x16xbf16>, vector<64x16xf32> -> vector<64x16xf32>
    %52 = arith.truncf %51 : vector<64x16xf32> to vector<64x16xbf16>
    %53 = vector.extract_strided_slice %4 {offsets = [16, 0], sizes = [16, 8], strides = [1, 1]} : vector<32x8xbf16> to vector<16x8xbf16>
    %cst_18 = arith.constant dense<0.000000e+00> : vector<64x8xf32>
    %54 = tpu.matmul %52, %53, %cst_18 {dimension_numbers = #tpu.dot_dimension_numbers<[1], [0], [0], [1], [0, 0, 1, 1], [], []>} : vector<64x16xbf16>, vector<16x8xbf16>, vector<64x8xf32> -> vector<64x8xf32>
    %55 = arith.addf %30, %54 : vector<64x8xf32>
    %c0_19 = arith.constant 0 : index
    %c0_20 = arith.constant 0 : index
    %56 = vector.load %arg4[%c0_19, %c0_20] : memref<1x8xf32, #tpu.memory_space<vmem>>, vector<1x8xf32>
    %57 = vector.broadcast %56 : vector<1x8xf32> to vector<64x8xf32>
    %58 = arith.addf %55, %57 : vector<64x8xf32>
    %c0_21 = arith.constant 0 : index
    %c0_22 = arith.constant 0 : index
    %c0_23 = arith.constant 0 : index
    %59 = vector.load %arg5[%c0_21, %c0_22, %c0_23] : memref<1x64x8xf32, #tpu.memory_space<vmem>>, vector<1x64x8xf32>
    %60 = vector.shape_cast %59 : vector<1x64x8xf32> to vector<64x8xf32>
    %61 = arith.mulf %60, %58 : vector<64x8xf32>
    %c0_24 = arith.constant 0 : index
    %c0_25 = arith.constant 0 : index
    %c0_26 = arith.constant 0 : index
    %62 = vector.load %arg6[%c0_24, %c0_25, %c0_26] : memref<1x64x8xf32, #tpu.memory_space<vmem>>, vector<1x64x8xf32>
    %63 = vector.shape_cast %62 : vector<1x64x8xf32> to vector<64x8xf32>
    %64 = vector.shape_cast %61 : vector<64x8xf32> to vector<1x64x8xf32>
    tpu.vector_store %arg6[%c0_24, %c0_25, %c0_26], %64 {strides = array<i32>} : memref<1x64x8xf32, #tpu.memory_space<vmem>>, vector<1x64x8xf32>,
    return
  }
  func.func @transform_0(%arg0: i32) -> (i32, i32, i32) {
    %c0_i32 = arith.constant 0 : i32
    %c0_i32_0 = arith.constant 0 : i32
    %c0_i32_1 = arith.constant 0 : i32
    return %arg0, %c0_i32, %c0_i32_0 : i32, i32, i32
  }
  func.func @transform_1(%arg0: i32) -> (i32, i32, i32) {
    %c0_i32 = arith.constant 0 : i32
    %c0_i32_0 = arith.constant 0 : i32
    %c0_i32_1 = arith.constant 0 : i32
    return %arg0, %c0_i32, %c0_i32_0 : i32, i32, i32
  }
  func.func @transform_2(%arg0: i32) -> (i32, i32) {
    %c0_i32 = arith.constant 0 : i32
    %c0_i32_0 = arith.constant 0 : i32
    %c0_i32_1 = arith.constant 0 : i32
    return %c0_i32, %c0_i32_0 : i32, i32
  }
  func.func @transform_3(%arg0: i32) -> (i32, i32) {
    %c0_i32 = arith.constant 0 : i32
    %c0_i32_0 = arith.constant 0 : i32
    %c0_i32_1 = arith.constant 0 : i32
    return %c0_i32, %c0_i32_0 : i32, i32
  }
  func.func @transform_4(%arg0: i32) -> (i32, i32, i32) {
    %c0_i32 = arith.constant 0 : i32
    %c0_i32_0 = arith.constant 0 : i32
    %c0_i32_1 = arith.constant 0 : i32
    return %arg0, %c0_i32, %c0_i32_0 : i32, i32, i32
  }
  func.func @transform_5(%arg0: i32) -> (i32, i32, i32) {
    %c0_i32 = arith.constant 0 : i32
    %c0_i32_0 = arith.constant 0 : i32
    %c0_i32_1 = arith.constant 0 : i32
    return %arg0, %c0_i32, %c0_i32_0 : i32, i32, i32
  }
}

module attributes {stable_mosaic.version = 11 : i64} {
  func.func @_proj_kernel(%arg0: i32, %arg1: memref<4x5x5x8xf32, #tpu.memory_space<vmem>>, %arg2: memref<9x8xf32, #tpu.memory_space<vmem>>, %arg3: memref<2x8xf32, #tpu.memory_space<vmem>>, %arg4: memref<8x64xbf16, #tpu.memory_space<vmem>>, %arg5: memref<1x16x64xf32, #tpu.memory_space<vmem>>, %arg6: memref<16x8xf32, #tpu.memory_space<vmem>>) attributes {dimension_semantics = [#tpu.dimension_semantics<parallel>], iteration_bounds = array<i64: 2>, scalar_prefetch = 0 : i64, scratch_operands = 1 : i64, tpu.core_type = #tpu.core_type<tc>, window_params = [{transform_indices = @transform_0, window_bounds = array<i64: 4, 5, 5, 8>}, {pipeline_mode = #tpu.pipeline_mode<synchronous>, transform_indices = @transform_1, window_bounds = array<i64: 9, 8>}, {pipeline_mode = #tpu.pipeline_mode<synchronous>, transform_indices = @transform_2, window_bounds = array<i64: 2, 8>}, {pipeline_mode = #tpu.pipeline_mode<synchronous>, transform_indices = @transform_3, window_bounds = array<i64: 8, 64>}, {transform_indices = @transform_4, window_bounds = array<i64: 1, 16, 64>}]} {
    %c0 = arith.constant 0 : index
    %c0_0 = arith.constant 0 : index
    %0 = vector.load %arg2[%c0, %c0_0] : memref<9x8xf32, #tpu.memory_space<vmem>>, vector<9x8xf32>
    %c0_1 = arith.constant 0 : index
    %c0_2 = arith.constant 0 : index
    %1 = vector.load %arg3[%c0_1, %c0_2] : memref<2x8xf32, #tpu.memory_space<vmem>>, vector<1x8xf32>
    %2 = vector.shape_cast %1 : vector<1x8xf32> to vector<8xf32>
    %c1 = arith.constant 1 : index
    %c0_3 = arith.constant 0 : index
    %3 = vector.load %arg3[%c1, %c0_3] : memref<2x8xf32, #tpu.memory_space<vmem>>, vector<1x8xf32>
    %4 = vector.shape_cast %3 : vector<1x8xf32> to vector<8xf32>
    %cst = arith.constant 0.000000e+00 : f32
    %5 = vector.broadcast %cst : f32 to vector<4x4x8xf32>
    %c0_4 = arith.constant 0 : index
    %c0_5 = arith.constant 0 : index
    %c0_6 = arith.constant 0 : index
    %c0_7 = arith.constant 0 : index
    %6 = vector.load %arg1[%c0_4, %c0_5, %c0_6, %c0_7] : memref<4x5x5x8xf32, #tpu.memory_space<vmem>>, vector<1x4x4x8xf32>
    %7 = vector.shape_cast %6 : vector<1x4x4x8xf32> to vector<4x4x8xf32>
    %8 = vector.extract_strided_slice %0 {offsets = [0, 0], sizes = [1, 8], strides = [1, 1]} : vector<9x8xf32> to vector<1x8xf32>
    %9 = vector.shape_cast %8 : vector<1x8xf32> to vector<8xf32>
    %10 = vector.shape_cast %9 : vector<8xf32> to vector<1x1x8xf32>
    %11 = vector.broadcast %10 : vector<1x1x8xf32> to vector<4x4x8xf32>
    %12 = arith.mulf %7, %11 : vector<4x4x8xf32>
    %13 = arith.addf %5, %12 : vector<4x4x8xf32>
    %c1_8 = arith.constant 1 : index
    %c0_9 = arith.constant 0 : index
    %c0_10 = arith.constant 0 : index
    %c0_11 = arith.constant 0 : index
    %14 = vector.load %arg1[%c1_8, %c0_9, %c0_10, %c0_11] : memref<4x5x5x8xf32, #tpu.memory_space<vmem>>, vector<1x4x4x8xf32>
    %15 = vector.shape_cast %14 : vector<1x4x4x8xf32> to vector<4x4x8xf32>
    %16 = vector.extract_strided_slice %0 {offsets = [1, 0], sizes = [1, 8], strides = [1, 1]} : vector<9x8xf32> to vector<1x8xf32>
    %17 = vector.shape_cast %16 : vector<1x8xf32> to vector<8xf32>
    %18 = vector.shape_cast %17 : vector<8xf32> to vector<1x1x8xf32>
    %19 = vector.broadcast %18 : vector<1x1x8xf32> to vector<4x4x8xf32>
    %20 = arith.mulf %15, %19 : vector<4x4x8xf32>
    %21 = arith.addf %13, %20 : vector<4x4x8xf32>
    %c0_12 = arith.constant 0 : index
    %c0_13 = arith.constant 0 : index
    %c1_14 = arith.constant 1 : index
    %c0_15 = arith.constant 0 : index
    %22 = vector.load %arg1[%c0_12, %c0_13, %c1_14, %c0_15] : memref<4x5x5x8xf32, #tpu.memory_space<vmem>>, vector<1x4x4x8xf32>
    %23 = vector.shape_cast %22 : vector<1x4x4x8xf32> to vector<4x4x8xf32>
    %24 = vector.extract_strided_slice %0 {offsets = [2, 0], sizes = [1, 8], strides = [1, 1]} : vector<9x8xf32> to vector<1x8xf32>
    %25 = vector.shape_cast %24 : vector<1x8xf32> to vector<8xf32>
    %26 = vector.shape_cast %25 : vector<8xf32> to vector<1x1x8xf32>
    %27 = vector.broadcast %26 : vector<1x1x8xf32> to vector<4x4x8xf32>
    %28 = arith.mulf %23, %27 : vector<4x4x8xf32>
    %29 = arith.addf %21, %28 : vector<4x4x8xf32>
    %c2 = arith.constant 2 : index
    %c0_16 = arith.constant 0 : index
    %c0_17 = arith.constant 0 : index
    %c0_18 = arith.constant 0 : index
    %30 = vector.load %arg1[%c2, %c0_16, %c0_17, %c0_18] : memref<4x5x5x8xf32, #tpu.memory_space<vmem>>, vector<1x4x4x8xf32>
    %31 = vector.shape_cast %30 : vector<1x4x4x8xf32> to vector<4x4x8xf32>
    %32 = vector.extract_strided_slice %0 {offsets = [3, 0], sizes = [1, 8], strides = [1, 1]} : vector<9x8xf32> to vector<1x8xf32>
    %33 = vector.shape_cast %32 : vector<1x8xf32> to vector<8xf32>
    %34 = vector.shape_cast %33 : vector<8xf32> to vector<1x1x8xf32>
    %35 = vector.broadcast %34 : vector<1x1x8xf32> to vector<4x4x8xf32>
    %36 = arith.mulf %31, %35 : vector<4x4x8xf32>
    %37 = arith.addf %29, %36 : vector<4x4x8xf32>
    %c3 = arith.constant 3 : index
    %c0_19 = arith.constant 0 : index
    %c0_20 = arith.constant 0 : index
    %c0_21 = arith.constant 0 : index
    %38 = vector.load %arg1[%c3, %c0_19, %c0_20, %c0_21] : memref<4x5x5x8xf32, #tpu.memory_space<vmem>>, vector<1x4x4x8xf32>
    %39 = vector.shape_cast %38 : vector<1x4x4x8xf32> to vector<4x4x8xf32>
    %40 = vector.extract_strided_slice %0 {offsets = [4, 0], sizes = [1, 8], strides = [1, 1]} : vector<9x8xf32> to vector<1x8xf32>
    %41 = vector.shape_cast %40 : vector<1x8xf32> to vector<8xf32>
    %42 = vector.shape_cast %41 : vector<8xf32> to vector<1x1x8xf32>
    %43 = vector.broadcast %42 : vector<1x1x8xf32> to vector<4x4x8xf32>
    %44 = arith.mulf %39, %43 : vector<4x4x8xf32>
    %45 = arith.addf %37, %44 : vector<4x4x8xf32>
    %c2_22 = arith.constant 2 : index
    %c0_23 = arith.constant 0 : index
    %c1_24 = arith.constant 1 : index
    %c0_25 = arith.constant 0 : index
    %46 = vector.load %arg1[%c2_22, %c0_23, %c1_24, %c0_25] : memref<4x5x5x8xf32, #tpu.memory_space<vmem>>, vector<1x4x4x8xf32>
    %47 = vector.shape_cast %46 : vector<1x4x4x8xf32> to vector<4x4x8xf32>
    %48 = vector.extract_strided_slice %0 {offsets = [5, 0], sizes = [1, 8], strides = [1, 1]} : vector<9x8xf32> to vector<1x8xf32>
    %49 = vector.shape_cast %48 : vector<1x8xf32> to vector<8xf32>
    %50 = vector.shape_cast %49 : vector<8xf32> to vector<1x1x8xf32>
    %51 = vector.broadcast %50 : vector<1x1x8xf32> to vector<4x4x8xf32>
    %52 = arith.mulf %47, %51 : vector<4x4x8xf32>
    %53 = arith.addf %45, %52 : vector<4x4x8xf32>
    %c0_26 = arith.constant 0 : index
    %c1_27 = arith.constant 1 : index
    %c0_28 = arith.constant 0 : index
    %c0_29 = arith.constant 0 : index
    %54 = vector.load %arg1[%c0_26, %c1_27, %c0_28, %c0_29] : memref<4x5x5x8xf32, #tpu.memory_space<vmem>>, vector<1x4x4x8xf32>
    %55 = vector.shape_cast %54 : vector<1x4x4x8xf32> to vector<4x4x8xf32>
    %56 = vector.extract_strided_slice %0 {offsets = [6, 0], sizes = [1, 8], strides = [1, 1]} : vector<9x8xf32> to vector<1x8xf32>
    %57 = vector.shape_cast %56 : vector<1x8xf32> to vector<8xf32>
    %58 = vector.shape_cast %57 : vector<8xf32> to vector<1x1x8xf32>
    %59 = vector.broadcast %58 : vector<1x1x8xf32> to vector<4x4x8xf32>
    %60 = arith.mulf %55, %59 : vector<4x4x8xf32>
    %61 = arith.addf %53, %60 : vector<4x4x8xf32>
    %c1_30 = arith.constant 1 : index
    %c1_31 = arith.constant 1 : index
    %c0_32 = arith.constant 0 : index
    %c0_33 = arith.constant 0 : index
    %62 = vector.load %arg1[%c1_30, %c1_31, %c0_32, %c0_33] : memref<4x5x5x8xf32, #tpu.memory_space<vmem>>, vector<1x4x4x8xf32>
    %63 = vector.shape_cast %62 : vector<1x4x4x8xf32> to vector<4x4x8xf32>
    %64 = vector.extract_strided_slice %0 {offsets = [7, 0], sizes = [1, 8], strides = [1, 1]} : vector<9x8xf32> to vector<1x8xf32>
    %65 = vector.shape_cast %64 : vector<1x8xf32> to vector<8xf32>
    %66 = vector.shape_cast %65 : vector<8xf32> to vector<1x1x8xf32>
    %67 = vector.broadcast %66 : vector<1x1x8xf32> to vector<4x4x8xf32>
    %68 = arith.mulf %63, %67 : vector<4x4x8xf32>
    %69 = arith.addf %61, %68 : vector<4x4x8xf32>
    %c0_34 = arith.constant 0 : index
    %c1_35 = arith.constant 1 : index
    %c1_36 = arith.constant 1 : index
    %c0_37 = arith.constant 0 : index
    %70 = vector.load %arg1[%c0_34, %c1_35, %c1_36, %c0_37] : memref<4x5x5x8xf32, #tpu.memory_space<vmem>>, vector<1x4x4x8xf32>
    %71 = vector.shape_cast %70 : vector<1x4x4x8xf32> to vector<4x4x8xf32>
    %72 = vector.extract_strided_slice %0 {offsets = [8, 0], sizes = [1, 8], strides = [1, 1]} : vector<9x8xf32> to vector<1x8xf32>
    %73 = vector.shape_cast %72 : vector<1x8xf32> to vector<8xf32>
    %74 = vector.shape_cast %73 : vector<8xf32> to vector<1x1x8xf32>
    %75 = vector.broadcast %74 : vector<1x1x8xf32> to vector<4x4x8xf32>
    %76 = arith.mulf %71, %75 : vector<4x4x8xf32>
    %77 = arith.addf %69, %76 : vector<4x4x8xf32>
    %78 = vector.shape_cast %2 : vector<8xf32> to vector<1x1x8xf32>
    %79 = vector.broadcast %78 : vector<1x1x8xf32> to vector<4x4x8xf32>
    %80 = arith.mulf %77, %79 : vector<4x4x8xf32>
    %81 = vector.shape_cast %4 : vector<8xf32> to vector<1x1x8xf32>
    %82 = vector.broadcast %81 : vector<1x1x8xf32> to vector<4x4x8xf32>
    %83 = arith.addf %80, %82 : vector<4x4x8xf32>
    %84 = vector.extract_strided_slice %83 {offsets = [0, 0, 0], sizes = [1, 4, 8], strides = [1, 1, 1]} : vector<4x4x8xf32> to vector<1x4x8xf32>
    %85 = vector.shape_cast %84 : vector<1x4x8xf32> to vector<4x8xf32>
    %c0_38 = arith.constant 0 : index
    %c0_39 = arith.constant 0 : index
    %86 = vector.load %arg6[%c0_38, %c0_39] : memref<16x8xf32, #tpu.memory_space<vmem>>, vector<4x8xf32>
    tpu.vector_store %arg6[%c0_38, %c0_39], %85 {strides = array<i32>} : memref<16x8xf32, #tpu.memory_space<vmem>>, vector<4x8xf32>,
    %87 = vector.extract_strided_slice %83 {offsets = [1, 0, 0], sizes = [1, 4, 8], strides = [1, 1, 1]} : vector<4x4x8xf32> to vector<1x4x8xf32>
    %88 = vector.shape_cast %87 : vector<1x4x8xf32> to vector<4x8xf32>
    %c4 = arith.constant 4 : index
    %c0_40 = arith.constant 0 : index
    %89 = vector.load %arg6[%c4, %c0_40] : memref<16x8xf32, #tpu.memory_space<vmem>>, vector<4x8xf32>
    tpu.vector_store %arg6[%c4, %c0_40], %88 {strides = array<i32>} : memref<16x8xf32, #tpu.memory_space<vmem>>, vector<4x8xf32>,
    %90 = vector.extract_strided_slice %83 {offsets = [2, 0, 0], sizes = [1, 4, 8], strides = [1, 1, 1]} : vector<4x4x8xf32> to vector<1x4x8xf32>
    %91 = vector.shape_cast %90 : vector<1x4x8xf32> to vector<4x8xf32>
    %c8 = arith.constant 8 : index
    %c0_41 = arith.constant 0 : index
    %92 = vector.load %arg6[%c8, %c0_41] : memref<16x8xf32, #tpu.memory_space<vmem>>, vector<4x8xf32>
    tpu.vector_store %arg6[%c8, %c0_41], %91 {strides = array<i32>} : memref<16x8xf32, #tpu.memory_space<vmem>>, vector<4x8xf32>,
    %93 = vector.extract_strided_slice %83 {offsets = [3, 0, 0], sizes = [1, 4, 8], strides = [1, 1, 1]} : vector<4x4x8xf32> to vector<1x4x8xf32>
    %94 = vector.shape_cast %93 : vector<1x4x8xf32> to vector<4x8xf32>
    %c12 = arith.constant 12 : index
    %c0_42 = arith.constant 0 : index
    %95 = vector.load %arg6[%c12, %c0_42] : memref<16x8xf32, #tpu.memory_space<vmem>>, vector<4x8xf32>
    tpu.vector_store %arg6[%c12, %c0_42], %94 {strides = array<i32>} : memref<16x8xf32, #tpu.memory_space<vmem>>, vector<4x8xf32>,
    %c0_43 = arith.constant 0 : index
    %c0_44 = arith.constant 0 : index
    %96 = vector.load %arg6[%c0_43, %c0_44] : memref<16x8xf32, #tpu.memory_space<vmem>>, vector<16x8xf32>
    %97 = arith.truncf %96 : vector<16x8xf32> to vector<16x8xbf16>
    %c0_45 = arith.constant 0 : index
    %c0_46 = arith.constant 0 : index
    %98 = vector.load %arg4[%c0_45, %c0_46] : memref<8x64xbf16, #tpu.memory_space<vmem>>, vector<8x64xbf16>
    %cst_47 = arith.constant dense<0.000000e+00> : vector<16x64xf32>
    %99 = tpu.matmul %97, %98, %cst_47 {dimension_numbers = #tpu.dot_dimension_numbers<[1], [0], [0], [1], [0, 0, 1, 1], [], []>} : vector<16x8xbf16>, vector<8x64xbf16>, vector<16x64xf32> -> vector<16x64xf32>
    %c0_48 = arith.constant 0 : index
    %c0_49 = arith.constant 0 : index
    %c0_50 = arith.constant 0 : index
    %100 = vector.load %arg5[%c0_48, %c0_49, %c0_50] : memref<1x16x64xf32, #tpu.memory_space<vmem>>, vector<1x16x64xf32>
    %101 = vector.shape_cast %100 : vector<1x16x64xf32> to vector<16x64xf32>
    %102 = vector.shape_cast %99 : vector<16x64xf32> to vector<1x16x64xf32>
    tpu.vector_store %arg5[%c0_48, %c0_49, %c0_50], %102 {strides = array<i32>} : memref<1x16x64xf32, #tpu.memory_space<vmem>>, vector<1x16x64xf32>,
    return
  }
  func.func @transform_0(%arg0: i32) -> (i32, i32, i32, i32) {
    %c0_i32 = arith.constant 0 : i32
    %c0_i32_0 = arith.constant 0 : i32
    %c0_i32_1 = arith.constant 0 : i32
    %c0_i32_2 = arith.constant 0 : i32
    return %arg0, %c0_i32, %c0_i32_0, %c0_i32_1 : i32, i32, i32, i32
  }
  func.func @transform_1(%arg0: i32) -> (i32, i32) {
    %c0_i32 = arith.constant 0 : i32
    %c0_i32_0 = arith.constant 0 : i32
    %c0_i32_1 = arith.constant 0 : i32
    return %c0_i32, %c0_i32_0 : i32, i32
  }
  func.func @transform_2(%arg0: i32) -> (i32, i32) {
    %c0_i32 = arith.constant 0 : i32
    %c0_i32_0 = arith.constant 0 : i32
    %c0_i32_1 = arith.constant 0 : i32
    return %c0_i32, %c0_i32_0 : i32, i32
  }
  func.func @transform_3(%arg0: i32) -> (i32, i32) {
    %c0_i32 = arith.constant 0 : i32
    %c0_i32_0 = arith.constant 0 : i32
    %c0_i32_1 = arith.constant 0 : i32
    return %c0_i32, %c0_i32_0 : i32, i32
  }
  func.func @transform_4(%arg0: i32) -> (i32, i32, i32) {
    %c0_i32 = arith.constant 0 : i32
    %c0_i32_0 = arith.constant 0 : i32
    %c0_i32_1 = arith.constant 0 : i32
    return %arg0, %c0_i32, %c0_i32_0 : i32, i32, i32
  }
}

module attributes {stable_mosaic.version = 11 : i64} {
  func.func @_ffn_kernel(%arg0: i32, %arg1: memref<64x8xf32, #tpu.memory_space<vmem>>, %arg2: memref<2x8xf32, #tpu.memory_space<vmem>>, %arg3: memref<8x32xbf16, #tpu.memory_space<vmem>>, %arg4: memref<1x32xf32, #tpu.memory_space<vmem>>, %arg5: memref<32x8xbf16, #tpu.memory_space<vmem>>, %arg6: memref<1x8xf32, #tpu.memory_space<vmem>>, %arg7: memref<64x8xf32, #tpu.memory_space<vmem>>) attributes {dimension_semantics = [#tpu.dimension_semantics<parallel>], iteration_bounds = array<i64: 2>, scalar_prefetch = 0 : i64, scratch_operands = 0 : i64, tpu.core_type = #tpu.core_type<tc>, window_params = [{transform_indices = @transform_0, window_bounds = array<i64: 64, 8>}, {pipeline_mode = #tpu.pipeline_mode<synchronous>, transform_indices = @transform_1, window_bounds = array<i64: 2, 8>}, {pipeline_mode = #tpu.pipeline_mode<synchronous>, transform_indices = @transform_2, window_bounds = array<i64: 8, 32>}, {pipeline_mode = #tpu.pipeline_mode<synchronous>, transform_indices = @transform_3, window_bounds = array<i64: 1, 32>}, {pipeline_mode = #tpu.pipeline_mode<synchronous>, transform_indices = @transform_4, window_bounds = array<i64: 32, 8>}, {pipeline_mode = #tpu.pipeline_mode<synchronous>, transform_indices = @transform_5, window_bounds = array<i64: 1, 8>}, {transform_indices = @transform_6, window_bounds = array<i64: 64, 8>}]} {
    %c0 = arith.constant 0 : index
    %c0_0 = arith.constant 0 : index
    %0 = vector.load %arg1[%c0, %c0_0] : memref<64x8xf32, #tpu.memory_space<vmem>>, vector<64x8xf32>
    %c0_1 = arith.constant 0 : index
    %c0_2 = arith.constant 0 : index
    %1 = vector.load %arg2[%c0_1, %c0_2] : memref<2x8xf32, #tpu.memory_space<vmem>>, vector<1x8xf32>
    %2 = vector.shape_cast %1 : vector<1x8xf32> to vector<8xf32>
    %c1 = arith.constant 1 : index
    %c0_3 = arith.constant 0 : index
    %3 = vector.load %arg2[%c1, %c0_3] : memref<2x8xf32, #tpu.memory_space<vmem>>, vector<1x8xf32>
    %4 = vector.shape_cast %3 : vector<1x8xf32> to vector<8xf32>
    %cst = arith.constant dense<0.000000e+00> : vector<64xf32>
    %5 = vector.multi_reduction <add>, %0, %cst [1] : vector<64x8xf32> to vector<64xf32>
    %6 = vector.shape_cast %5 : vector<64xf32> to vector<64x1xf32>
    %cst_4 = arith.constant 8.000000e+00 : f32
    %7 = vector.broadcast %cst_4 : f32 to vector<64x1xf32>
    %8 = arith.divf %6, %7 : vector<64x1xf32>
    %9 = vector.broadcast %8 : vector<64x1xf32> to vector<64x8xf32>
    %10 = arith.subf %0, %9 : vector<64x8xf32>
    %11 = arith.mulf %10, %10 : vector<64x8xf32>
    %cst_5 = arith.constant dense<0.000000e+00> : vector<64xf32>
    %12 = vector.multi_reduction <add>, %11, %cst_5 [1] : vector<64x8xf32> to vector<64xf32>
    %13 = vector.shape_cast %12 : vector<64xf32> to vector<64x1xf32>
    %cst_6 = arith.constant 8.000000e+00 : f32
    %14 = vector.broadcast %cst_6 : f32 to vector<64x1xf32>
    %15 = arith.divf %13, %14 : vector<64x1xf32>
    %16 = vector.broadcast %8 : vector<64x1xf32> to vector<64x8xf32>
    %17 = arith.subf %0, %16 : vector<64x8xf32>
    %18 = math.sqrt %15 : vector<64x1xf32>
    %cst_7 = arith.constant 9.99999974E-6 : f32
    %19 = vector.broadcast %cst_7 : f32 to vector<64x1xf32>
    %20 = arith.addf %18, %19 : vector<64x1xf32>
    %21 = vector.broadcast %20 : vector<64x1xf32> to vector<64x8xf32>
    %22 = arith.divf %17, %21 : vector<64x8xf32>
    %23 = vector.shape_cast %2 : vector<8xf32> to vector<1x8xf32>
    %24 = vector.broadcast %23 : vector<1x8xf32> to vector<64x8xf32>
    %25 = arith.mulf %22, %24 : vector<64x8xf32>
    %26 = vector.shape_cast %4 : vector<8xf32> to vector<1x8xf32>
    %27 = vector.broadcast %26 : vector<1x8xf32> to vector<64x8xf32>
    %28 = arith.addf %25, %27 : vector<64x8xf32>
    %29 = arith.truncf %28 : vector<64x8xf32> to vector<64x8xbf16>
    %c0_8 = arith.constant 0 : index
    %c0_9 = arith.constant 0 : index
    %30 = vector.load %arg3[%c0_8, %c0_9] : memref<8x32xbf16, #tpu.memory_space<vmem>>, vector<8x32xbf16>
    %cst_10 = arith.constant dense<0.000000e+00> : vector<64x32xf32>
    %31 = tpu.matmul %29, %30, %cst_10 {dimension_numbers = #tpu.dot_dimension_numbers<[1], [0], [0], [1], [0, 0, 1, 1], [], []>} : vector<64x8xbf16>, vector<8x32xbf16>, vector<64x32xf32> -> vector<64x32xf32>
    %c0_11 = arith.constant 0 : index
    %c0_12 = arith.constant 0 : index
    %32 = vector.load %arg4[%c0_11, %c0_12] : memref<1x32xf32, #tpu.memory_space<vmem>>, vector<1x32xf32>
    %33 = vector.broadcast %32 : vector<1x32xf32> to vector<64x32xf32>
    %34 = arith.addf %31, %33 : vector<64x32xf32>
    %35 = arith.mulf %34, %34 : vector<64x32xf32>
    %36 = arith.mulf %34, %35 : vector<64x32xf32>
    %cst_13 = arith.constant 4.471500e-02 : f32
    %37 = vector.broadcast %cst_13 : f32 to vector<64x32xf32>
    %38 = arith.mulf %37, %36 : vector<64x32xf32>
    %39 = arith.addf %34, %38 : vector<64x32xf32>
    %cst_14 = arith.constant 0.797884583 : f32
    %40 = vector.broadcast %cst_14 : f32 to vector<64x32xf32>
    %41 = arith.mulf %40, %39 : vector<64x32xf32>
    %42 = math.tanh %41 : vector<64x32xf32>
    %cst_15 = arith.constant 1.000000e+00 : f32
    %43 = vector.broadcast %cst_15 : f32 to vector<64x32xf32>
    %44 = arith.addf %43, %42 : vector<64x32xf32>
    %cst_16 = arith.constant 5.000000e-01 : f32
    %45 = vector.broadcast %cst_16 : f32 to vector<64x32xf32>
    %46 = arith.mulf %45, %44 : vector<64x32xf32>
    %47 = arith.mulf %34, %46 : vector<64x32xf32>
    %48 = arith.truncf %47 : vector<64x32xf32> to vector<64x32xbf16>
    %c0_17 = arith.constant 0 : index
    %c0_18 = arith.constant 0 : index
    %49 = vector.load %arg5[%c0_17, %c0_18] : memref<32x8xbf16, #tpu.memory_space<vmem>>, vector<32x8xbf16>
    %cst_19 = arith.constant dense<0.000000e+00> : vector<64x8xf32>
    %50 = tpu.matmul %48, %49, %cst_19 {dimension_numbers = #tpu.dot_dimension_numbers<[1], [0], [0], [1], [0, 0, 1, 1], [], []>} : vector<64x32xbf16>, vector<32x8xbf16>, vector<64x8xf32> -> vector<64x8xf32>
    %c0_20 = arith.constant 0 : index
    %c0_21 = arith.constant 0 : index
    %51 = vector.load %arg6[%c0_20, %c0_21] : memref<1x8xf32, #tpu.memory_space<vmem>>, vector<1x8xf32>
    %52 = vector.broadcast %51 : vector<1x8xf32> to vector<64x8xf32>
    %53 = arith.addf %50, %52 : vector<64x8xf32>
    %54 = arith.addf %0, %53 : vector<64x8xf32>
    %c0_22 = arith.constant 0 : index
    %c0_23 = arith.constant 0 : index
    %55 = vector.load %arg7[%c0_22, %c0_23] : memref<64x8xf32, #tpu.memory_space<vmem>>, vector<64x8xf32>
    tpu.vector_store %arg7[%c0_22, %c0_23], %54 {strides = array<i32>} : memref<64x8xf32, #tpu.memory_space<vmem>>, vector<64x8xf32>,
    return
  }
  func.func @transform_0(%arg0: i32) -> (i32, i32) {
    %c0_i32 = arith.constant 0 : i32
    %c0_i32_0 = arith.constant 0 : i32
    return %arg0, %c0_i32 : i32, i32
  }
  func.func @transform_1(%arg0: i32) -> (i32, i32) {
    %c0_i32 = arith.constant 0 : i32
    %c0_i32_0 = arith.constant 0 : i32
    %c0_i32_1 = arith.constant 0 : i32
    return %c0_i32, %c0_i32_0 : i32, i32
  }
  func.func @transform_2(%arg0: i32) -> (i32, i32) {
    %c0_i32 = arith.constant 0 : i32
    %c0_i32_0 = arith.constant 0 : i32
    %c0_i32_1 = arith.constant 0 : i32
    return %c0_i32, %c0_i32_0 : i32, i32
  }
  func.func @transform_3(%arg0: i32) -> (i32, i32) {
    %c0_i32 = arith.constant 0 : i32
    %c0_i32_0 = arith.constant 0 : i32
    %c0_i32_1 = arith.constant 0 : i32
    return %c0_i32, %c0_i32_0 : i32, i32
  }
  func.func @transform_4(%arg0: i32) -> (i32, i32) {
    %c0_i32 = arith.constant 0 : i32
    %c0_i32_0 = arith.constant 0 : i32
    %c0_i32_1 = arith.constant 0 : i32
    return %c0_i32, %c0_i32_0 : i32, i32
  }
  func.func @transform_5(%arg0: i32) -> (i32, i32) {
    %c0_i32 = arith.constant 0 : i32
    %c0_i32_0 = arith.constant 0 : i32
    %c0_i32_1 = arith.constant 0 : i32
    return %c0_i32, %c0_i32_0 : i32, i32
  }
  func.func @transform_6(%arg0: i32) -> (i32, i32) {
    %c0_i32 = arith.constant 0 : i32
    %c0_i32_0 = arith.constant 0 : i32
    return %arg0, %c0_i32 : i32, i32
  }
}

</mosaic_0001>

<bundles_post_ra>
// kernel: conv_cross_transformer.21
= control target key start
LH: loop header
LB: loop body
LE: loop exit
PB: predicated region body
PF: predicated region fallthrough
CT: control target
= control target key end

     0   :  { %s519_s12 = smov 0   ;;  %s647_s0 = inlined_call_operand.vmem [shape: f32[128,8], index: 0, kind: input, shape index: {}]   ;;  %s648_s1 = inlined_call_operand.vmem [shape: f32[1,8], index: 1, kind: input, shape index: {}]   ;;  %s649_s2 = inlined_call_operand.vmem [shape: f32[1,8], index: 2, kind: input, shape index: {}]   ;;  %s650_s3 = inlined_call_operand.vmem [shape: f32[128,8], index: 3, kind: output, shape index: {}]  }
   0x1 LB: > { %s438_s13 = sadd.s32 4294967295, %s497_s12   ;;  %p442_p0 = scmp.ge.s32.totalorder %s497_s12, 1  ;;  %s497_s12 = sphi %s519_s12, %s13_s12  }
   0x2   : > { %p138_p1 = scmp.lt.s32.totalorder %s497_s12, 3 }
   0x4   : > { %p139_p2 = pnand %p442_p0, %p138_p1 }
   0x5   : > { %s443_s14 = sshll.u32 (!%p139_p2), %s438_s13, 3  ;;  %vm184_vm0 = vcmask (!%p139_p2), 64512  }
   0x6   : > { %142 = sbr.rel (%p139_p2) target bundleno = 362 (0x16a), region = 32  ;;  %p163_p3 = scmp.lt.s32.totalorder (!%p139_p2), %s443_s14, 15 }
   0xd   : > { %s652_s14 = smov (!%p163_p3, %s443_s14), 15 }
   0xe   : > { %s444_s15 = sshll.u32 %s652_s14, 3 }
   0xf   : > { %s166_s18 = scalar_lea.vmem %s647_s0, %s444_s15  ;;  %s619_s25 = scalar_lea.vmem %s650_s3, %s444_s15 }
  0x10   : > { %v174_v0 = vld [vmem:[%s166_s18] sm:$0xff]  ;;  %v176_v1 = vld [vmem:[%s166_s18 + $0x10] sm:$0xff]  ;;  %v175_v2 = vld [vmem:[%s166_s18 + $0x8] sm:$0xff] }
  0x11   : > { %v185_v3 = vsel %vm184_vm0, %v174_v0, 0.0  ;;  %v191_v4 = vsel %vm184_vm0, %v176_v1, 0.0  ;;  %v177_v5 = vld [vmem:[%s166_s18 + $0x18] sm:$0xff]  ;;  %v188_v6 = vsel %vm184_vm0, %v175_v2, 0.0  ;;  %v178_v8 = vld [vmem:[%s166_s18 + $0x20] sm:$0xff]  ;;  %v179_v9 = vld [vmem:[%s166_s18 + $0x28] sm:$0xff] }
  0x12   : > { %186 = vadd.xlane.f32.xlu0 %v185_v3  ;;  %192 = vadd.xlane.f32.xlu1 %v191_v4  ;;  %v194_v7 = vsel %vm184_vm0, %v177_v5, 0.0  ;;  %v197_v10 = vsel %vm184_vm0, %v178_v8, 0.0  ;;  %v200_v11 = vsel %vm184_vm0, %v179_v9, 0.0  ;;  %v180_v12 = vld [vmem:[%s166_s18 + $0x30] sm:$0xff]  ;;  %v181_v13 = vld [vmem:[%s166_s18 + $0x38] sm:$0xff] }
  0x13   : > { %v203_v14 = vsel %vm184_vm0, %v180_v12, 0.0  ;;  %v206_v15 = vsel %vm184_vm0, %v181_v13, 0.0 }
  0x16   : > { %189 = vadd.xlane.f32.xlu0 %v188_v6  ;;  %195 = vadd.xlane.f32.xlu1 %v194_v7 }
  0x1a   : > { %198 = vadd.xlane.f32.xlu0 %v197_v10  ;;  %201 = vadd.xlane.f32.xlu1 %v200_v11 }
  0x1e   : > { %204 = vadd.xlane.f32.xlu0 %v203_v14  ;;  %207 = vadd.xlane.f32.xlu1 %v206_v15 }
  0x9f   : > { %v187_v16 = vpop.xlane.xlu0 %186  ;;  %v193_v17 = vpop.xlane.xlu1 %192 }
  0xa0   : > { %v210_v18 = vmul.f32 0.125, %v187_v16  ;;  %v212_v19 = vmul.f32 0.125, %v193_v17 }
  0xa2   : > { %v543_v20 = vsub.f32 %v174_v0, %v210_v18  ;;  %v545_v21 = vsub.f32 %v176_v1, %v212_v19 }
  0xa3   : > { %v190_v22 = vpop.xlane.xlu0 %189  ;;  %v196_v23 = vpop.xlane.xlu1 %195 }
  0xa4   : > { %v211_v24 = vmul.f32 0.125, %v190_v22  ;;  %v213_v25 = vmul.f32 0.125, %v196_v23  ;;  %v226_v26 = vmul.f32 %v543_v20, %v543_v20  ;;  %v228_v27 = vmul.f32 %v545_v21, %v545_v21 }
  0xa6   : > { %v551_v28 = vsub.f32 %v175_v2, %v211_v24  ;;  %v553_v29 = vsub.f32 %v177_v5, %v213_v25  ;;  %v234_v30 = vsel %vm184_vm0, %v226_v26, 0.0  ;;  %v240_v33 = vsel %vm184_vm0, %v228_v27, 0.0 }
  0xa7   : > { %235 = vadd.xlane.f32.xlu0 %v234_v30  ;;  %v199_v31 = vpop.xlane.xlu0 %198  ;;  %v202_v32 = vpop.xlane.xlu1 %201 }
  0xa8   : > { %v214_v34 = vmul.f32 0.125, %v199_v31  ;;  %v215_v35 = vmul.f32 0.125, %v202_v32  ;;  %v227_v36 = vmul.f32 %v551_v28, %v551_v28  ;;  %v229_v37 = vmul.f32 %v553_v29, %v553_v29 }
  0xaa   : > { %v561_v38 = vsub.f32 %v178_v8, %v214_v34  ;;  %v563_v39 = vsub.f32 %v179_v9, %v215_v35  ;;  %v237_v40 = vsel %vm184_vm0, %v227_v36, 0.0  ;;  %v243_v43 = vsel %vm184_vm0, %v229_v37, 0.0 }
  0xab   : > { %241 = vadd.xlane.f32.xlu0 %v240_v33  ;;  %238 = vadd.xlane.f32.xlu1 %v237_v40  ;;  %v205_v41 = vpop.xlane.xlu0 %204  ;;  %v208_v42 = vpop.xlane.xlu1 %207 }
  0xac   : > { %v216_v44 = vmul.f32 0.125, %v205_v41  ;;  %v217_v45 = vmul.f32 0.125, %v208_v42  ;;  %v230_v46 = vmul.f32 %v561_v38, %v561_v38  ;;  %v231_v47 = vmul.f32 %v563_v39, %v563_v39 }
  0xae   : > { %v571_v48 = vsub.f32 %v180_v12, %v216_v44  ;;  %v573_v49 = vsub.f32 %v181_v13, %v217_v45  ;;  %v246_v50 = vsel %vm184_vm0, %v230_v46, 0.0  ;;  %v249_v51 = vsel %vm184_vm0, %v231_v47, 0.0 }
  0xaf   : > { %244 = vadd.xlane.f32.xlu1 %v243_v43  ;;  %247 = vadd.xlane.f32.xlu0 %v246_v50 }
  0xb0   : > { %v232_v52 = vmul.f32 %v571_v48, %v571_v48  ;;  %v233_v53 = vmul.f32 %v573_v49, %v573_v49 }
  0xb2   : > { %v252_v54 = vsel %vm184_vm0, %v232_v52, 0.0  ;;  %v255_v55 = vsel %vm184_vm0, %v233_v53, 0.0 }
  0xb3   : > { %250 = vadd.xlane.f32.xlu1 %v249_v51  ;;  %253 = vadd.xlane.f32.xlu0 %v252_v54 }
  0xb7   : > { %256 = vadd.xlane.f32.xlu1 %v255_v55 }
 0x134   : > { %v236_v56 = vpop.xlane.xlu0 %235 }
 0x135   : > { %v258_v57 = vmul.f32 0.125, %v236_v56 }
 0x137   : > { %459 = vrsqrt.f32 %v258_v57  ;;  %vm268_vm1 = vcmp.eq.f32.partialorder %v258_v57, inf  ;;  %v271_v8 = vand.u32 2147483648, %v258_v57  ;;  %vm270_vm2 = vcmp.eq.f32.partialorder %v258_v57, 0.0 }
 0x138   : > { %v239_v58 = vpop.xlane.xlu1 %238  ;;  %v242_v59 = vpop.xlane.xlu0 %241 }
 0x139   : > { %v259_v60 = vmul.f32 0.125, %v239_v58  ;;  %v260_v61 = vmul.f32 0.125, %v242_v59 }
 0x13b   : > { %461 = vrsqrt.f32 %v259_v60  ;;  %vm275_vm3 = vcmp.eq.f32.partialorder %v259_v60, inf  ;;  %vm277_vm4 = vcmp.eq.f32.partialorder %v259_v60, 0.0  ;;  %v278_v17 = vand.u32 2147483648, %v259_v60 }
 0x13c   : > { %463 = vrsqrt.f32 %v260_v61  ;;  %v245_v62 = vpop.xlane.xlu1 %244  ;;  %v248_v63 = vpop.xlane.xlu0 %247  ;;  %vm282_vm5 = vcmp.eq.f32.partialorder %v260_v61, inf  ;;  %v285_v22 = vand.u32 2147483648, %v260_v61  ;;  %vm284_vm6 = vcmp.eq.f32.partialorder %v260_v61, 0.0 }
 0x13d   : > { %v261_v0 = vmul.f32 0.125, %v245_v62  ;;  %v262_v1 = vmul.f32 0.125, %v248_v63 }
 0x13f   : > { %465 = vrsqrt.f32 %v261_v0  ;;  %vm289_vm7 = vcmp.eq.f32.partialorder %v261_v0, inf  ;;  %vm291_vm8 = vcmp.eq.f32.partialorder %v261_v0, 0.0  ;;  %v292_v33 = vand.u32 2147483648, %v261_v0 }
 0x140   : > { %467 = vrsqrt.f32 %v262_v1  ;;  %v251_v2 = vpop.xlane.xlu1 %250  ;;  %v254_v3 = vpop.xlane.xlu0 %253  ;;  %vm296_vm9 = vcmp.eq.f32.partialorder %v262_v1, inf  ;;  %v299_v36 = vand.u32 2147483648, %v262_v1  ;;  %vm298_vm10 = vcmp.eq.f32.partialorder %v262_v1, 0.0 }
 0x141   : > { %v460_v4 = vpop.eup %459  ;;  %v583_v5 = vmul.f32 0.125, %v251_v2  ;;  %v585_v6 = vmul.f32 0.125, %v254_v3 }
 0x142   : > { %v267_v7 = vmul.f32 %v460_v4, %v258_v57 }
 0x143   : > { %469 = vrsqrt.f32 %v583_v5  ;;  %vm303_vm11 = vcmp.eq.f32.partialorder %v583_v5, inf  ;;  %vm305_vm12 = vcmp.eq.f32.partialorder %v583_v5, 0.0  ;;  %v306_v47 = vand.u32 2147483648, %v583_v5 }
 0x144   : > { %v269_v9 = vsel %vm268_vm1, %v258_v57, %v267_v7  ;;  %471 = vrsqrt.f32 %v585_v6  ;;  %v257_v10 = vpop.xlane.xlu1 %256  ;;  %vm310_vm13 = vcmp.eq.f32.partialorder %v585_v6, inf  ;;  %v313_v52 = vand.u32 2147483648, %v585_v6  ;;  %v447_v57 = vld [vmem:[%s648_s1] ss:$0 sm:$0xff] }
 0x145   : > { %v462_v11 = vpop.eup %461  ;;  %v272_v12 = vsel %vm270_vm2, %v271_v8, %v269_v9  ;;  %v589_v13 = vmul.f32 0.125, %v257_v10  ;;  %vm312_vm14 = vcmp.eq.f32.partialorder %v585_v6, 0.0 }
 0x146   : > { %v464_v14 = vpop.eup %463  ;;  %v322_v15 = vadd.f32 1e-05, %v272_v12  ;;  %v274_v16 = vmul.f32 %v462_v11, %v259_v60 }
 0x147   : > { %v281_v18 = vmul.f32 %v464_v14, %v260_v61  ;;  %473 = vrsqrt.f32 %v589_v13  ;;  %vm317_vm15 = vcmp.eq.f32.partialorder %v589_v13, inf  ;;  %v320_v63 = vand.u32 2147483648, %v589_v13 }
 0x148   : > { %475 = vrcp.f32 %v322_v15  ;;  %v276_v19 = vsel %vm275_vm3, %v259_v60, %v274_v16  ;;  %vm319_vm1 = vcmp.eq.f32.partialorder %v589_v13, 0.0 }
 0x149   : > { %v466_v23 = vpop.eup %465  ;;  %v279_v24 = vsel %vm277_vm4, %v278_v17, %v276_v19  ;;  %v283_v25 = vsel %vm282_vm5, %v260_v61, %v281_v18 }
 0x14a   : > { %v468_v26 = vpop.eup %467  ;;  %v323_v27 = vadd.f32 1e-05, %v279_v24  ;;  %v286_v30 = vsel %vm284_vm6, %v285_v22, %v283_v25  ;;  %v288_v31 = vmul.f32 %v466_v23, %v261_v0 }
 0x14b   : > { %v324_v32 = vadd.f32 1e-05, %v286_v30  ;;  %v295_v34 = vmul.f32 %v468_v26, %v262_v1 }
 0x14c   : > { %477 = vrcp.f32 %v323_v27  ;;  %v290_v35 = vsel %vm289_vm7, %v261_v0, %v288_v31  ;;  %v448_v0 = vld [vmem:[%s649_s2] ss:$0 sm:$0xff] }
 0x14d   : > { %v470_v37 = vpop.eup %469  ;;  %479 = vrcp.f32 %v324_v32  ;;  %v293_v40 = vsel %vm291_vm8, %v292_v33, %v290_v35  ;;  %v297_v41 = vsel %vm296_vm9, %v262_v1, %v295_v34 }
 0x14e   : > { %v472_v42 = vpop.eup %471  ;;  %v325_v43 = vadd.f32 1e-05, %v293_v40  ;;  %v300_v44 = vsel %vm298_vm10, %v299_v36, %v297_v41  ;;  %v302_v45 = vmul.f32 %v470_v37, %v583_v5 }
 0x14f   : > { %v326_v46 = vadd.f32 1e-05, %v300_v44  ;;  %v309_v50 = vmul.f32 %v472_v42, %v585_v6 }
 0x150   : > { %481 = vrcp.f32 %v325_v43  ;;  %v304_v51 = vsel %vm303_vm11, %v583_v5, %v302_v45 }
 0x151   : > { %v474_v53 = vpop.eup %473  ;;  %483 = vrcp.f32 %v326_v46  ;;  %v307_v54 = vsel %vm305_vm12, %v306_v47, %v304_v51  ;;  %v311_v55 = vsel %vm310_vm13, %v585_v6, %v309_v50 }
 0x152   : > { %v476_v56 = vpop.eup %475  ;;  %v327_v58 = vadd.f32 1e-05, %v307_v54  ;;  %v314_v59 = vsel %vm312_vm14, %v313_v52, %v311_v55  ;;  %v316_v60 = vmul.f32 %v474_v53, %v589_v13 }
 0x153   : > { %v331_v61 = vmul.f32 %v476_v56, %v543_v20  ;;  %v328_v62 = vadd.f32 1e-05, %v314_v59 }
 0x154   : > { %485 = vrcp.f32 %v327_v58  ;;  %v318_v1 = vsel %vm317_vm15, %v589_v13, %v316_v60 }
 0x155   : > { %v352_v2 = vmul.f32 %v447_v57, %v331_v61  ;;  %487 = vrcp.f32 %v328_v62  ;;  %v321_v3 = vsel %vm319_vm1, %v320_v63, %v318_v1 }
 0x156   : > { %v478_v4 = vpop.eup %477  ;;  %v329_v20 = vadd.f32 1e-05, %v321_v3 }
 0x157   : > { %v480_v5 = vpop.eup %479  ;;  %v366_v6 = vadd.f32 %v448_v0, %v352_v2  ;;  %v333_v7 = vmul.f32 %v478_v4, %v551_v28 }
 0x158   : > { %v335_v8 = vmul.f32 %v480_v5, %v545_v21  ;;  %489 = vrcp.f32 %v329_v20 }
 0x159   : > { %374 = vst.msk [vmem:[%s619_s25] sm:$0xff] %vm184_vm0, %v366_v6  ;;  %v353_v9 = vmul.f32 %v447_v57, %v333_v7 }
 0x15a   : > { %v482_v10 = vpop.eup %481  ;;  %v354_v11 = vmul.f32 %v447_v57, %v335_v8 }
 0x15b   : > { %v484_v12 = vpop.eup %483  ;;  %v367_v13 = vadd.f32 %v448_v0, %v353_v9  ;;  %v337_v14 = vmul.f32 %v482_v10, %v553_v29 }
 0x15c   : > { %v368_v15 = vadd.f32 %v448_v0, %v354_v11  ;;  %v339_v16 = vmul.f32 %v484_v12, %v561_v38 }
 0x15d   : > { %375 = vst.msk [vmem:[%s619_s25 + $0x8] sm:$0xff] %vm184_vm0, %v367_v13  ;;  %v355_v28 = vmul.f32 %v447_v57, %v337_v14 }
 0x15e   : > { %v486_v17 = vpop.eup %485  ;;  %376 = vst.msk [vmem:[%s619_s25 + $0x10] sm:$0xff] %vm184_vm0, %v368_v15  ;;  %v356_v21 = vmul.f32 %v447_v57, %v339_v16 }
 0x15f   : > { %v488_v18 = vpop.eup %487  ;;  %v369_v19 = vadd.f32 %v448_v0, %v355_v28  ;;  %v341_v22 = vmul.f32 %v486_v17, %v563_v39 }
 0x160   : > { %v370_v23 = vadd.f32 %v448_v0, %v356_v21  ;;  %v343_v29 = vmul.f32 %v488_v18, %v571_v48 }
 0x161   : > { %377 = vst.msk [vmem:[%s619_s25 + $0x18] sm:$0xff] %vm184_vm0, %v369_v19  ;;  %v357_v38 = vmul.f32 %v447_v57, %v341_v22 }
 0x162   : > { %v490_v24 = vpop.eup %489  ;;  %378 = vst.msk [vmem:[%s619_s25 + $0x20] sm:$0xff] %vm184_vm0, %v370_v23  ;;  %v358_v25 = vmul.f32 %v447_v57, %v343_v29 }
 0x163   : > { %v371_v26 = vadd.f32 %v448_v0, %v357_v38  ;;  %v345_v27 = vmul.f32 %v490_v24, %v573_v49 }
 0x164   : > { %v372_v30 = vadd.f32 %v448_v0, %v358_v25 }
 0x165   : > { %379 = vst.msk [vmem:[%s619_s25 + $0x28] sm:$0xff] %vm184_vm0, %v371_v26  ;;  %v359_v31 = vmul.f32 %v447_v57, %v345_v27 }
 0x166   : > { %380 = vst.msk [vmem:[%s619_s25 + $0x30] sm:$0xff] %vm184_vm0, %v372_v30 }
 0x167   : > { %v373_v39 = vadd.f32 %v448_v0, %v359_v31 }
 0x169   : > { %381 = vst.msk [vmem:[%s619_s25 + $0x38] sm:$0xff] %vm184_vm0, %v373_v39 }
 0x16a PF: > { %s13_s12 = sadd.s32 1, %s497_s12  }
 0x16b   : > { %p10_p4 = scmp.ge.s32.totalorder %s13_s12, 4  }
 0x16d   :  { %12 = sbr.rel (!%p10_p4) target bundleno = 1 (0x1), region = 62 }

// kernel: conv_cross_transformer.22
= control target key start
LH: loop header
LB: loop body
LE: loop exit
PB: predicated region body
PF: predicated region fallthrough
CT: control target
= control target key end

     0   :  { %s775_s15 = smov 0   ;;  %s1063_s0 = inlined_call_operand.vmem [shape: f32[2,10,10,8], index: 0, kind: input, shape index: {}]   ;;  %s1064_s1 = inlined_call_operand.vmem [shape: f32[9,8], index: 1, kind: input, shape index: {}]   ;;  %s1065_s2 = inlined_call_operand.vmem [shape: f32[2,8], index: 2, kind: input, shape index: {}]   ;;  %s1066_s3 = inlined_call_operand.vmem [shape: bf16[8,32], index: 3, kind: input, shape index: {}]   ;;  %s1067_s4 = inlined_call_operand.vmem [shape: f32[2,64,32], index: 4, kind: output, shape index: {}]  }
   0x1 LB: > { %s648_s16 = sadd.s32 4294967295, %s748_s15   ;;  %p652_p0 = scmp.ge.s32.totalorder %s748_s15, 1  ;;  %s748_s15 = sphi %s775_s15, %s14_s15  }
   0x2   : > { %p162_p1 = scmp.lt.s32.totalorder %s748_s15, 3 }
   0x4   : > { %p163_p2 = pnand %p652_p0, %p162_p1 }
   0x5   : > { %v502_v0 = vld [vmem:[%s1066_s3] sm:$0xf] (!%p163_p2)  ;;  %vm515_vm0 = vcmask (!%p163_p2), 1043456   ;;  %p188_p3 = scmp.lt.s32.totalorder (!%p163_p2), %s648_s16, 1  ;;  %v211_v1 = vlaneseq (!%p163_p2)  ;;  %v808_v17 = vld [vmem:[%s1064_s1 + $0x8] ss:$0 sm:$0xff] (!%p163_p2) }
   0x6   : > { %166 = sbr.rel (%p163_p2) target bundleno = 294 (0x126), region = 36  ;;  %731 = vmatprep.subr.msk.bf16.mxu0 (!%p163_p2), %vm515_vm0, %v502_v0  ;;  %732 = vmatprep.subr.msk.bf16.mxu1 (!%p163_p2), %vm515_vm0, %v502_v0  ;;  %v517_v2 = vsel (!%p163_p2), %vm515_vm0, %v502_v0, 0  ;;  %v199_v4 = vld [vmem:[%s1064_s1] sm:$0xff] (!%p163_p2)  ;;  %vm481_vm1 = vcmask (!%p163_p2), 64512   ;;  %vm584_vm2 = vcmask (!%p163_p2), 261120  }
   0x7   : > { %720 = vmatpush3.bf16.msra.mxu0 (!%p163_p2), %v517_v2  ;;  %730 = vmatpush3.bf16.msra.mxu1 (!%p163_p2), %v517_v2  ;;  %v212_v3 = vshrl.u32 (!%p163_p2), %v211_v1, 7 }
   0x9   : > { %v213_v5 = vsub.s32 (!%p163_p2), 0, %v212_v3  ;;  %v241_v6 = vsub.s32 (!%p163_p2), 1, %v212_v3  ;;  %v269_v7 = vsub.s32 (!%p163_p2), 2, %v212_v3  ;;  %v298_v8 = vsub.s32 (!%p163_p2), 3, %v212_v3 }
   0xa   : > { %v326_v9 = vsub.s32 (!%p163_p2), 4, %v212_v3  ;;  %v354_v10 = vsub.s32 (!%p163_p2), 5, %v212_v3  ;;  %v383_v11 = vsub.s32 (!%p163_p2), 6, %v212_v3  ;;  %v411_v12 = vsub.s32 (!%p163_p2), 7, %v212_v3 }
   0xb   : > { %v797_v13 = vrot.slane (!%p163_p2), %v199_v4, %v213_v5  ;;  %v799_v14 = vrot.slane (!%p163_p2), %v199_v4, %v241_v6  ;;  %v801_v15 = vrot.slane (!%p163_p2), %v199_v4, %v269_v7  ;;  %v803_v16 = vrot.slane (!%p163_p2), %v199_v4, %v298_v8 }
   0xc   : > { %v813_v21 = vrot.slane (!%p163_p2), %v199_v4, %v326_v9  ;;  %v815_v22 = vrot.slane (!%p163_p2), %v199_v4, %v354_v10  ;;  %v817_v23 = vrot.slane (!%p163_p2), %v199_v4, %v383_v11  ;;  %v819_v24 = vrot.slane (!%p163_p2), %v199_v4, %v411_v12 }
   0xd   : > { %s1069_s16 = smov (!%p188_p3, %s648_s16), 1 }
   0xe   : > { %s733_s21 = smul.u32 160, %s1069_s16  ;;  %s713_s5 = sshll.u32 %s1069_s16, 6 }
   0xf   : > { %s197_s8 = scalar_lea.vmem %s1067_s4, %s713_s5 }
  0x10   : > { %s795_s24 = scalar_lea.vmem %s1063_s0, %s733_s21 }
  0x11   : > { %v203_v18 = vld [vmem:[%s795_s24] sm:$0xff]  ;;  %v204_v19 = vld [vmem:[%s795_s24 + $0x10] sm:$0xff] }
  0x12   : > { %v231_v20 = vld [vmem:[%s795_s24 + $0x1] sm:$0xff]  ;;  %v215_v25 = vmul.f32 %v797_v13, %v203_v18  ;;  %v216_v26 = vmul.f32 %v797_v13, %v204_v19  ;;  %v232_v27 = vld [vmem:[%s795_s24 + $0x11] sm:$0xff]  ;;  %v300_v31 = vmul.f32 %v803_v16, %v204_v19 }
  0x13   : > { %v243_v28 = vmul.f32 %v799_v14, %v231_v20  ;;  %v259_v29 = vld [vmem:[%s795_s24 + $0x2] sm:$0xff]  ;;  %v260_v30 = vld [vmem:[%s795_s24 + $0x12] sm:$0xff]  ;;  %v244_v32 = vmul.f32 %v799_v14, %v232_v27  ;;  %v328_v37 = vmul.f32 %v813_v21, %v232_v27 }
  0x14   : > { %v271_v33 = vmul.f32 %v801_v15, %v259_v29  ;;  %v272_v34 = vmul.f32 %v801_v15, %v260_v30  ;;  %v832_v35 = vld [vmem:[%s795_s24 + $0x20] sm:$0xff]  ;;  %v356_v42 = vmul.f32 %v815_v22, %v260_v30  ;;  %v847_v43 = vld [vmem:[%s795_s24 + $0x30] sm:$0xff] }
  0x15   : > { %v835_v36 = vld [vmem:[%s795_s24 + $0x21] sm:$0xff]  ;;  %v251_v39 = vadd.f32 %v243_v28, %v215_v25  ;;  %v301_v40 = vmul.f32 %v832_v35, %v803_v16  ;;  %v850_v44 = vld [vmem:[%s795_s24 + $0x31] sm:$0xff]  ;;  %v252_v46 = vadd.f32 %v244_v32, %v216_v26  ;;  %v385_v48 = vmul.f32 %v832_v35, %v817_v23 }
  0x16   : > { %v839_v38 = vld [vmem:[%s795_s24 + $0x22] sm:$0xff]  ;;  %v329_v41 = vmul.f32 %v835_v36, %v813_v21  ;;  %v853_v45 = vld [vmem:[%s795_s24 + $0x32] sm:$0xff]  ;;  %v386_v49 = vmul.f32 %v847_v43, %v817_v23  ;;  %v413_v54 = vmul.f32 %v835_v36, %v819_v24  ;;  %v414_v55 = vmul.f32 %v850_v44, %v819_v24 }
  0x17   : > { %v357_v47 = vmul.f32 %v839_v38, %v815_v22  ;;  %v862_v50 = vld [vmem:[%s795_s24 + $0x40] sm:$0xff]  ;;  %v865_v51 = vld [vmem:[%s795_s24 + $0x50] sm:$0xff]  ;;  %v279_v53 = vadd.f32 %v271_v33, %v251_v39  ;;  %v441_v56 = vmul.f32 %v808_v17, %v839_v38  ;;  %v280_v60 = vadd.f32 %v272_v34, %v252_v46 }
  0x18   : > { %v868_v52 = vld [vmem:[%s795_s24 + $0x41] sm:$0xff]  ;;  %v877_v57 = vld [vmem:[%s795_s24 + $0x51] sm:$0xff]  ;;  %v442_v61 = vmul.f32 %v808_v17, %v853_v45  ;;  %v219_v62 = vmul.f32 %v797_v13, %v862_v50  ;;  %v220_v63 = vmul.f32 %v797_v13, %v865_v51  ;;  %v304_v7 = vmul.f32 %v803_v16, %v865_v51 }
  0x19   : > { %v880_v58 = vld [vmem:[%s795_s24 + $0x42] sm:$0xff]  ;;  %v883_v59 = vld [vmem:[%s795_s24 + $0x52] sm:$0xff]  ;;  %v308_v0 = vadd.f32 %v300_v31, %v279_v53  ;;  %v247_v1 = vmul.f32 %v799_v14, %v868_v52  ;;  %v248_v2 = vmul.f32 %v799_v14, %v877_v57  ;;  %v309_v5 = vadd.f32 %v301_v40, %v280_v60 }
  0x1a   : > { %v275_v3 = vmul.f32 %v801_v15, %v880_v58  ;;  %v898_v4 = vld [vmem:[%s795_s24 + $0x60] sm:$0xff]  ;;  %v276_v6 = vmul.f32 %v801_v15, %v883_v59  ;;  %v332_v18 = vmul.f32 %v813_v21, %v877_v57  ;;  %v360_v26 = vmul.f32 %v815_v22, %v883_v59  ;;  %v921_v31 = vld [vmem:[%s795_s24 + $0x70] sm:$0xff] }
  0x1b   : > { %v305_v8 = vmul.f32 %v898_v4, %v803_v16  ;;  %v336_v9 = vadd.f32 %v328_v37, %v308_v0  ;;  %v255_v10 = vadd.f32 %v247_v1, %v219_v62  ;;  %v256_v11 = vadd.f32 %v248_v2, %v220_v63  ;;  %v907_v12 = vld [vmem:[%s795_s24 + $0x61] sm:$0xff]  ;;  %v926_v33 = vld [vmem:[%s795_s24 + $0x71] sm:$0xff] }
  0x1c   : > { %v912_v19 = vld [vmem:[%s795_s24 + $0x62] sm:$0xff]  ;;  %v337_v20 = vadd.f32 %v329_v41, %v309_v5  ;;  %v333_v25 = vmul.f32 %v907_v12, %v813_v21  ;;  %v389_v32 = vmul.f32 %v898_v4, %v817_v23  ;;  %v390_v37 = vmul.f32 %v921_v31, %v817_v23  ;;  %v935_v53 = vld [vmem:[%s795_s24 + $0x72] sm:$0xff]  ;;  %v950_v5 = vld [vmem:[%s1065_s2] ss:$0 sm:$0xff] }
  0x1d   : > { %v361_v27 = vmul.f32 %v912_v19, %v815_v22  ;;  %v364_v28 = vadd.f32 %v356_v42, %v336_v9  ;;  %v283_v29 = vadd.f32 %v275_v3, %v255_v10  ;;  %v284_v30 = vadd.f32 %v276_v6, %v256_v11 }
  0x1e   : > { %v365_v34 = vadd.f32 %v357_v47, %v337_v20  ;;  %v417_v39 = vmul.f32 %v907_v12, %v819_v24  ;;  %v418_v40 = vmul.f32 %v926_v33, %v819_v24  ;;  %v445_v60 = vmul.f32 %v808_v17, %v912_v19 }
  0x1f   : > { %v393_v41 = vadd.f32 %v385_v48, %v364_v28  ;;  %v312_v42 = vadd.f32 %v304_v7, %v283_v29  ;;  %v313_v46 = vadd.f32 %v305_v8, %v284_v30  ;;  %v446_v47 = vmul.f32 %v808_v17, %v935_v53 }
  0x20   : > { %v394_v62 = vadd.f32 %v386_v49, %v365_v34  ;;  %v217_v63 = vmul.f32 %v832_v35, %v797_v13  ;;  %v218_v0 = vmul.f32 %v847_v43, %v797_v13  ;;  %v245_v3 = vmul.f32 %v835_v36, %v799_v14  ;;  %v961_v36 = vld [vmem:[%s1065_s2 + $0x1] ss:$0 sm:$0xff] }
  0x21   : > { %v421_v1 = vadd.f32 %v413_v54, %v393_v41  ;;  %v340_v2 = vadd.f32 %v332_v18, %v312_v42  ;;  %v341_v48 = vadd.f32 %v333_v25, %v313_v46  ;;  %v246_v6 = vmul.f32 %v850_v44, %v799_v14 }
  0x22   : > { %v422_v49 = vadd.f32 %v414_v55, %v394_v62  ;;  %v273_v35 = vmul.f32 %v839_v38, %v801_v15  ;;  %v274_v54 = vmul.f32 %v853_v45, %v801_v15  ;;  %v253_v10 = vadd.f32 %v245_v3, %v217_v63 }
  0x23   : > { %v449_v7 = vadd.f32 %v441_v56, %v421_v1  ;;  %v368_v8 = vadd.f32 %v360_v26, %v340_v2  ;;  %v369_v9 = vadd.f32 %v361_v27, %v341_v48  ;;  %v254_v55 = vadd.f32 %v246_v6, %v218_v0 }
  0x24   : > { %v450_v11 = vadd.f32 %v442_v61, %v422_v49  ;;  %v302_v18 = vmul.f32 %v847_v43, %v803_v16  ;;  %v303_v38 = vmul.f32 %v803_v16, %v862_v50  ;;  %v281_v26 = vadd.f32 %v273_v35, %v253_v10 }
  0x25   : > { %v461_v20 = vmul.f32 %v950_v5, %v449_v7  ;;  %v397_v25 = vadd.f32 %v389_v32, %v368_v8  ;;  %v398_v56 = vadd.f32 %v390_v37, %v369_v9  ;;  %v282_v28 = vadd.f32 %v274_v54, %v254_v55  ;;  %v671_v9 = vld [vmem:[%s795_s24 + $0x81] sm:$0xff] }
  0x26   : > { %v462_v27 = vmul.f32 %v950_v5, %v450_v11  ;;  %v330_v29 = vmul.f32 %v850_v44, %v813_v21  ;;  %v331_v61 = vmul.f32 %v813_v21, %v868_v52  ;;  %v310_v41 = vadd.f32 %v302_v18, %v281_v26 }
  0x27   : > { %v473_v30 = vadd.f32 %v961_v36, %v461_v20  ;;  %v425_v43 = vadd.f32 %v417_v39, %v397_v25  ;;  %v426_v34 = vadd.f32 %v418_v40, %v398_v56  ;;  %v311_v46 = vadd.f32 %v303_v38, %v282_v28  ;;  %v679_v20 = vld [vmem:[%s795_s24 + $0x82] sm:$0xff] }
  0x28   : > { %v474_v42 = vadd.f32 %v961_v36, %v462_v27  ;;  %v358_v32 = vmul.f32 %v853_v45, %v815_v22  ;;  %v359_v37 = vmul.f32 %v815_v22, %v880_v58  ;;  %v338_v63 = vadd.f32 %v330_v29, %v310_v41  ;;  %v695_v41 = vld [vmem:[%s795_s24 + $0x91] sm:$0xff] }
  0x29   : > { %482 = vst.msk [vmem:[#allocation2] sm:$0xff] %vm481_vm1, %v473_v30  ;;  %v453_v44 = vadd.f32 %v445_v60, %v425_v43  ;;  %v454_v62 = vadd.f32 %v446_v47, %v426_v34  ;;  %v387_v0 = vmul.f32 %v817_v23, %v862_v50  ;;  %v339_v39 = vadd.f32 %v331_v61, %v311_v46 }
  0x2a   : > { %483 = vst.msk [vmem:[#allocation2 + $0x8] sm:$0xff] %vm481_vm1, %v474_v42  ;;  %v388_v40 = vmul.f32 %v817_v23, %v865_v51  ;;  %v415_v45 = vmul.f32 %v819_v24, %v868_v52  ;;  %v416_v1 = vmul.f32 %v819_v24, %v877_v57  ;;  %v366_v2 = vadd.f32 %v358_v32, %v338_v63 }
  0x2b   : > { %v465_v60 = vmul.f32 %v950_v5, %v453_v44  ;;  %v466_v47 = vmul.f32 %v950_v5, %v454_v62  ;;  %v443_v50 = vmul.f32 %v808_v17, %v880_v58  ;;  %v367_v48 = vadd.f32 %v359_v37, %v339_v39  ;;  %v663_v58 = vld [vmem:[%s795_s24 + $0x80] sm:$0xff] }
  0x2c   : > { %v444_v3 = vmul.f32 %v808_v17, %v883_v59  ;;  %v221_v51 = vmul.f32 %v898_v4, %v797_v13  ;;  %v222_v52 = vmul.f32 %v921_v31, %v797_v13  ;;  %v395_v6 = vadd.f32 %v387_v0, %v366_v2 }
  0x2d   : > { %v477_v57 = vadd.f32 %v961_v36, %v465_v60  ;;  %v478_v49 = vadd.f32 %v961_v36, %v466_v47  ;;  %v249_v35 = vmul.f32 %v907_v12, %v799_v14  ;;  %v396_v54 = vadd.f32 %v388_v40, %v367_v48 }
  0x2e   : > { %v250_v59 = vmul.f32 %v926_v33, %v799_v14  ;;  %v277_v4 = vmul.f32 %v912_v19, %v801_v15  ;;  %v278_v13 = vmul.f32 %v935_v53, %v801_v15  ;;  %v423_v7 = vadd.f32 %v415_v45, %v395_v6 }
  0x2f   : > { %486 = vst.msk [vmem:[#allocation2 + $0x20] sm:$0xff] %vm481_vm1, %v477_v57  ;;  %487 = vst.msk [vmem:[#allocation2 + $0x28] sm:$0xff] %vm481_vm1, %v478_v49  ;;  %v257_v8 = vadd.f32 %v249_v35, %v221_v51  ;;  %v306_v12 = vmul.f32 %v921_v31, %v803_v16  ;;  %v424_v14 = vadd.f32 %v416_v1, %v396_v54 }
  0x30   : > { %v490_v10 = vld [vmem:[#allocation2] sm:$0xff]  ;;  %v258_v11 = vadd.f32 %v250_v59, %v222_v52  ;;  %v307_v19 = vmul.f32 %v663_v58, %v803_v16  ;;  %v451_v18 = vadd.f32 %v443_v50, %v423_v7  ;;  %v334_v15 = vmul.f32 %v926_v33, %v813_v21  ;;  %v687_v16 = vld [vmem:[%s795_s24 + $0x90] sm:$0xff] }
  0x31   : > { %v491_v55 = vld [vmem:[#allocation2 + $0x8] sm:$0xff]  ;;  %v285_v38 = vadd.f32 %v277_v4, %v257_v8  ;;  %v452_v56 = vadd.f32 %v444_v3, %v424_v14  ;;  %v335_v31 = vmul.f32 %v671_v9, %v813_v21  ;;  %v362_v29 = vmul.f32 %v935_v53, %v815_v22 }
  0x32   : > { %v498_v25 = vpack.c.bf16 %v491_v55, %v490_v10  ;;  %v286_v26 = vadd.f32 %v278_v13, %v258_v11  ;;  %v463_v27 = vmul.f32 %v950_v5, %v451_v18  ;;  %v363_v30 = vmul.f32 %v679_v20, %v815_v22  ;;  %v703_v22 = vld [vmem:[%s795_s24 + $0x92] sm:$0xff] }
  0x33   : > { %v314_v28 = vadd.f32 %v306_v12, %v285_v38  ;;  %v464_v61 = vmul.f32 %v950_v5, %v452_v56  ;;  %v391_v21 = vmul.f32 %v663_v58, %v817_v23  ;;  %v392_v37 = vmul.f32 %v687_v16, %v817_v23 }
  0x34   : > { %721 = vmatprep.mubr.msk.bf16.mxu0 %vm481_vm1, %v498_v25  ;;  %v315_v33 = vadd.f32 %v307_v19, %v286_v26  ;;  %v475_v43 = vadd.f32 %v961_v36, %v463_v27  ;;  %v419_v63 = vmul.f32 %v671_v9, %v819_v24  ;;  %v420_v39 = vmul.f32 %v695_v41, %v819_v24 }
  0x35   : > { %v342_v34 = vadd.f32 %v334_v15, %v314_v28  ;;  %v476_v32 = vadd.f32 %v961_v36, %v464_v61  ;;  %v447_v45 = vmul.f32 %v808_v17, %v679_v20  ;;  %v448_v23 = vmul.f32 %v808_v17, %v703_v22 }
  0x36   : > { %v494_v42 = vld [vmem:[#allocation2 + $0x20] sm:$0xff]  ;;  %v495_v46 = vld [vmem:[#allocation2 + $0x28] sm:$0xff]  ;;  %v343_v53 = vadd.f32 %v335_v31, %v315_v33  ;;  %484 = vst.msk [vmem:[#allocation2 + $0x10] sm:$0xff] %vm481_vm1, %v475_v43 }
  0x37   : > { %v500_v44 = vpack.c.bf16 %v495_v46, %v494_v42  ;;  %v370_v62 = vadd.f32 %v362_v29, %v342_v34  ;;  %485 = vst.msk [vmem:[#allocation2 + $0x18] sm:$0xff] %vm481_vm1, %v476_v32 }
  0x38   : > { %v371_v0 = vadd.f32 %v363_v30, %v343_v53 }
  0x39   : > { %725 = vmatprep.mubr.msk.bf16.mxu1 %vm481_vm1, %v500_v44  ;;  %v399_v40 = vadd.f32 %v391_v21, %v370_v62 }
  0x3a   : > { %v400_v1 = vadd.f32 %v392_v37, %v371_v0 }
  0x3b   : > { %v427_v60 = vadd.f32 %v419_v63, %v399_v40 }
  0x3c   : > { %v428_v47 = vadd.f32 %v420_v39, %v400_v1 }
  0x3d   : > { %v455_v2 = vadd.f32 %v447_v45, %v427_v60  ;;  %v492_v50 = vld [vmem:[#allocation2 + $0x10] sm:$0xff] }
  0x3e   : > { %v456_v48 = vadd.f32 %v448_v23, %v428_v47  ;;  %v493_v3 = vld [vmem:[#allocation2 + $0x18] sm:$0xff] }
  0x3f   : > { %v467_v51 = vmul.f32 %v950_v5, %v455_v2  ;;  %v499_v52 = vpack.c.bf16 %v493_v3, %v492_v50 }
  0x40   : > { %v468_v24 = vmul.f32 %v950_v5, %v456_v48 }
  0x41   : > { %v479_v57 = vadd.f32 %v961_v36, %v467_v51  ;;  %722 = vmatmul.mubr.msk.bf16.vlgmr.msra.gmra.mrb[0].mxu0 %vm481_vm1, %v499_v52 }
  0x42   : > { %v480_v49 = vadd.f32 %v961_v36, %v468_v24 }
  0x43   : > { %488 = vst.msk [vmem:[#allocation2 + $0x30] sm:$0xff] %vm481_vm1, %v479_v57 }
  0x44   : > { %489 = vst.msk [vmem:[#allocation2 + $0x38] sm:$0xff] %vm481_vm1, %v480_v49 }
  0x4a   : > { %v496_v17 = vld [vmem:[#allocation2 + $0x30] sm:$0xff] }
  0x4b   : > { %v497_v6 = vld [vmem:[#allocation2 + $0x38] sm:$0xff] }
  0x4c   : > { %v501_v35 = vpack.c.bf16 %v497_v6, %v496_v17 }
  0x4e   : > { %726 = vmatmul.mubr.msk.bf16.vlgmr.msra.gmra.mrb[0].mxu1 %vm481_vm1, %v501_v35 }
 0x114   : > { %v723_v5 = vpop.f32.mrb[0].mxu0 }
 0x115   : > { %587 = vst.msk [vmem:[%s197_s8 + $0x10] sm:$0xff] %vm584_vm2, %v723_v5  ;;  %v553_v58 = vpop.f32.mrb[1].mxu0 }
 0x116   : > { %585 = vst.msk [vmem:[%s197_s8] sm:$0xff] %vm584_vm2, %v553_v58  ;;  %v724_v36 = vpop.f32.mrb[2].mxu0 }
 0x117   : > { %588 = vst.msk [vmem:[%s197_s8 + $0x18] sm:$0xff] %vm584_vm2, %v724_v36  ;;  %v556_v54 = vpop.f32.mrb[3].mxu0 }
 0x118   : > { %586 = vst.msk [vmem:[%s197_s8 + $0x8] sm:$0xff] %vm584_vm2, %v556_v54 }
 0x121   : > { %v727_v59 = vpop.f32.mrb[0].mxu1 }
 0x122   : > { %591 = vst.msk [vmem:[%s197_s8 + $0x30] sm:$0xff] %vm584_vm2, %v727_v59  ;;  %v569_v4 = vpop.f32.mrb[1].mxu1 }
 0x123   : > { %589 = vst.msk [vmem:[%s197_s8 + $0x20] sm:$0xff] %vm584_vm2, %v569_v4  ;;  %v728_v13 = vpop.f32.mrb[2].mxu1 }
 0x124   : > { %592 = vst.msk [vmem:[%s197_s8 + $0x38] sm:$0xff] %vm584_vm2, %v728_v13  ;;  %v572_v7 = vpop.f32.mrb[3].mxu1 }
 0x125   : > { %590 = vst.msk [vmem:[%s197_s8 + $0x28] sm:$0xff] %vm584_vm2, %v572_v7 }
 0x126 PF: > { %s14_s15 = sadd.s32 1, %s748_s15  }
 0x127   : > { %p11_p4 = scmp.ge.s32.totalorder %s14_s15, 4  }
 0x129   :  { %13 = sbr.rel (!%p11_p4) target bundleno = 1 (0x1), region = 68 }

// kernel: conv_cross_transformer.23
= control target key start
LH: loop header
LB: loop body
LE: loop exit
PB: predicated region body
PF: predicated region fallthrough
CT: control target
= control target key end

     0   :  { %s587_s15 = smov 0   ;;  %s674_s0 = inlined_call_operand.vmem [shape: f32[8,5,5,8], index: 0, kind: input, shape index: {}]   ;;  %s675_s1 = inlined_call_operand.vmem [shape: f32[9,8], index: 1, kind: input, shape index: {}]   ;;  %s676_s2 = inlined_call_operand.vmem [shape: f32[2,8], index: 2, kind: input, shape index: {}]   ;;  %s677_s3 = inlined_call_operand.vmem [shape: bf16[8,64], index: 3, kind: input, shape index: {}]   ;;  %s678_s4 = inlined_call_operand.vmem [shape: f32[2,16,64], index: 4, kind: output, shape index: {}]  }
   0x1 LB: > { %s593_s16 = sadd.s32 4294967295, %s558_s15   ;;  %p493_p0 = scmp.ge.s32.totalorder %s558_s15, 1  ;;  %s558_s15 = sphi %s587_s15, %s14_s15  }
   0x2   : > { %p164_p1 = scmp.lt.s32.totalorder %s558_s15, 3 }
   0x4   : > { %p165_p2 = pnand %p493_p0, %p164_p1 }
   0x5   : > { %v381_v0 = vld [vmem:[%s677_s3] sm:$0xf] (!%p165_p2)  ;;  %vm386_vm0 = vcmask (!%p165_p2), 1043456   ;;  %s494_s19 = sshll.u32 (!%p165_p2), %s593_s16, 2  ;;  %v212_v1 = vlaneseq (!%p165_p2)  ;;  %v560_v2 = vmov (!%p165_p2), 0.0   ;;  %vm561_vm1 = vmmov (!%p165_p2), 0  }
   0x6   : > { %168 = sbr.rel (%p165_p2) target bundleno = 267 (0x10b), region = 36  ;;  %535 = vmatprep.subr.bf16.mxu0 (!%p165_p2), %v560_v2  ;;  %v388_v3 = vsel (!%p165_p2), %vm386_vm0, %v381_v0, 0  ;;  %537 = vmatprep.mubr.msk.bf16.mxu0 (!%p165_p2), %vm561_vm1, %v560_v2  ;;  %p192_p3 = scmp.lt.s32.totalorder (!%p165_p2), %s494_s19, 7  ;;  %v204_v5 = vld [vmem:[%s675_s1] sm:$0xff] (!%p165_p2)  ;;  %vm373_vm2 = vcmask (!%p165_p2), 60416   ;;  %vm382_vm3 = vcmask (!%p165_p2), 64512  }
   0x7   : > { %536 = vmatpush3.bf16.msra.mxu0 (!%p165_p2), %v388_v3  ;;  %v213_v4 = vshrl.u32 (!%p165_p2), %v212_v1, 7  ;;  %p198_p4 = scmp.lt.s32.totalorder (!%p165_p2), %s593_s16, 1  ;;  %vm431_vm4 = vcmask (!%p165_p2), 523264  }
   0x9   : > { %v214_v6 = vsub.s32 (!%p165_p2), 0, %v213_v4  ;;  %v231_v7 = vsub.s32 (!%p165_p2), 1, %v213_v4  ;;  %v247_v8 = vsub.s32 (!%p165_p2), 2, %v213_v4  ;;  %v264_v9 = vsub.s32 (!%p165_p2), 3, %v213_v4 }
   0xa   : > { %v281_v10 = vsub.s32 (!%p165_p2), 4, %v213_v4  ;;  %v297_v11 = vsub.s32 (!%p165_p2), 5, %v213_v4  ;;  %v314_v14 = vsub.s32 (!%p165_p2), 6, %v213_v4  ;;  %v331_v16 = vsub.s32 (!%p165_p2), 7, %v213_v4 }
   0xb   : > { %v215_v12 = vrot.slane (!%p165_p2), %v204_v5, %v214_v6  ;;  %v232_v13 = vrot.slane (!%p165_p2), %v204_v5, %v231_v7  ;;  %v248_v15 = vrot.slane (!%p165_p2), %v204_v5, %v247_v8  ;;  %v265_v20 = vrot.slane (!%p165_p2), %v204_v5, %v264_v9 }
   0xc   : > { %v282_v21 = vrot.slane (!%p165_p2), %v204_v5, %v281_v10  ;;  %v298_v28 = vrot.slane (!%p165_p2), %v204_v5, %v297_v11  ;;  %v618_v35 = vrot.slane (!%p165_p2), %v204_v5, %v314_v14  ;;  %v623_v42 = vrot.slane (!%p165_p2), %v204_v5, %v331_v16 }
   0xd   : > { %s680_s19 = smov (!%p192_p3, %s494_s19), 7  ;;  %s682_s16 = smov (!%p198_p4, %s593_s16), 1 }
   0xe   : > { %s541_s22 = smul.u32 40, %s680_s19  ;;  %s532_s6 = sshll.u32 %s682_s16, 4 }
   0xf   : > { %s202_s9 = scalar_lea.vmem %s678_s4, %s532_s6 }
  0x10   : > { %s607_s25 = scalar_lea.vmem %s674_s0, %s541_s22 }
  0x11   : > { %v208_v17 = vld [vmem:[%s607_s25] sm:$0xf]  ;;  %v209_v18 = vld [vmem:[%s607_s25 + $0x8] sm:$0xf]  ;;  %v210_v19 = vld [vmem:[%s607_s25 + $0x10] sm:$0xf] }
  0x12   : > { %v211_v22 = vld [vmem:[%s607_s25 + $0x18] sm:$0xf]  ;;  %v216_v23 = vmul.f32 %v215_v12, %v208_v17  ;;  %v217_v24 = vmul.f32 %v215_v12, %v209_v18  ;;  %v218_v25 = vmul.f32 %v215_v12, %v210_v19  ;;  %v498_v26 = vld [vmem:[%s607_s25 + $0x28] sm:$0xf]  ;;  %v499_v27 = vld [vmem:[%s607_s25 + $0x30] sm:$0xf] }
  0x13   : > { %v219_v29 = vmul.f32 %v215_v12, %v211_v22  ;;  %v500_v30 = vld [vmem:[%s607_s25 + $0x38] sm:$0xf]  ;;  %v501_v31 = vld [vmem:[%s607_s25 + $0x40] sm:$0xf]  ;;  %v233_v32 = vmul.f32 %v498_v26, %v232_v13  ;;  %v234_v33 = vmul.f32 %v499_v27, %v232_v13  ;;  %v242_v38 = vld [vmem:[%s607_s25 + $0x9] sm:$0xf] }
  0x14   : > { %v241_v34 = vld [vmem:[%s607_s25 + $0x1] sm:$0xf]  ;;  %v235_v36 = vmul.f32 %v500_v30, %v232_v13  ;;  %v236_v37 = vmul.f32 %v501_v31, %v232_v13  ;;  %v243_v39 = vld [vmem:[%s607_s25 + $0x11] sm:$0xf]  ;;  %v244_v40 = vld [vmem:[%s607_s25 + $0x19] sm:$0xf]  ;;  %v250_v45 = vmul.f32 %v248_v15, %v242_v38 }
  0x15   : > { %v249_v41 = vmul.f32 %v248_v15, %v241_v34  ;;  %v237_v43 = vadd.f32 %v233_v32, %v216_v23  ;;  %v238_v44 = vadd.f32 %v234_v33, %v217_v24  ;;  %v251_v46 = vmul.f32 %v248_v15, %v243_v39  ;;  %v502_v47 = vld [vmem:[%s607_s25 + $0x50] sm:$0xf]  ;;  %v503_v48 = vld [vmem:[%s607_s25 + $0x58] sm:$0xf]  ;;  %v504_v49 = vld [vmem:[%s607_s25 + $0x60] sm:$0xf] }
  0x16   : > { %v239_v50 = vadd.f32 %v235_v36, %v218_v25  ;;  %v240_v51 = vadd.f32 %v236_v37, %v219_v29  ;;  %v252_v52 = vmul.f32 %v248_v15, %v244_v40  ;;  %v505_v53 = vld [vmem:[%s607_s25 + $0x68] sm:$0xf]  ;;  %v266_v54 = vmul.f32 %v502_v47, %v265_v20  ;;  %v506_v55 = vld [vmem:[%s607_s25 + $0x78] sm:$0xf]  ;;  %v507_v56 = vld [vmem:[%s607_s25 + $0x80] sm:$0xf] }
  0x17   : > { %v253_v57 = vadd.f32 %v249_v41, %v237_v43  ;;  %v254_v58 = vadd.f32 %v250_v45, %v238_v44  ;;  %v267_v59 = vmul.f32 %v503_v48, %v265_v20  ;;  %v268_v60 = vmul.f32 %v504_v49, %v265_v20  ;;  %v508_v61 = vld [vmem:[%s607_s25 + $0x88] sm:$0xf]  ;;  %v509_v62 = vld [vmem:[%s607_s25 + $0x90] sm:$0xf]  ;;  %v511_v4 = vld [vmem:[%s607_s25 + $0x59] sm:$0xf] }
  0x18   : > { %v510_v63 = vld [vmem:[%s607_s25 + $0x51] sm:$0xf]  ;;  %v255_v0 = vadd.f32 %v251_v46, %v239_v50  ;;  %v256_v1 = vadd.f32 %v252_v52, %v240_v51  ;;  %v269_v2 = vmul.f32 %v505_v53, %v265_v20  ;;  %v283_v3 = vmul.f32 %v506_v55, %v282_v21  ;;  %v512_v5 = vld [vmem:[%s607_s25 + $0x61] sm:$0xf]  ;;  %v513_v10 = vld [vmem:[%s607_s25 + $0x69] sm:$0xf] }
  0x19   : > { %v270_v6 = vadd.f32 %v266_v54, %v253_v57  ;;  %v271_v7 = vadd.f32 %v267_v59, %v254_v58  ;;  %v284_v8 = vmul.f32 %v507_v56, %v282_v21  ;;  %v285_v9 = vmul.f32 %v508_v61, %v282_v21  ;;  %v514_v11 = vld [vmem:[%s607_s25 + $0x8] sm:$0xf]  ;;  %v515_v16 = vld [vmem:[%s607_s25 + $0x10] sm:$0xf]  ;;  %v516_v17 = vld [vmem:[%s607_s25 + $0x18] sm:$0xf] }
  0x1a   : > { %v272_v12 = vadd.f32 %v268_v60, %v255_v0  ;;  %v273_v13 = vadd.f32 %v269_v2, %v256_v1  ;;  %v286_v14 = vmul.f32 %v509_v62, %v282_v21  ;;  %v299_v15 = vmul.f32 %v510_v63, %v298_v28  ;;  %v517_v23 = vld [vmem:[%s607_s25 + $0x20] sm:$0xf]  ;;  %v518_v24 = vld [vmem:[%s607_s25 + $0x30] sm:$0xf]  ;;  %v519_v30 = vld [vmem:[%s607_s25 + $0x38] sm:$0xf] }
  0x1b   : > { %v287_v18 = vadd.f32 %v283_v3, %v270_v6  ;;  %v288_v19 = vadd.f32 %v284_v8, %v271_v7  ;;  %v300_v20 = vmul.f32 %v511_v4, %v298_v28  ;;  %v301_v22 = vmul.f32 %v512_v5, %v298_v28  ;;  %v520_v21 = vld [vmem:[%s607_s25 + $0x40] sm:$0xf]  ;;  %v526_v31 = vld [vmem:[%s675_s1 + $0x8] ss:$0 sm:$0xff]  ;;  %v522_v38 = vld [vmem:[%s607_s25 + $0x9] sm:$0xf] }
  0x1c   : > { %v289_v25 = vadd.f32 %v285_v9, %v272_v12  ;;  %v290_v26 = vadd.f32 %v286_v14, %v273_v13  ;;  %v302_v27 = vmul.f32 %v513_v10, %v298_v28  ;;  %v316_v29 = vmul.f32 %v514_v11, %v618_v35  ;;  %v521_v37 = vld [vmem:[%s607_s25 + $0x48] sm:$0xf]  ;;  %v523_v43 = vld [vmem:[%s607_s25 + $0x11] sm:$0xf]  ;;  %v524_v44 = vld [vmem:[%s607_s25 + $0x19] sm:$0xf] }
  0x1d   : > { %v303_v32 = vadd.f32 %v299_v15, %v287_v18  ;;  %v304_v33 = vadd.f32 %v300_v20, %v288_v19  ;;  %v317_v34 = vmul.f32 %v515_v16, %v618_v35  ;;  %v318_v36 = vmul.f32 %v516_v17, %v618_v35  ;;  %v525_v49 = vld [vmem:[%s607_s25 + $0x21] sm:$0xf]  ;;  %v527_v57 = vld [vmem:[%s676_s2] ss:$0 sm:$0xff] }
  0x1e   : > { %v305_v39 = vadd.f32 %v301_v22, %v289_v25  ;;  %v306_v28 = vadd.f32 %v302_v27, %v290_v26  ;;  %v319_v40 = vmul.f32 %v517_v23, %v618_v35  ;;  %v333_v41 = vmul.f32 %v518_v24, %v623_v42  ;;  %v528_v63 = vld [vmem:[%s676_s2 + $0x1] ss:$0 sm:$0xff] }
  0x1f   : > { %v320_v45 = vadd.f32 %v316_v29, %v303_v32  ;;  %v321_v46 = vadd.f32 %v317_v34, %v304_v33  ;;  %v334_v47 = vmul.f32 %v519_v30, %v623_v42  ;;  %v335_v48 = vmul.f32 %v520_v21, %v623_v42 }
  0x20   : > { %v322_v50 = vadd.f32 %v318_v36, %v305_v39  ;;  %v323_v51 = vadd.f32 %v319_v40, %v306_v28  ;;  %v336_v52 = vmul.f32 %v521_v37, %v623_v42  ;;  %v349_v53 = vmul.f32 %v526_v31, %v522_v38 }
  0x21   : > { %v337_v54 = vadd.f32 %v333_v41, %v320_v45  ;;  %v338_v55 = vadd.f32 %v334_v47, %v321_v46  ;;  %v350_v56 = vmul.f32 %v526_v31, %v523_v43  ;;  %v351_v35 = vmul.f32 %v526_v31, %v524_v44 }
  0x22   : > { %v339_v58 = vadd.f32 %v335_v48, %v322_v50  ;;  %v340_v59 = vadd.f32 %v336_v52, %v323_v51  ;;  %v352_v60 = vmul.f32 %v526_v31, %v525_v49 }
  0x23   : > { %v353_v61 = vadd.f32 %v349_v53, %v337_v54  ;;  %v354_v62 = vadd.f32 %v350_v56, %v338_v55 }
  0x24   : > { %v355_v0 = vadd.f32 %v351_v35, %v339_v58  ;;  %v356_v42 = vadd.f32 %v352_v60, %v340_v59 }
  0x25   : > { %v361_v1 = vmul.f32 %v527_v57, %v353_v61  ;;  %v362_v2 = vmul.f32 %v527_v57, %v354_v62 }
  0x26   : > { %v363_v3 = vmul.f32 %v527_v57, %v355_v0  ;;  %v364_v4 = vmul.f32 %v527_v57, %v356_v42 }
  0x27   : > { %v369_v5 = vadd.f32 %v528_v63, %v361_v1  ;;  %v370_v6 = vadd.f32 %v528_v63, %v362_v2 }
  0x28   : > { %v371_v7 = vadd.f32 %v528_v63, %v363_v3  ;;  %v372_v8 = vadd.f32 %v528_v63, %v364_v4 }
  0x29   : > { %374 = vst.msk [vmem:[#allocation2] sm:$0xf] %vm373_vm2, %v369_v5  ;;  %375 = vst.msk [vmem:[#allocation2 + $0x4] sm:$0xf] %vm373_vm2, %v370_v6 }
  0x2a   : > { %376 = vst.msk [vmem:[#allocation2 + $0x8] sm:$0xf] %vm373_vm2, %v371_v7  ;;  %377 = vst.msk [vmem:[#allocation2 + $0xc] sm:$0xf] %vm373_vm2, %v372_v8 }
  0x30   : > { %v378_v9 = vld [vmem:[#allocation2] sm:$0xff] }
  0x31   : > { %v379_v10 = vld [vmem:[#allocation2 + $0x8] sm:$0xff] }
  0x32   : > { %v380_v11 = vpack.c.bf16 %v379_v10, %v378_v9 }
  0x34   : > { %538 = vmatmul.mubr.msk.bf16.vlgmr.msra.gmra.mrb[0].mxu0 %vm382_vm3, %v380_v11 }
 0x107   : > { %v424_v12 = vpop.f32.mrb[0].mxu0 }
 0x108   : > { %432 = vst.msk [vmem:[%s202_s9] sm:$0xff] %vm431_vm4, %v424_v12  ;;  %v539_v13 = vpop.f32.mrb[1].mxu0 }
 0x109   : > { %v427_v14 = vpop.f32.mrb[2].mxu0 }
 0x10a   : > { %433 = vst.msk [vmem:[%s202_s9 + $0x8] sm:$0xff] %vm431_vm4, %v427_v14  ;;  %v540_v15 = vpop.f32.mrb[3].mxu0 }
 0x10b PF: > { %s14_s15 = sadd.s32 1, %s558_s15  }
 0x10c   : > { %p11_p5 = scmp.ge.s32.totalorder %s14_s15, 4  }
 0x10e   :  { %13 = sbr.rel (!%p11_p5) target bundleno = 1 (0x1), region = 71 }

// kernel: conv_cross_transformer.27
= control target key start
LH: loop header
LB: loop body
LE: loop exit
PB: predicated region body
PF: predicated region fallthrough
CT: control target
= control target key end

     0   :  { %s1378_s18 = smov 0   ;;  %s1638_s0 = inlined_call_operand.vmem [shape: f32[2,64,32], index: 0, kind: input, shape index: {}]   ;;  %s1639_s1 = inlined_call_operand.vmem [shape: f32[2,16,64], index: 1, kind: input, shape index: {}]   ;;  %s1640_s2 = inlined_call_operand.vmem [shape: bf16[32,8], index: 2, kind: input, shape index: {}]   ;;  %s1641_s3 = inlined_call_operand.vmem [shape: f32[1,8], index: 3, kind: input, shape index: {}]   ;;  %s1642_s4 = inlined_call_operand.vmem [shape: f32[2,64,8], index: 4, kind: input, shape index: {}]   ;;  %s1643_s5 = inlined_call_operand.vmem [shape: f32[2,64,8], index: 5, kind: output, shape index: {}]  }
   0x1 LB: > { %s1114_s19 = sadd.s32 4294967295, %s1343_s18   ;;  %p1118_p0 = scmp.ge.s32.totalorder %s1343_s18, 1  ;;  %s1343_s18 = sphi %s1378_s18, %s15_s18  }
   0x2   : > { %p207_p1 = scmp.lt.s32.totalorder %s1343_s18, 3 }
   0x4   : > { %p208_p2 = pnand %p1118_p0, %p207_p1 }
   0x5   : > { %p245_p3 = scmp.lt.s32.totalorder (!%p208_p2), %s1114_s19, 1  ;;  %vm285_vm0 = vcmask (!%p208_p2), 130048   ;;  %s1345_s28 = smov (!%p208_p2), 112   ;;  %vm1026_vm1 = vcmask (!%p208_p2), 64512  }
   0x6   : > { %211 = sbr.rel (%p208_p2) target bundleno = 1160 (0x488), region = 40  ;;  %s1346_s29 = smov (!%p208_p2), 80  }
   0x7   : > { %s1347_s30 = smov (!%p208_p2), 96  }
   0xd   : > { %s1645_s19 = smov (!%p245_p3, %s1114_s19), 1 }
   0xe   : > { %s1157_s20 = sshll.u32 %s1645_s19, 4  ;;  %s1386_s21 = sshll.u32 %s1645_s19, 6 }
   0xf   : > { %s254_s24 = scalar_lea.vmem %s1639_s1, %s1157_s20  ;;  %s249_s27 = scalar_lea.vmem %s1638_s0, %s1386_s21 }
  0x10   : > { %v274_v0 = vld [vmem:[%s254_s24] sm:$0xff]  ;;  %v275_v1 = vld [vmem:[%s254_s24 + $0x8] sm:$0xff]  ;;  %v268_v5 = vld [vmem:[%s249_s27 + $0x10] sm:$0xff]  ;;  %s1600_s12 = scalar_lea.vmem %s1642_s4, %s1386_s21  ;;  %s1611_s17 = scalar_lea.vmem %s1643_s5, %s1386_s21 }
  0x11   : > { %v266_v2 = vld [vmem:[%s249_s27] sm:$0xff]  ;;  %v1395_v3 = vpack.c.bf16 %v275_v1, %v274_v0  ;;  %v267_v4 = vld [vmem:[%s249_s27 + $0x8] sm:$0xff]  ;;  %v269_v6 = vld [vmem:[%s249_s27 + $0x18] sm:$0xff] }
  0x12   : > { %v280_v7 = vpack.c.bf16 %v267_v4, %v266_v2  ;;  %v281_v8 = vpack.c.bf16 %v269_v6, %v268_v5  ;;  %v270_v9 = vld [vmem:[%s249_s27 + $0x20] sm:$0xff]  ;;  %v271_v10 = vld [vmem:[%s249_s27 + $0x28] sm:$0xff]  ;;  %v272_v12 = vld [vmem:[%s249_s27 + $0x30] sm:$0xff] }
  0x13   : > { %563 = vrot.lane.b32.xlu0 %v1395_v3, %s1345_s28  ;;  %1258 = vmatprep.subr.msk.bf16.mxu0 %vm285_vm0, %v1395_v3  ;;  %v299_v11 = vsel %vm285_vm0, %v1395_v3, 0  ;;  %v273_v13 = vld [vmem:[%s249_s27 + $0x38] sm:$0xff]  ;;  %v282_v14 = vpack.c.bf16 %v271_v10, %v270_v9 }
  0x14   : > { %1191 = vmatpush3.bf16.xpose.msra.mxu0 %v299_v11  ;;  %1192 = vmatprep.mubr.msk.bf16.mxu0 %vm285_vm0, %v280_v7  ;;  %v283_v15 = vpack.c.bf16 %v273_v13, %v272_v12 }
  0x15   : > { %557 = vrot.lane.b32.xlu1 %v281_v8, %s1345_s28 }
  0x17   : > { %555 = vrot.lane.b32.xlu0 %v280_v7, %s1345_s28 }
  0x19   : > { %559 = vrot.lane.b32.xlu1 %v282_v14, %s1345_s28 }
  0x1b   : > { %1193 = vmatmul.mubr.msk.bf16.vlgmr.msra.gmra.mrb[0].mxu0 %vm285_vm0, %v281_v8  ;;  %561 = vrot.lane.b32.xlu0 %v283_v15, %s1345_s28 }
  0x1c   : > { %1196 = vmatprep.mubr.msk.bf16.mxu0 %vm285_vm0, %v282_v14 }
  0x23   : > { %1197 = vmatmul.mubr.msk.bf16.gmra.mrb[4].mxu0 %vm285_vm0, %v283_v15 }
  0x85   : > { %v564_v16 = vpop.permute.xlu0 %563 }
  0x86   : > { %1259 = vmatprep.subr.msk.bf16.mxu1 %vm285_vm0, %v564_v16  ;;  %v578_v17 = vsel %vm285_vm0, %v564_v16, 0 }
  0x87   : > { %1211 = vmatpush3.bf16.xpose.msra.mxu1 %v578_v17  ;;  %v558_v18 = vpop.permute.xlu1 %557 }
  0x89   : > { %v556_v19 = vpop.permute.xlu0 %555 }
  0x8a   : > { %1212 = vmatprep.mubr.msk.bf16.mxu1 %vm285_vm0, %v556_v19 }
  0x8b   : > { %v560_v20 = vpop.permute.xlu1 %559 }
  0x8d   : > { %v562_v21 = vpop.permute.xlu0 %561 }
  0x8e   : > { %1213 = vmatmul.mubr.msk.bf16.vlgmr.msra.gmra.mrb[0].mxu1 %vm285_vm0, %v558_v18 }
  0x8f   : > { %1216 = vmatprep.mubr.msk.bf16.mxu1 %vm285_vm0, %v560_v20 }
  0x96   : > { %1217 = vmatmul.mubr.msk.bf16.gmra.mrb[4].mxu1 %vm285_vm0, %v562_v21 }
  0xee   : > { %v1194_v22 = vpop.f32.mrb[0].mxu0 }
  0xef   : > { %v335_v23 = vpop.f32.mrb[1].mxu0  ;;  %v1416_v28 = vmul.f32 0.25, %v1194_v22 }
  0xf0   : > { %v1412_v24 = vmul.f32 0.25, %v335_v23  ;;  %v1195_v25 = vpop.f32.mrb[2].mxu0 }
  0xf1   : > { %v1414_v26 = vmul.f32 0.25, %v1195_v25  ;;  %v338_v27 = vpop.f32.mrb[3].mxu0  ;;  %v380_v34 = vsel %vm285_vm0, %v1416_v28, -inf }
  0xf2   : > { %v1418_v29 = vmul.f32 0.25, %v338_v27  ;;  %v374_v30 = vsel %vm285_vm0, %v1412_v24, -inf }
  0xf3   : > { %375 = vmax.xlane.f32.xlu1 %v374_v30  ;;  %v383_v32 = vsel %vm285_vm0, %v1414_v26, -inf }
  0xf4   : > { %v377_v31 = vsel %vm285_vm0, %v1418_v29, -inf }
  0xf5   : > { %378 = vmax.xlane.f32.xlu0 %v377_v31 }
  0xf6   : > { %v1198_v33 = vpop.f32.mrb[4].mxu0 }
  0xf7   : > { %384 = vmax.xlane.f32.xlu1 %v383_v32  ;;  %v351_v35 = vpop.f32.mrb[5].mxu0  ;;  %v1430_v39 = vmul.f32 0.25, %v1198_v33 }
  0xf8   : > { %v1428_v36 = vmul.f32 0.25, %v351_v35  ;;  %v1199_v37 = vpop.f32.mrb[6].mxu0 }
  0xf9   : > { %381 = vmax.xlane.f32.xlu0 %v380_v34  ;;  %v354_v38 = vpop.f32.mrb[7].mxu0  ;;  %v1432_v40 = vmul.f32 0.25, %v1199_v37  ;;  %v392_v44 = vsel %vm285_vm0, %v1430_v39, -inf }
  0xfa   : > { %v1434_v41 = vmul.f32 0.25, %v354_v38  ;;  %v386_v42 = vsel %vm285_vm0, %v1428_v36, -inf }
  0xfb   : > { %v395_v45 = vsel %vm285_vm0, %v1432_v40, -inf }
  0xfc   : > { %v389_v43 = vsel %vm285_vm0, %v1434_v41, -inf }
  0xfd   : > { %387 = vmax.xlane.f32.xlu0 %v386_v42  ;;  %390 = vmax.xlane.f32.xlu1 %v389_v43 }
 0x101   : > { %393 = vmax.xlane.f32.xlu0 %v392_v44  ;;  %396 = vmax.xlane.f32.xlu1 %v395_v45 }
 0x161   : > { %v1214_v46 = vpop.f32.mrb[0].mxu1 }
 0x162   : > { %v614_v47 = vpop.f32.mrb[1].mxu1  ;;  %v1446_v51 = vmul.f32 0.25, %v1214_v46 }
 0x163   : > { %v1444_v48 = vmul.f32 0.25, %v614_v47  ;;  %v1215_v49 = vpop.f32.mrb[2].mxu1 }
 0x164   : > { %v617_v50 = vpop.f32.mrb[3].mxu1  ;;  %v1452_v54 = vmul.f32 0.25, %v1215_v49  ;;  %v659_v57 = vsel %vm285_vm0, %v1446_v51, -inf }
 0x165   : > { %v1448_v52 = vmul.f32 0.25, %v617_v50  ;;  %v653_v53 = vsel %vm285_vm0, %v1444_v48, -inf }
 0x166   : > { %654 = vmax.xlane.f32.xlu0 %v653_v53  ;;  %v662_v61 = vsel %vm285_vm0, %v1452_v54, -inf }
 0x167   : > { %v656_v55 = vsel %vm285_vm0, %v1448_v52, -inf }
 0x168   : > { %657 = vmax.xlane.f32.xlu1 %v656_v55 }
 0x169   : > { %v1218_v56 = vpop.f32.mrb[4].mxu1 }
 0x16a   : > { %v630_v58 = vpop.f32.mrb[5].mxu1  ;;  %660 = vmax.xlane.f32.xlu0 %v659_v57  ;;  %v1462_v63 = vmul.f32 0.25, %v1218_v56 }
 0x16b   : > { %v1458_v59 = vmul.f32 0.25, %v630_v58  ;;  %v1219_v60 = vpop.f32.mrb[6].mxu1 }
 0x16c   : > { %v633_v62 = vpop.f32.mrb[7].mxu1  ;;  %663 = vmax.xlane.f32.xlu1 %v662_v61  ;;  %v1468_v2 = vmul.f32 0.25, %v1219_v60  ;;  %v671_v5 = vsel %vm285_vm0, %v1462_v63, -inf }
 0x16d   : > { %v1464_v0 = vmul.f32 0.25, %v633_v62  ;;  %v665_v1 = vsel %vm285_vm0, %v1458_v59, -inf }
 0x16e   : > { %666 = vmax.xlane.f32.xlu0 %v665_v1  ;;  %v674_v6 = vsel %vm285_vm0, %v1468_v2, -inf }
 0x16f   : > { %v668_v4 = vsel %vm285_vm0, %v1464_v0, -inf }
 0x170   : > { %669 = vmax.xlane.f32.xlu1 %v668_v4 }
 0x172   : > { %672 = vmax.xlane.f32.xlu0 %v671_v5 }
 0x174   : > { %675 = vmax.xlane.f32.xlu1 %v674_v6 }
 0x180   : > { %v376_v7 = vpop.xlane.xlu1 %375 }
 0x181   : > { %v398_v11 = vsub.f32 %v1412_v24, %v376_v7 }
 0x182   : > { %v379_v8 = vpop.xlane.xlu0 %378 }
 0x183   : > { %v399_v9 = vsub.f32 %v1418_v29, %v379_v8  ;;  %v406_v17 = vmul.f32 1.442695, %v398_v11 }
 0x184   : > { %v385_v10 = vpop.xlane.xlu1 %384 }
 0x185   : > { %v401_v12 = vsub.f32 %v1414_v26, %v385_v10  ;;  %v408_v13 = vmul.f32 1.442695, %v399_v9 }
 0x186   : > { %v382_v14 = vpop.xlane.xlu0 %381 }
 0x187   : > { %v412_v15 = vmul.f32 1.442695, %v401_v12  ;;  %v400_v16 = vsub.f32 %v1416_v28, %v382_v14 }
 0x189   : > { %1273 = vpow2.f32 %v412_v15  ;;  %v410_v18 = vmul.f32 1.442695, %v400_v16 }
 0x18a   : > { %1275 = vpow2.f32 %v408_v13  ;;  %v388_v19 = vpop.xlane.xlu0 %387  ;;  %v391_v20 = vpop.xlane.xlu1 %390 }
 0x18b   : > { %1277 = vpow2.f32 %v410_v18  ;;  %v402_v21 = vsub.f32 %v1428_v36, %v388_v19  ;;  %v403_v22 = vsub.f32 %v1434_v41, %v391_v20 }
 0x18c   : > { %1279 = vpow2.f32 %v406_v17 }
 0x18d   : > { %v414_v27 = vmul.f32 1.442695, %v402_v21  ;;  %v416_v30 = vmul.f32 1.442695, %v403_v22 }
 0x18e   : > { %v394_v23 = vpop.xlane.xlu0 %393  ;;  %v397_v24 = vpop.xlane.xlu1 %396 }
 0x18f   : > { %v404_v25 = vsub.f32 %v1430_v39, %v394_v23  ;;  %v405_v26 = vsub.f32 %v1432_v40, %v397_v24 }
 0x191   : > { %v418_v28 = vmul.f32 1.442695, %v404_v25  ;;  %v420_v29 = vmul.f32 1.442695, %v405_v26 }
 0x193   : > { %v1484_v31 = vpop.eup %1273  ;;  %1281 = vpow2.f32 %v418_v28 }
 0x194   : > { %v1486_v32 = vpop.eup %1275  ;;  %1283 = vpow2.f32 %v420_v29  ;;  %v431_v33 = vsel %vm285_vm0, %v1484_v31, 0.0 }
 0x195   : > { %v1490_v34 = vpop.eup %1277  ;;  %1285 = vpow2.f32 %v414_v27  ;;  %432 = vadd.xlane.f32.xlu1 %v431_v33  ;;  %v425_v37 = vsel %vm285_vm0, %v1486_v32, 0.0 }
 0x196   : > { %1287 = vpow2.f32 %v416_v30  ;;  %v428_v35 = vsel %vm285_vm0, %v1490_v34, 0.0  ;;  %v1494_v36 = vpop.eup %1279 }
 0x197   : > { %429 = vadd.xlane.f32.xlu0 %v428_v35  ;;  %v422_v38 = vsel %vm285_vm0, %v1494_v36, 0.0 }
 0x199   : > { %426 = vadd.xlane.f32.xlu1 %v425_v37 }
 0x19b   : > { %423 = vadd.xlane.f32.xlu0 %v422_v38 }
 0x19d   : > { %v1500_v39 = vpop.eup %1281 }
 0x19e   : > { %v1502_v40 = vpop.eup %1283  ;;  %v440_v41 = vsel %vm285_vm0, %v1500_v39, 0.0 }
 0x19f   : > { %v1506_v42 = vpop.eup %1285  ;;  %441 = vadd.xlane.f32.xlu0 %v440_v41  ;;  %v443_v43 = vsel %vm285_vm0, %v1502_v40, 0.0 }
 0x1a0   : > { %v1510_v44 = vpop.eup %1287  ;;  %444 = vadd.xlane.f32.xlu1 %v443_v43  ;;  %v434_v45 = vsel %vm285_vm0, %v1506_v42, 0.0 }
 0x1a1   : > { %v437_v46 = vsel %vm285_vm0, %v1510_v44, 0.0 }
 0x1a3   : > { %435 = vadd.xlane.f32.xlu0 %v434_v45 }
 0x1a4   : > { %438 = vadd.xlane.f32.xlu1 %v437_v46 }
 0x1f3   : > { %v655_v47 = vpop.xlane.xlu0 %654 }
 0x1f4   : > { %v677_v49 = vsub.f32 %v1444_v48, %v655_v47 }
 0x1f5   : > { %v658_v50 = vpop.xlane.xlu1 %657 }
 0x1f6   : > { %v678_v55 = vsub.f32 %v1448_v52, %v658_v50  ;;  %v685_v57 = vmul.f32 1.442695, %v677_v49 }
 0x1f7   : > { %v661_v53 = vpop.xlane.xlu0 %660 }
 0x1f8   : > { %v679_v56 = vsub.f32 %v1446_v51, %v661_v53  ;;  %v687_v1 = vmul.f32 1.442695, %v678_v55 }
 0x1f9   : > { %v664_v58 = vpop.xlane.xlu1 %663 }
 0x1fa   : > { %v689_v60 = vmul.f32 1.442695, %v679_v56  ;;  %v680_v61 = vsub.f32 %v1452_v54, %v664_v58 }
 0x1fb   : > { %v667_v62 = vpop.xlane.xlu0 %666 }
 0x1fc   : > { %1289 = vpow2.f32 %v689_v60  ;;  %v691_v4 = vmul.f32 1.442695, %v680_v61  ;;  %v681_v5 = vsub.f32 %v1458_v59, %v667_v62 }
 0x1fd   : > { %1291 = vpow2.f32 %v685_v57  ;;  %v670_v6 = vpop.xlane.xlu1 %669 }
 0x1fe   : > { %1293 = vpow2.f32 %v691_v4  ;;  %v682_v52 = vsub.f32 %v1464_v0, %v670_v6  ;;  %v693_v7 = vmul.f32 1.442695, %v681_v5 }
 0x1ff   : > { %v673_v48 = vpop.xlane.xlu0 %672  ;;  %1295 = vpow2.f32 %v687_v1 }
 0x200   : > { %v683_v51 = vsub.f32 %v1462_v63, %v673_v48  ;;  %v695_v10 = vmul.f32 1.442695, %v682_v52 }
 0x201   : > { %v676_v8 = vpop.xlane.xlu1 %675 }
 0x202   : > { %v697_v9 = vmul.f32 1.442695, %v683_v51  ;;  %v684_v54 = vsub.f32 %v1468_v2, %v676_v8 }
 0x204   : > { %1297 = vpow2.f32 %v697_v9  ;;  %v699_v11 = vmul.f32 1.442695, %v684_v54 }
 0x205   : > { %1299 = vpow2.f32 %v693_v7 }
 0x206   : > { %v1524_v12 = vpop.eup %1289  ;;  %1301 = vpow2.f32 %v699_v11 }
 0x207   : > { %v1526_v59 = vpop.eup %1291  ;;  %v707_v13 = vsel %vm285_vm0, %v1524_v12, 0.0  ;;  %1303 = vpow2.f32 %v695_v10 }
 0x208   : > { %v1530_v0 = vpop.eup %1293  ;;  %708 = vadd.xlane.f32.xlu0 %v707_v13  ;;  %v701_v14 = vsel %vm285_vm0, %v1526_v59, 0.0 }
 0x209   : > { %v710_v63 = vsel %vm285_vm0, %v1530_v0, 0.0  ;;  %v1534_v2 = vpop.eup %1295 }
 0x20a   : > { %711 = vadd.xlane.f32.xlu1 %v710_v63  ;;  %v704_v15 = vsel %vm285_vm0, %v1534_v2, 0.0 }
 0x20c   : > { %702 = vadd.xlane.f32.xlu0 %v701_v14 }
 0x20e   : > { %v1540_v16 = vpop.eup %1297  ;;  %705 = vadd.xlane.f32.xlu1 %v704_v15 }
 0x20f   : > { %v1542_v17 = vpop.eup %1299  ;;  %v719_v18 = vsel %vm285_vm0, %v1540_v16, 0.0 }
 0x210   : > { %v1546_v19 = vpop.eup %1301  ;;  %720 = vadd.xlane.f32.xlu0 %v719_v18  ;;  %v713_v22 = vsel %vm285_vm0, %v1542_v17, 0.0 }
 0x211   : > { %v722_v20 = vsel %vm285_vm0, %v1546_v19, 0.0  ;;  %v1550_v21 = vpop.eup %1303 }
 0x212   : > { %723 = vadd.xlane.f32.xlu1 %v722_v20  ;;  %v716_v23 = vsel %vm285_vm0, %v1550_v21, 0.0 }
 0x214   : > { %714 = vadd.xlane.f32.xlu0 %v713_v22 }
 0x216   : > { %717 = vadd.xlane.f32.xlu1 %v716_v23 }
 0x222   : > { %v433_v24 = vpop.xlane.xlu1 %432 }
 0x223   : > { %1305 = vrcp.f32 %v433_v24 }
 0x224   : > { %v430_v25 = vpop.xlane.xlu0 %429 }
 0x225   : > { %1307 = vrcp.f32 %v430_v25 }
 0x226   : > { %v427_v26 = vpop.xlane.xlu1 %426 }
 0x227   : > { %1309 = vrcp.f32 %v427_v26  ;;  %745 = vrot.lane.b32.xlu1 %v1395_v3, %s1346_s29 }
 0x228   : > { %v424_v27 = vpop.xlane.xlu0 %423 }
 0x229   : > { %1311 = vrcp.f32 %v424_v27 }
 0x22a   : > { %467 = vrot.lane.b32.xlu0 %v1395_v3, %s1347_s30 }
 0x22c   : > { %v442_v46 = vpop.xlane.xlu0 %441 }
 0x22d   : > { %v1306_v28 = vpop.eup %1305  ;;  %v445_v47 = vpop.xlane.xlu1 %444 }
 0x22e   : > { %v457_v30 = vmul.f32 %v1306_v28, %v1484_v31 }
 0x22f   : > { %v1308_v29 = vpop.eup %1307 }
 0x230   : > { %v456_v33 = vmul.f32 %v1308_v29, %v1490_v34  ;;  %v436_v49 = vpop.xlane.xlu0 %435 }
 0x231   : > { %v1310_v35 = vpop.eup %1309  ;;  %v439_v3 = vpop.xlane.xlu1 %438  ;;  %1313 = vrcp.f32 %v436_v49 }
 0x232   : > { %v463_v37 = vpack.c.bf16 %v457_v30, %v456_v33  ;;  %v455_v43 = vmul.f32 %v1310_v35, %v1486_v32  ;;  %1315 = vrcp.f32 %v439_v3 }
 0x233   : > { %v1312_v38 = vpop.eup %1311  ;;  %1317 = vrcp.f32 %v442_v46 }
 0x234   : > { %v454_v41 = vmul.f32 %v1312_v38, %v1494_v36  ;;  %1319 = vrcp.f32 %v445_v47 }
 0x236   : > { %v462_v45 = vpack.c.bf16 %v455_v43, %v454_v41 }
 0x238   : > { %1202 = vmatprep.mubr.msk.bf16.mxu0 %vm285_vm0, %v462_v45 }
 0x23b   : > { %v1314_v36 = vpop.eup %1313 }
 0x23c   : > { %v1316_v57 = vpop.eup %1315  ;;  %v458_v61 = vmul.f32 %v1314_v36, %v1506_v42 }
 0x23d   : > { %v459_v62 = vmul.f32 %v1316_v57, %v1510_v44  ;;  %v1318_v4 = vpop.eup %1317 }
 0x23e   : > { %v1320_v5 = vpop.eup %1319  ;;  %v460_v44 = vmul.f32 %v1318_v4, %v1500_v39  ;;  %v1011_v4 = vld [vmem:[%s1600_s12 + $0x8] sm:$0xff] }
 0x23f   : > { %v464_v6 = vpack.c.bf16 %v459_v62, %v458_v61  ;;  %v461_v52 = vmul.f32 %v1320_v5, %v1502_v40 }
 0x241   : > { %v465_v8 = vpack.c.bf16 %v461_v52, %v460_v44  ;;  %v1016_v52 = vld [vmem:[%s1600_s12 + $0x30] sm:$0xff] }
 0x295   : > { %v709_v50 = vpop.xlane.xlu0 %708 }
 0x297   : > { %v712_v53 = vpop.xlane.xlu1 %711 }
 0x299   : > { %v703_v31 = vpop.xlane.xlu0 %702 }
 0x29b   : > { %v706_v34 = vpop.xlane.xlu1 %705 }
 0x29c   : > { %1321 = vrcp.f32 %v706_v34 }
 0x29d   : > { %v721_v55 = vpop.xlane.xlu0 %720  ;;  %1323 = vrcp.f32 %v703_v31  ;;  %v1153_v31 = vld [vmem:[%s1641_s3] ss:$0 sm:$0xff] }
 0x29e   : > { %1325 = vrcp.f32 %v712_v53 }
 0x29f   : > { %v724_v56 = vpop.xlane.xlu1 %723 }
 0x2a1   : > { %v715_v32 = vpop.xlane.xlu0 %714 }
 0x2a3   : > { %v718_v58 = vpop.xlane.xlu1 %717 }
 0x2a4   : > { %1327 = vrcp.f32 %v718_v58 }
 0x2a5   : > { %v468_v60 = vpop.permute.xlu0 %467  ;;  %1329 = vrcp.f32 %v709_v50 }
 0x2a6   : > { %1200 = vmatprep.subr.bf16.mxu0 %v468_v60  ;;  %v1322_v48 = vpop.eup %1321  ;;  %1331 = vrcp.f32 %v715_v32  ;;  %v1010_v32 = vld [vmem:[%s1600_s12] sm:$0xff] }
 0x2a7   : > { %1201 = vmatpush3.bf16.msra.mxu0 %v468_v60  ;;  %v746_v1 = vpop.permute.xlu1 %745  ;;  %v1324_v42 = vpop.eup %1323  ;;  %v734_v51 = vmul.f32 %v1322_v48, %v1534_v2  ;;  %1333 = vrcp.f32 %v724_v56  ;;  %v1013_v60 = vld [vmem:[%s1600_s12 + $0x18] sm:$0xff] }
 0x2a8   : > { %1220 = vmatprep.subr.bf16.mxu0 %v746_v1  ;;  %v733_v7 = vmul.f32 %v1324_v42, %v1526_v59  ;;  %v1326_v9 = vpop.eup %1325  ;;  %1335 = vrcp.f32 %v721_v55  ;;  %v1012_v55 = vld [vmem:[%s1600_s12 + $0x10] sm:$0xff] }
 0x2a9   : > { %v736_v39 = vmul.f32 %v1326_v9, %v1530_v0  ;;  %v1272_v0 = vld [vmem:[%s1640_s2] sm:$0xff]  }
 0x2aa   : > { %1203 = vmatmul.mubr.msk.bf16.vlgmr.msra.gmra.mrb[8].mxu0 %vm285_vm0, %v463_v37  ;;  %v741_v54 = vpack.c.bf16 %v734_v51, %v733_v7 }
 0x2ab   : > { %1206 = vmatprep.mubr.msk.bf16.mxu0 %vm285_vm0, %v464_v6  ;;  %1221 = vmatpush3.bf16.msra.mxu0 %v746_v1 }
 0x2ae   : > { %v1328_v10 = vpop.eup %1327 }
 0x2af   : > { %v1330_v11 = vpop.eup %1329  ;;  %v738_v40 = vmul.f32 %v1328_v10, %v1550_v21  ;;  %v1017_v10 = vld [vmem:[%s1600_s12 + $0x38] sm:$0xff] }
 0x2b0   : > { %v1332_v13 = vpop.eup %1331  ;;  %v735_v63 = vmul.f32 %v1330_v11, %v1524_v12  ;;  %v1271_v12 = vld [vmem:[%s1640_s2 + $0x8] sm:$0xff]  }
 0x2b1   : > { %v737_v2 = vmul.f32 %v1332_v13, %v1542_v17  ;;  %v1334_v14 = vpop.eup %1333  ;;  %1230 = vmatprep.subr.bf16.mxu1 %v1271_v12 }
 0x2b2   : > { %1207 = vmatmul.mubr.msk.bf16.gmra.mrb[12].mxu0 %vm285_vm0, %v465_v8  ;;  %v742_v59 = vpack.c.bf16 %v736_v39, %v735_v63  ;;  %v1336_v18 = vpop.eup %1335  ;;  %v740_v20 = vmul.f32 %v1334_v14, %v1546_v19  ;;  %1231 = vmatpush3.bf16.msra.mxu1 %v1271_v12  ;;  %v1014_v8 = vld [vmem:[%s1600_s12 + $0x20] sm:$0xff] }
 0x2b3   : > { %1222 = vmatprep.mubr.msk.bf16.mxu0 %vm285_vm0, %v741_v54  ;;  %v743_v15 = vpack.c.bf16 %v738_v40, %v737_v2  ;;  %v739_v22 = vmul.f32 %v1336_v18, %v1540_v16  ;;  %1240 = vmatprep.subr.bf16.mxu1 %v1272_v0  ;;  %v1015_v40 = vld [vmem:[%s1600_s12 + $0x28] sm:$0xff] }
 0x2b5   : > { %v744_v23 = vpack.c.bf16 %v740_v20, %v739_v22 }
 0x2ba   : > { %1223 = vmatmul.mubr.msk.bf16.vlgmr.msra.gmra.mrb[16].mxu0 %vm285_vm0, %v742_v59 }
 0x2bb   : > { %1226 = vmatprep.mubr.msk.bf16.mxu0 %vm285_vm0, %v743_v15 }
 0x2c2   : > { %1227 = vmatmul.mubr.msk.bf16.gmra.mrb[20].mxu0 %vm285_vm0, %v744_v23 }
 0x37d   : > { %v1204_v17 = vpop.f32.mrb[8].mxu0 }
 0x37e   : > { %v516_v21 = vpop.f32.mrb[9].mxu0 }
 0x37f   : > { %v1205_v24 = vpop.f32.mrb[10].mxu0 }
 0x380   : > { %v548_v19 = vpack.c.bf16 %v1205_v24, %v1204_v17  ;;  %v519_v25 = vpop.f32.mrb[11].mxu0 }
 0x381   : > { %v547_v16 = vpack.c.bf16 %v519_v25, %v516_v21 }
 0x385   : > { %v1208_v26 = vpop.f32.mrb[12].mxu0 }
 0x386   : > { %v532_v27 = vpop.f32.mrb[13].mxu0 }
 0x387   : > { %v1209_v28 = vpop.f32.mrb[14].mxu0 }
 0x388   : > { %v550_v29 = vpack.c.bf16 %v1209_v28, %v1208_v26  ;;  %v535_v30 = vpop.f32.mrb[15].mxu0 }
 0x389   : > { %v549_v33 = vpack.c.bf16 %v535_v30, %v532_v27 }
 0x38d   : > { %v1224_v35 = vpop.f32.mrb[16].mxu0 }
 0x38e   : > { %v794_v37 = vpop.f32.mrb[17].mxu0 }
 0x38f   : > { %v1225_v38 = vpop.f32.mrb[18].mxu0 }
 0x390   : > { %v826_v41 = vpack.c.bf16 %v1225_v38, %v1224_v35  ;;  %v797_v43 = vpop.f32.mrb[19].mxu0 }
 0x391   : > { %v825_v45 = vpack.c.bf16 %v797_v43, %v794_v37 }
 0x393   : > { %1232 = vmatprep.mubr.msk.bf16.mxu1 %vm285_vm0, %v825_v45 }
 0x394   : > { %1233 = vmatmul.mubr.msk.bf16.vlgmr.msra.gmra.mrb[8].mxu1 %vm285_vm0, %v826_v41 }
 0x395   : > { %v1228_v46 = vpop.f32.mrb[20].mxu0  ;;  %1241 = vmatpush3.bf16.msra.mxu1 %v1272_v0 }
 0x396   : > { %v810_v47 = vpop.f32.mrb[21].mxu0 }
 0x397   : > { %v1229_v49 = vpop.f32.mrb[22].mxu0 }
 0x398   : > { %v828_v3 = vpack.c.bf16 %v1229_v49, %v1228_v46  ;;  %v813_v50 = vpop.f32.mrb[23].mxu0 }
 0x399   : > { %v827_v53 = vpack.c.bf16 %v813_v50, %v810_v47 }
 0x39b   : > { %1236 = vmatprep.mubr.msk.bf16.mxu1 %vm285_vm0, %v827_v53 }
 0x39c   : > { %1237 = vmatmul.mubr.msk.bf16.gmra.mrb[12].mxu1 %vm285_vm0, %v828_v3 }
 0x39d   : > { %1242 = vmatprep.mubr.msk.bf16.mxu1 %vm285_vm0, %v547_v16 }
 0x3a4   : > { %1243 = vmatmul.mubr.msk.bf16.vlgmr.msra.gmra.mrb[8].mxu1 %vm285_vm0, %v548_v19 }
 0x3a5   : > { %1246 = vmatprep.mubr.msk.bf16.mxu1 %vm285_vm0, %v549_v33 }
 0x3ac   : > { %1247 = vmatmul.mubr.msk.bf16.gmra.mrb[12].mxu1 %vm285_vm0, %v550_v29 }
 0x477   : > { %v1244_v34 = vpop.f32.mrb[8].mxu1 }
 0x478   : > { %v1004_v56 = vadd.f32 %v1244_v34, %v1153_v31  ;;  %v964_v36 = vpop.f32.mrb[9].mxu1 }
 0x479   : > { %v1002_v57 = vadd.f32 %v1153_v31, %v964_v36  ;;  %v1245_v58 = vpop.f32.mrb[10].mxu1 }
 0x47a   : > { %v1020_v61 = vmul.f32 %v1012_v55, %v1004_v56  ;;  %v1005_v62 = vadd.f32 %v1245_v58, %v1153_v31  ;;  %v967_v1 = vpop.f32.mrb[11].mxu1 }
 0x47b   : > { %v1018_v5 = vmul.f32 %v1010_v32, %v1002_v57  ;;  %v1003_v6 = vadd.f32 %v1153_v31, %v967_v1 }
 0x47c   : > { %1029 = vst.msk [vmem:[%s1611_s17 + $0x10] sm:$0xff] %vm1026_vm1, %v1020_v61  ;;  %v1021_v48 = vmul.f32 %v1013_v60, %v1005_v62 }
 0x47d   : > { %1027 = vst.msk [vmem:[%s1611_s17] sm:$0xff] %vm1026_vm1, %v1018_v5  ;;  %v1019_v42 = vmul.f32 %v1011_v4, %v1003_v6 }
 0x47e   : > { %1030 = vst.msk [vmem:[%s1611_s17 + $0x18] sm:$0xff] %vm1026_vm1, %v1021_v48 }
 0x47f   : > { %1028 = vst.msk [vmem:[%s1611_s17 + $0x8] sm:$0xff] %vm1026_vm1, %v1019_v42  ;;  %v1248_v44 = vpop.f32.mrb[12].mxu1 }
 0x480   : > { %v1008_v51 = vadd.f32 %v1248_v44, %v1153_v31  ;;  %v980_v7 = vpop.f32.mrb[13].mxu1 }
 0x481   : > { %v1006_v9 = vadd.f32 %v1153_v31, %v980_v7  ;;  %v1249_v54 = vpop.f32.mrb[14].mxu1 }
 0x482   : > { %v1024_v11 = vmul.f32 %v1016_v52, %v1008_v51  ;;  %v1009_v13 = vadd.f32 %v1249_v54, %v1153_v31  ;;  %v983_v39 = vpop.f32.mrb[15].mxu1 }
 0x483   : > { %v1022_v63 = vmul.f32 %v1014_v8, %v1006_v9  ;;  %v1007_v2 = vadd.f32 %v1153_v31, %v983_v39 }
 0x484   : > { %1033 = vst.msk [vmem:[%s1611_s17 + $0x30] sm:$0xff] %vm1026_vm1, %v1024_v11  ;;  %v1025_v59 = vmul.f32 %v1017_v10, %v1009_v13 }
 0x485   : > { %1031 = vst.msk [vmem:[%s1611_s17 + $0x20] sm:$0xff] %vm1026_vm1, %v1022_v63  ;;  %v1023_v14 = vmul.f32 %v1015_v40, %v1007_v2 }
 0x486   : > { %1034 = vst.msk [vmem:[%s1611_s17 + $0x38] sm:$0xff] %vm1026_vm1, %v1025_v59 }
 0x487   : > { %1032 = vst.msk [vmem:[%s1611_s17 + $0x28] sm:$0xff] %vm1026_vm1, %v1023_v14 }
 0x488 PF: > { %s15_s18 = sadd.s32 1, %s1343_s18  }
 0x489   : > { %p12_p4 = scmp.ge.s32.totalorder %s15_s18, 4  }
 0x48b   :  { %14 = sbr.rel (!%p12_p4) target bundleno = 1 (0x1), region = 76 }

// kernel: conv_cross_transformer.29
= control target key start
LH: loop header
LB: loop body
LE: loop exit
PB: predicated region body
PF: predicated region fallthrough
CT: control target
= control target key end

     0   :  { %s954_s21 = smov 0   ;;  %s1191_s0 = inlined_call_operand.vmem [shape: f32[128,8], index: 0, kind: input, shape index: {}]   ;;  %s1192_s1 = inlined_call_operand.vmem [shape: f32[2,8], index: 1, kind: input, shape index: {}]   ;;  %s1193_s2 = inlined_call_operand.vmem [shape: bf16[8,32], index: 2, kind: input, shape index: {}]   ;;  %s1194_s3 = inlined_call_operand.vmem [shape: f32[1,32], index: 3, kind: input, shape index: {}]   ;;  %s1195_s4 = inlined_call_operand.vmem [shape: bf16[32,8], index: 4, kind: input, shape index: {}]   ;;  %s1196_s5 = inlined_call_operand.vmem [shape: f32[1,8], index: 5, kind: input, shape index: {}]   ;;  %s1197_s6 = inlined_call_operand.vmem [shape: f32[128,8], index: 6, kind: output, shape index: {}]  }
   0x1 LB: > { %s794_s22 = sadd.s32 4294967295, %s917_s21   ;;  %p798_p0 = scmp.ge.s32.totalorder %s917_s21, 1  ;;  %s917_s21 = sphi %s954_s21, %s16_s21  }
   0x2   : > { %p213_p1 = scmp.lt.s32.totalorder %s917_s21, 3 }
   0x4   : > { %p214_p2 = pnand %p798_p0, %p213_p1 }
   0x5   : > { %s799_s23 = sshll.u32 (!%p214_p2), %s794_s22, 3  ;;  %vm266_vm0 = vcmask (!%p214_p2), 64512   ;;  %v456_v56 = vld [vmem:[%s1193_s2] sm:$0xf] (!%p214_p2)  ;;  %vm476_vm1 = vcmask (!%p214_p2), 1043456  }
   0x6   : > { %217 = sbr.rel (%p214_p2) target bundleno = 830 (0x33e), region = 44  ;;  %p244_p3 = scmp.lt.s32.totalorder (!%p214_p2), %s799_s23, 15  ;;  %852 = vmatprep.subr.msk.bf16.mxu0 (!%p214_p2), %vm476_vm1, %v456_v56  ;;  %v478_v57 = vsel (!%p214_p2), %vm476_vm1, %v456_v56, 0 }
   0x7   : > { %831 = vmatpush3.bf16.msra.mxu0 (!%p214_p2), %v478_v57 }
   0xd   : > { %s1199_s23 = smov (!%p244_p3, %s799_s23), 15 }
   0xe   : > { %s800_s24 = sshll.u32 %s1199_s23, 3 }
   0xf   : > { %s247_s27 = scalar_lea.vmem %s1191_s0, %s800_s24  ;;  %s253_s20 = scalar_lea.vmem %s1197_s6, %s800_s24 }
  0x10   : > { %v970_v0 = vld [vmem:[%s247_s27] sm:$0xff]  ;;  %v972_v1 = vld [vmem:[%s247_s27 + $0x10] sm:$0xff]  ;;  %v974_v2 = vld [vmem:[%s247_s27 + $0x8] sm:$0xff] }
  0x11   : > { %v267_v3 = vsel %vm266_vm0, %v970_v0, 0.0  ;;  %v273_v4 = vsel %vm266_vm0, %v972_v1, 0.0  ;;  %v980_v5 = vld [vmem:[%s247_s27 + $0x18] sm:$0xff]  ;;  %v270_v6 = vsel %vm266_vm0, %v974_v2, 0.0  ;;  %v986_v8 = vld [vmem:[%s247_s27 + $0x20] sm:$0xff]  ;;  %v988_v9 = vld [vmem:[%s247_s27 + $0x28] sm:$0xff] }
  0x12   : > { %268 = vadd.xlane.f32.xlu0 %v267_v3  ;;  %274 = vadd.xlane.f32.xlu1 %v273_v4  ;;  %v276_v7 = vsel %vm266_vm0, %v980_v5, 0.0  ;;  %v279_v10 = vsel %vm266_vm0, %v986_v8, 0.0  ;;  %v282_v11 = vsel %vm266_vm0, %v988_v9, 0.0  ;;  %v994_v12 = vld [vmem:[%s247_s27 + $0x30] sm:$0xff]  ;;  %v996_v13 = vld [vmem:[%s247_s27 + $0x38] sm:$0xff] }
  0x13   : > { %v285_v14 = vsel %vm266_vm0, %v994_v12, 0.0  ;;  %v288_v15 = vsel %vm266_vm0, %v996_v13, 0.0 }
  0x16   : > { %271 = vadd.xlane.f32.xlu0 %v270_v6  ;;  %277 = vadd.xlane.f32.xlu1 %v276_v7 }
  0x1a   : > { %280 = vadd.xlane.f32.xlu0 %v279_v10  ;;  %283 = vadd.xlane.f32.xlu1 %v282_v11 }
  0x1e   : > { %286 = vadd.xlane.f32.xlu0 %v285_v14  ;;  %289 = vadd.xlane.f32.xlu1 %v288_v15 }
  0x9f   : > { %v269_v16 = vpop.xlane.xlu0 %268  ;;  %v275_v17 = vpop.xlane.xlu1 %274 }
  0xa0   : > { %v292_v18 = vmul.f32 0.125, %v269_v16  ;;  %v294_v19 = vmul.f32 0.125, %v275_v17 }
  0xa2   : > { %v1003_v20 = vsub.f32 %v970_v0, %v292_v18  ;;  %v1006_v21 = vsub.f32 %v972_v1, %v294_v19 }
  0xa3   : > { %v272_v22 = vpop.xlane.xlu0 %271  ;;  %v278_v23 = vpop.xlane.xlu1 %277 }
  0xa4   : > { %v293_v24 = vmul.f32 0.125, %v272_v22  ;;  %v295_v25 = vmul.f32 0.125, %v278_v23  ;;  %v308_v26 = vmul.f32 %v1003_v20, %v1003_v20  ;;  %v310_v27 = vmul.f32 %v1006_v21, %v1006_v21 }
  0xa6   : > { %v1013_v28 = vsub.f32 %v974_v2, %v293_v24  ;;  %v1016_v29 = vsub.f32 %v980_v5, %v295_v25  ;;  %v316_v30 = vsel %vm266_vm0, %v308_v26, 0.0  ;;  %v322_v33 = vsel %vm266_vm0, %v310_v27, 0.0 }
  0xa7   : > { %317 = vadd.xlane.f32.xlu0 %v316_v30  ;;  %v281_v31 = vpop.xlane.xlu0 %280  ;;  %v284_v32 = vpop.xlane.xlu1 %283 }
  0xa8   : > { %v296_v34 = vmul.f32 0.125, %v281_v31  ;;  %v297_v35 = vmul.f32 0.125, %v284_v32  ;;  %v309_v36 = vmul.f32 %v1013_v28, %v1013_v28  ;;  %v311_v37 = vmul.f32 %v1016_v29, %v1016_v29 }
  0xaa   : > { %v1025_v38 = vsub.f32 %v986_v8, %v296_v34  ;;  %v1028_v39 = vsub.f32 %v988_v9, %v297_v35  ;;  %v319_v40 = vsel %vm266_vm0, %v309_v36, 0.0  ;;  %v325_v43 = vsel %vm266_vm0, %v311_v37, 0.0 }
  0xab   : > { %323 = vadd.xlane.f32.xlu0 %v322_v33  ;;  %320 = vadd.xlane.f32.xlu1 %v319_v40  ;;  %v287_v41 = vpop.xlane.xlu0 %286  ;;  %v290_v42 = vpop.xlane.xlu1 %289 }
  0xac   : > { %v298_v44 = vmul.f32 0.125, %v287_v41  ;;  %v299_v45 = vmul.f32 0.125, %v290_v42  ;;  %v312_v46 = vmul.f32 %v1025_v38, %v1025_v38  ;;  %v313_v47 = vmul.f32 %v1028_v39, %v1028_v39 }
  0xae   : > { %v1037_v48 = vsub.f32 %v994_v12, %v298_v44  ;;  %v1040_v49 = vsub.f32 %v996_v13, %v299_v45  ;;  %v328_v50 = vsel %vm266_vm0, %v312_v46, 0.0  ;;  %v331_v51 = vsel %vm266_vm0, %v313_v47, 0.0 }
  0xaf   : > { %326 = vadd.xlane.f32.xlu1 %v325_v43  ;;  %329 = vadd.xlane.f32.xlu0 %v328_v50 }
  0xb0   : > { %v314_v52 = vmul.f32 %v1037_v48, %v1037_v48  ;;  %v315_v53 = vmul.f32 %v1040_v49, %v1040_v49 }
  0xb2   : > { %v334_v54 = vsel %vm266_vm0, %v314_v52, 0.0  ;;  %v337_v55 = vsel %vm266_vm0, %v315_v53, 0.0 }
  0xb3   : > { %332 = vadd.xlane.f32.xlu1 %v331_v51  ;;  %335 = vadd.xlane.f32.xlu0 %v334_v54 }
  0xb7   : > { %338 = vadd.xlane.f32.xlu1 %v337_v55 }
 0x134   : > { %v318_v58 = vpop.xlane.xlu0 %317 }
 0x135   : > { %v340_v59 = vmul.f32 0.125, %v318_v58 }
 0x137   : > { %863 = vrsqrt.f32 %v340_v59  ;;  %vm350_vm2 = vcmp.eq.f32.partialorder %v340_v59, inf  ;;  %v353_v18 = vand.u32 2147483648, %v340_v59  ;;  %vm352_vm3 = vcmp.eq.f32.partialorder %v340_v59, 0.0 }
 0x138   : > { %v321_v60 = vpop.xlane.xlu1 %320  ;;  %v324_v61 = vpop.xlane.xlu0 %323 }
 0x139   : > { %v341_v62 = vmul.f32 0.125, %v321_v60  ;;  %v342_v63 = vmul.f32 0.125, %v324_v61 }
 0x13b   : > { %865 = vrsqrt.f32 %v341_v62  ;;  %vm357_vm4 = vcmp.eq.f32.partialorder %v341_v62, inf  ;;  %vm359_vm5 = vcmp.eq.f32.partialorder %v341_v62, 0.0  ;;  %v360_v31 = vand.u32 2147483648, %v341_v62 }
 0x13c   : > { %867 = vrsqrt.f32 %v342_v63  ;;  %v327_v3 = vpop.xlane.xlu1 %326  ;;  %v330_v4 = vpop.xlane.xlu0 %329  ;;  %vm364_vm6 = vcmp.eq.f32.partialorder %v342_v63, inf  ;;  %v367_v34 = vand.u32 2147483648, %v342_v63  ;;  %vm366_vm7 = vcmp.eq.f32.partialorder %v342_v63, 0.0 }
 0x13d   : > { %v343_v6 = vmul.f32 0.125, %v327_v3  ;;  %v344_v7 = vmul.f32 0.125, %v330_v4 }
 0x13f   : > { %869 = vrsqrt.f32 %v343_v6  ;;  %vm371_vm8 = vcmp.eq.f32.partialorder %v343_v6, inf  ;;  %vm373_vm9 = vcmp.eq.f32.partialorder %v343_v6, 0.0  ;;  %v374_v45 = vand.u32 2147483648, %v343_v6 }
 0x140   : > { %871 = vrsqrt.f32 %v344_v7  ;;  %v333_v10 = vpop.xlane.xlu1 %332  ;;  %v336_v11 = vpop.xlane.xlu0 %335  ;;  %vm378_vm10 = vcmp.eq.f32.partialorder %v344_v7, inf  ;;  %v381_v50 = vand.u32 2147483648, %v344_v7  ;;  %vm380_vm11 = vcmp.eq.f32.partialorder %v344_v7, 0.0 }
 0x141   : > { %v864_v14 = vpop.eup %863  ;;  %v1053_v15 = vmul.f32 0.125, %v333_v10  ;;  %v1055_v16 = vmul.f32 0.125, %v336_v11 }
 0x142   : > { %v349_v17 = vmul.f32 %v864_v14, %v340_v59 }
 0x143   : > { %873 = vrsqrt.f32 %v1053_v15  ;;  %vm385_vm12 = vcmp.eq.f32.partialorder %v1053_v15, inf  ;;  %vm387_vm13 = vcmp.eq.f32.partialorder %v1053_v15, 0.0  ;;  %vm392_vm14 = vcmp.eq.f32.partialorder %v1055_v16, inf }
 0x144   : > { %v351_v19 = vsel %vm350_vm2, %v340_v59, %v349_v17  ;;  %875 = vrsqrt.f32 %v1055_v16  ;;  %v339_v22 = vpop.xlane.xlu1 %338  ;;  %v388_v59 = vand.u32 2147483648, %v1053_v15  ;;  %vm394_vm15 = vcmp.eq.f32.partialorder %v1055_v16, 0.0 }
 0x145   : > { %v866_v23 = vpop.eup %865  ;;  %v1059_v24 = vmul.f32 0.125, %v339_v22  ;;  %v354_v25 = vsel %vm352_vm3, %v353_v18, %v351_v19  ;;  %vm644_vm3 = vcmask 261120  }
 0x146   : > { %v868_v26 = vpop.eup %867  ;;  %v356_v27 = vmul.f32 %v866_v23, %v341_v62  ;;  %v404_v30 = vadd.f32 1e-05, %v354_v25 }
 0x147   : > { %v363_v32 = vmul.f32 %v868_v26, %v342_v63  ;;  %877 = vrsqrt.f32 %v1059_v24  ;;  %vm399_vm1 = vcmp.eq.f32.partialorder %v1059_v24, inf  ;;  %vm401_vm2 = vcmp.eq.f32.partialorder %v1059_v24, 0.0 }
 0x148   : > { %v358_v33 = vsel %vm357_vm4, %v341_v62, %v356_v27  ;;  %879 = vrcp.f32 %v404_v30  ;;  %v395_v62 = vand.u32 2147483648, %v1055_v16 }
 0x149   : > { %v870_v35 = vpop.eup %869  ;;  %v365_v36 = vsel %vm364_vm6, %v342_v63, %v363_v32  ;;  %v361_v37 = vsel %vm359_vm5, %v360_v31, %v358_v33 }
 0x14a   : > { %v872_v40 = vpop.eup %871  ;;  %v368_v41 = vsel %vm366_vm7, %v367_v34, %v365_v36  ;;  %v370_v42 = vmul.f32 %v870_v35, %v343_v6  ;;  %v405_v43 = vadd.f32 1e-05, %v361_v37 }
 0x14b   : > { %v406_v44 = vadd.f32 1e-05, %v368_v41  ;;  %v377_v46 = vmul.f32 %v872_v40, %v344_v7 }
 0x14c   : > { %v372_v47 = vsel %vm371_vm8, %v343_v6, %v370_v42  ;;  %881 = vrcp.f32 %v405_v43 }
 0x14d   : > { %v874_v51 = vpop.eup %873  ;;  %883 = vrcp.f32 %v406_v44  ;;  %v375_v52 = vsel %vm373_vm9, %v374_v45, %v372_v47  ;;  %v379_v53 = vsel %vm378_vm10, %v344_v7, %v377_v46 }
 0x14e   : > { %v876_v54 = vpop.eup %875  ;;  %v407_v55 = vadd.f32 1e-05, %v375_v52  ;;  %v382_v56 = vsel %vm380_vm11, %v381_v50, %v379_v53  ;;  %v384_v57 = vmul.f32 %v874_v51, %v1053_v15 }
 0x14f   : > { %v408_v58 = vadd.f32 1e-05, %v382_v56  ;;  %v391_v60 = vmul.f32 %v876_v54, %v1055_v16 }
 0x150   : > { %885 = vrcp.f32 %v407_v55  ;;  %v386_v61 = vsel %vm385_vm12, %v1053_v15, %v384_v57  ;;  %v402_v15 = vand.u32 2147483648, %v1059_v24 }
 0x151   : > { %v878_v63 = vpop.eup %877  ;;  %887 = vrcp.f32 %v408_v58  ;;  %v389_v3 = vsel %vm387_vm13, %v388_v59, %v386_v61  ;;  %v393_v4 = vsel %vm392_vm14, %v1055_v16, %v391_v60  ;;  %v803_v16 = vld [vmem:[%s1192_s1] ss:$0 sm:$0xff] }
 0x152   : > { %v880_v6 = vpop.eup %879  ;;  %v409_v7 = vadd.f32 1e-05, %v389_v3  ;;  %v396_v10 = vsel %vm394_vm15, %v395_v62, %v393_v4  ;;  %v398_v11 = vmul.f32 %v878_v63, %v1059_v24  ;;  %v805_v58 = vld [vmem:[%s1194_s3] ss:$0 sm:$0xff] }
 0x153   : > { %v410_v14 = vadd.f32 1e-05, %v396_v10  ;;  %v413_v17 = vmul.f32 %v880_v6, %v1003_v20  ;;  %v804_v20 = vld [vmem:[%s1192_s1 + $0x1] ss:$0 sm:$0xff] }
 0x154   : > { %889 = vrcp.f32 %v409_v7  ;;  %v400_v18 = vsel %vm399_vm1, %v1059_v24, %v398_v11 }
 0x155   : > { %891 = vrcp.f32 %v410_v14  ;;  %v403_v19 = vsel %vm401_vm2, %v402_v15, %v400_v18  ;;  %v432_v27 = vmul.f32 %v803_v16, %v413_v17 }
 0x156   : > { %v882_v22 = vpop.eup %881  ;;  %v411_v23 = vadd.f32 1e-05, %v403_v19 }
 0x157   : > { %v884_v25 = vpop.eup %883  ;;  %v415_v26 = vmul.f32 %v882_v22, %v1013_v28  ;;  %v444_v33 = vadd.f32 %v804_v20, %v432_v27 }
 0x158   : > { %893 = vrcp.f32 %v411_v23  ;;  %v417_v30 = vmul.f32 %v884_v25, %v1006_v21 }
 0x159   : > { %v433_v24 = vmul.f32 %v803_v16, %v415_v26 }
 0x15a   : > { %v886_v31 = vpop.eup %885  ;;  %v434_v36 = vmul.f32 %v803_v16, %v417_v30 }
 0x15b   : > { %v888_v32 = vpop.eup %887  ;;  %v445_v34 = vadd.f32 %v804_v20, %v433_v24  ;;  %v419_v35 = vmul.f32 %v886_v31, %v1016_v29 }
 0x15c   : > { %v421_v37 = vmul.f32 %v888_v32, %v1025_v38  ;;  %v446_v43 = vadd.f32 %v804_v20, %v434_v36 }
 0x15d   : > { %v452_v40 = vpack.c.bf16 %v445_v34, %v444_v33  ;;  %v435_v28 = vmul.f32 %v803_v16, %v419_v35 }
 0x15e   : > { %v890_v41 = vpop.eup %889  ;;  %v436_v45 = vmul.f32 %v803_v16, %v421_v37 }
 0x15f   : > { %v892_v42 = vpop.eup %891  ;;  %832 = vmatprep.mubr.msk.bf16.mxu0 %vm266_vm0, %v452_v40  ;;  %v447_v44 = vadd.f32 %v804_v20, %v435_v28  ;;  %v423_v21 = vmul.f32 %v890_v41, %v1028_v39 }
 0x160   : > { %v425_v46 = vmul.f32 %v892_v42, %v1037_v48  ;;  %v448_v29 = vadd.f32 %v804_v20, %v436_v45  ;;  %v861_v48 = vld [vmem:[%s1195_s4] sm:$0xff]  }
 0x161   : > { %v453_v47 = vpack.c.bf16 %v447_v44, %v446_v43  ;;  %v437_v50 = vmul.f32 %v803_v16, %v423_v21  ;;  %840 = vmatprep.subr.bf16.mxu1 %v861_v48 }
 0x162   : > { %v894_v51 = vpop.eup %893  ;;  %v438_v53 = vmul.f32 %v803_v16, %v425_v46  ;;  %841 = vmatpush3.bf16.msra.mxu1 %v861_v48 }
 0x163   : > { %833 = vmatmul.mubr.msk.bf16.vlgmr.msra.gmra.mrb[0].mxu0 %vm266_vm0, %v453_v47  ;;  %v449_v38 = vadd.f32 %v804_v20, %v437_v50  ;;  %v427_v52 = vmul.f32 %v894_v51, %v1040_v49  ;;  %v862_v49 = vld [vmem:[%s1195_s4 + $0x8] sm:$0xff]  }
 0x164   : > { %v450_v56 = vadd.f32 %v804_v20, %v438_v53  ;;  %842 = vmatprep.subr.bf16.mxu1 %v862_v49 }
 0x165   : > { %v454_v54 = vpack.c.bf16 %v449_v38, %v448_v29  ;;  %v439_v55 = vmul.f32 %v803_v16, %v427_v52 }
 0x166   : > { %843 = vmatpush3.bf16.msra.mxu1 %v862_v49 }
 0x167   : > { %836 = vmatprep.mubr.msk.bf16.mxu0 %vm266_vm0, %v454_v54  ;;  %v451_v57 = vadd.f32 %v804_v20, %v439_v55 }
 0x169   : > { %v455_v39 = vpack.c.bf16 %v451_v57, %v450_v56 }
 0x16b   : > { %837 = vmatmul.mubr.msk.bf16.gmra.mrb[4].mxu0 %vm266_vm0, %v455_v39 }
 0x236   : > { %v834_v59 = vpop.f32.mrb[0].mxu0 }
 0x237   : > { %v1104_v60 = vadd.f32 %v834_v59, %v805_v58  ;;  %v514_v61 = vpop.f32.mrb[1].mxu0 }
 0x238   : > { %v1106_v62 = vadd.f32 %v805_v58, %v514_v61  ;;  %v835_v63 = vpop.f32.mrb[2].mxu0 }
 0x239   : > { %v547_v3 = vmul.f32 %v1104_v60, %v1104_v60  ;;  %v1110_v4 = vadd.f32 %v835_v63, %v805_v58  ;;  %v517_v6 = vpop.f32.mrb[3].mxu0 }
 0x23a   : > { %v545_v7 = vmul.f32 %v1106_v62, %v1106_v62  ;;  %v1114_v10 = vadd.f32 %v805_v58, %v517_v6 }
 0x23b   : > { %v555_v11 = vmul.f32 %v547_v3, %v1104_v60  ;;  %v548_v14 = vmul.f32 %v1110_v4, %v1110_v4 }
 0x23c   : > { %v553_v15 = vmul.f32 %v545_v7, %v1106_v62  ;;  %v546_v17 = vmul.f32 %v1114_v10, %v1114_v10 }
 0x23d   : > { %v563_v18 = vmul.f32 0.044715, %v555_v11  ;;  %v556_v16 = vmul.f32 %v548_v14, %v1110_v4 }
 0x23e   : > { %v561_v19 = vmul.f32 0.044715, %v553_v15  ;;  %v554_v22 = vmul.f32 %v546_v17, %v1114_v10  ;;  %v838_v23 = vpop.f32.mrb[4].mxu0 }
 0x23f   : > { %v571_v25 = vadd.f32 %v563_v18, %v1104_v60  ;;  %v564_v26 = vmul.f32 0.044715, %v556_v16  ;;  %v1125_v27 = vadd.f32 %v838_v23, %v805_v58  ;;  %v530_v20 = vpop.f32.mrb[5].mxu0 }
 0x240   : > { %v569_v30 = vadd.f32 %v561_v19, %v1106_v62  ;;  %v562_v24 = vmul.f32 0.044715, %v554_v22  ;;  %v1128_v31 = vadd.f32 %v805_v58, %v530_v20  ;;  %v839_v32 = vpop.f32.mrb[6].mxu0 }
 0x241   : > { %v579_v33 = vmul.f32 0.7978846, %v571_v25  ;;  %v572_v34 = vadd.f32 %v564_v26, %v1110_v4  ;;  %v551_v35 = vmul.f32 %v1125_v27, %v1125_v27  ;;  %v1133_v36 = vadd.f32 %v839_v32, %v805_v58  ;;  %v533_v37 = vpop.f32.mrb[7].mxu0 }
 0x242   : > { %v577_v40 = vmul.f32 0.7978846, %v569_v30  ;;  %v570_v28 = vadd.f32 %v562_v24, %v1114_v10  ;;  %v549_v41 = vmul.f32 %v1128_v31, %v1128_v31  ;;  %v1138_v42 = vadd.f32 %v805_v58, %v533_v37 }
 0x243   : > { %895 = vtanh.f32 %v579_v33  ;;  %v580_v43 = vmul.f32 0.7978846, %v572_v34  ;;  %v559_v44 = vmul.f32 %v551_v35, %v1125_v27  ;;  %v552_v21 = vmul.f32 %v1133_v36, %v1133_v36 }
 0x244   : > { %v578_v45 = vmul.f32 0.7978846, %v570_v28  ;;  %v557_v46 = vmul.f32 %v549_v41, %v1128_v31  ;;  %v550_v47 = vmul.f32 %v1138_v42, %v1138_v42  ;;  %897 = vtanh.f32 %v577_v40 }
 0x245   : > { %899 = vtanh.f32 %v580_v43  ;;  %v567_v50 = vmul.f32 0.044715, %v559_v44  ;;  %v560_v51 = vmul.f32 %v552_v21, %v1133_v36 }
 0x246   : > { %v565_v29 = vmul.f32 0.044715, %v557_v46  ;;  %v558_v38 = vmul.f32 %v550_v47, %v1138_v42  ;;  %901 = vtanh.f32 %v578_v45  ;;  %v810_v46 = vld [vmem:[%s1196_s5] ss:$0 sm:$0xff] }
 0x247   : > { %v575_v52 = vadd.f32 %v567_v50, %v1125_v27  ;;  %v568_v53 = vmul.f32 0.044715, %v560_v51 }
 0x248   : > { %v573_v54 = vadd.f32 %v565_v29, %v1128_v31  ;;  %v566_v55 = vmul.f32 0.044715, %v558_v38 }
 0x249   : > { %v583_v56 = vmul.f32 0.7978846, %v575_v52  ;;  %v576_v57 = vadd.f32 %v568_v53, %v1133_v36 }
 0x24a   : > { %v581_v39 = vmul.f32 0.7978846, %v573_v54  ;;  %v574_v48 = vadd.f32 %v566_v55, %v1138_v42 }
 0x24b   : > { %903 = vtanh.f32 %v583_v56  ;;  %v584_v49 = vmul.f32 0.7978846, %v576_v57 }
 0x24c   : > { %905 = vtanh.f32 %v581_v39  ;;  %v582_v58 = vmul.f32 0.7978846, %v574_v48 }
 0x24d   : > { %v896_v59 = vpop.eup %895  ;;  %907 = vtanh.f32 %v584_v49 }
 0x24e   : > { %v898_v61 = vpop.eup %897  ;;  %v595_v63 = vadd.f32 1.0, %v896_v59  ;;  %909 = vtanh.f32 %v582_v58 }
 0x24f   : > { %v900_v3 = vpop.eup %899  ;;  %v593_v6 = vadd.f32 1.0, %v898_v61 }
 0x250   : > { %v902_v7 = vpop.eup %901  ;;  %v603_v11 = vmul.f32 0.5, %v595_v63  ;;  %v596_v14 = vadd.f32 1.0, %v900_v3 }
 0x251   : > { %v594_v15 = vadd.f32 1.0, %v902_v7  ;;  %v601_v17 = vmul.f32 0.5, %v593_v6 }
 0x252   : > { %v604_v18 = vmul.f32 0.5, %v596_v14  ;;  %v611_v19 = vmul.f32 %v603_v11, %v1104_v60 }
 0x253   : > { %v602_v16 = vmul.f32 0.5, %v594_v15  ;;  %v609_v25 = vmul.f32 %v601_v17, %v1106_v62 }
 0x254   : > { %v612_v22 = vmul.f32 %v604_v18, %v1110_v4 }
 0x255   : > { %v904_v23 = vpop.eup %903  ;;  %v610_v26 = vmul.f32 %v602_v16, %v1114_v10 }
 0x256   : > { %v906_v20 = vpop.eup %905  ;;  %v599_v30 = vadd.f32 1.0, %v904_v23  ;;  %v618_v24 = vpack.c.bf16 %v612_v22, %v611_v19 }
 0x257   : > { %v908_v32 = vpop.eup %907  ;;  %v597_v33 = vadd.f32 1.0, %v906_v20  ;;  %v617_v34 = vpack.c.bf16 %v610_v26, %v609_v25 }
 0x258   : > { %v910_v35 = vpop.eup %909  ;;  %v607_v37 = vmul.f32 0.5, %v599_v30  ;;  %v600_v40 = vadd.f32 1.0, %v908_v32 }
 0x259   : > { %v605_v28 = vmul.f32 0.5, %v597_v33  ;;  %v598_v41 = vadd.f32 1.0, %v910_v35  ;;  %844 = vmatprep.mubr.msk.bf16.mxu1 %vm644_vm3, %v617_v34 }
 0x25a   : > { %v608_v60 = vmul.f32 0.5, %v600_v40  ;;  %845 = vmatmul.mubr.msk.bf16.vlgmr.msra.gmra.mrb[0].mxu1 %vm644_vm3, %v618_v24  ;;  %v615_v4 = vmul.f32 %v607_v37, %v1125_v27 }
 0x25b   : > { %v606_v62 = vmul.f32 0.5, %v598_v41  ;;  %v613_v43 = vmul.f32 %v605_v28, %v1128_v31 }
 0x25c   : > { %v616_v10 = vmul.f32 %v608_v60, %v1133_v36 }
 0x25d   : > { %v614_v44 = vmul.f32 %v606_v62, %v1138_v42 }
 0x25e   : > { %v620_v21 = vpack.c.bf16 %v616_v10, %v615_v4 }
 0x25f   : > { %v619_v45 = vpack.c.bf16 %v614_v44, %v613_v43 }
 0x261   : > { %848 = vmatprep.mubr.msk.bf16.mxu1 %vm644_vm3, %v619_v45 }
 0x262   : > { %849 = vmatmul.mubr.msk.bf16.gmra.mrb[4].mxu1 %vm644_vm3, %v620_v21 }
 0x32d   : > { %v846_v47 = vpop.f32.mrb[0].mxu1 }
 0x32e   : > { %v700_v50 = vadd.f32 %v846_v47, %v810_v46  ;;  %v691_v51 = vpop.f32.mrb[1].mxu1 }
 0x32f   : > { %v692_v27 = vadd.f32 %v810_v46, %v691_v51  ;;  %v847_v31 = vpop.f32.mrb[2].mxu1 }
 0x330   : > { %v724_v36 = vadd.f32 %v700_v50, %v972_v1  ;;  %v703_v42 = vadd.f32 %v847_v31, %v810_v46  ;;  %v694_v29 = vpop.f32.mrb[3].mxu1 }
 0x331   : > { %v722_v38 = vadd.f32 %v692_v27, %v970_v0  ;;  %v695_v52 = vadd.f32 %v810_v46, %v694_v29 }
 0x332   : > { %732 = vst.msk [vmem:[%s253_s20 + $0x10] sm:$0xff] %vm266_vm0, %v724_v36  ;;  %v725_v53 = vadd.f32 %v703_v42, %v980_v5 }
 0x333   : > { %730 = vst.msk [vmem:[%s253_s20] sm:$0xff] %vm266_vm0, %v722_v38  ;;  %v723_v54 = vadd.f32 %v695_v52, %v974_v2 }
 0x334   : > { %733 = vst.msk [vmem:[%s253_s20 + $0x18] sm:$0xff] %vm266_vm0, %v725_v53 }
 0x335   : > { %731 = vst.msk [vmem:[%s253_s20 + $0x8] sm:$0xff] %vm266_vm0, %v723_v54  ;;  %v850_v55 = vpop.f32.mrb[4].mxu1 }
 0x336   : > { %v716_v56 = vadd.f32 %v850_v55, %v810_v46  ;;  %v707_v1 = vpop.f32.mrb[5].mxu1 }
 0x337   : > { %v708_v57 = vadd.f32 %v810_v46, %v707_v1  ;;  %v851_v39 = vpop.f32.mrb[6].mxu1 }
 0x338   : > { %v728_v0 = vadd.f32 %v716_v56, %v994_v12  ;;  %v719_v48 = vadd.f32 %v851_v39, %v810_v46  ;;  %v710_v49 = vpop.f32.mrb[7].mxu1 }
 0x339   : > { %v726_v58 = vadd.f32 %v708_v57, %v986_v8  ;;  %v711_v5 = vadd.f32 %v810_v46, %v710_v49 }
 0x33a   : > { %736 = vst.msk [vmem:[%s253_s20 + $0x30] sm:$0xff] %vm266_vm0, %v728_v0  ;;  %v729_v2 = vadd.f32 %v719_v48, %v996_v13 }
 0x33b   : > { %734 = vst.msk [vmem:[%s253_s20 + $0x20] sm:$0xff] %vm266_vm0, %v726_v58  ;;  %v727_v59 = vadd.f32 %v711_v5, %v988_v9 }
 0x33c   : > { %737 = vst.msk [vmem:[%s253_s20 + $0x38] sm:$0xff] %vm266_vm0, %v729_v2 }
 0x33d   : > { %735 = vst.msk [vmem:[%s253_s20 + $0x28] sm:$0xff] %vm266_vm0, %v727_v59 }
 0x33e PF: > { %s16_s21 = sadd.s32 1, %s917_s21  }
 0x33f   : > { %p13_p4 = scmp.ge.s32.totalorder %s16_s21, 4  }
 0x341   :  { %15 = sbr.rel (!%p13_p4) target bundleno = 1 (0x1), region = 74 }

</bundles_post_ra>
